<compile_context>
chip_gen: v6e
topology: v6e:2x2x1
jax: 0.10.0
libtpu: 0.0.40
codegen_flags: <defaults>
</compile_context>

<pallas_src>
import functools

import jax
import jax.numpy as jnp
from jax.experimental import pallas as pl
from jax.experimental.pallas import tpu as pltpu

LANE = 128  # lane-dense padding target for weight N-dims and the h/z outputs


def _round_up(n, m):
    return ((n + m - 1) // m) * m


# ---------------------------------------------------------------------------
# Kernel 1: stand-in encoder = conv3x3(pad=1) -> ReLU -> global-average-pool.
# grid = (B // Bt,); one batch tile per step. The conv is built in-kernel from
# 9 shifted slices of the padded NHWC image (no im2col stream in HBM).
# ---------------------------------------------------------------------------
def encoder_kernel(x_ref, w9_ref, bc_ref, h_ref, *, H, W, inv_hw):
    Bt = x_ref.shape[0]
    C = x_ref.shape[3]
    OCp = w9_ref.shape[2]

    xb = x_ref[...]                                     # (Bt, H+2, W+2, C) bf16
    acc = jnp.zeros((Bt * H * W, OCp), jnp.float32)
    for di in range(3):                                 # 9 taps, static unroll
        for dj in range(3):
            tap = xb[:, di:di + H, dj:dj + W, :].reshape(Bt * H * W, C)
            acc = acc + jnp.dot(tap, w9_ref[di * 3 + dj],
                                preferred_element_type=jnp.float32)
    conv = jnp.maximum(acc + bc_ref[...], 0.0)          # ReLU, (Bt*H*W, OCp)
    conv = conv.reshape(Bt, H * W, OCp)
    # Global average pool; encoder.fc == Identity so this is h.
    h_ref[...] = (jnp.sum(conv, axis=1) * inv_hw).astype(h_ref.dtype)


# ---------------------------------------------------------------------------
# Kernel 2: projection head over the whole batch (M = B), weights resident.
# ---------------------------------------------------------------------------
def head_kernel(h_ref, w1_ref, b1_ref, w2_ref, b2_ref, z_ref):
    h = h_ref[...]
    z1 = jnp.dot(h, w1_ref[...], preferred_element_type=jnp.float32) + b1_ref[...]
    z1 = jnp.maximum(z1, 0.0)
    z = jnp.dot(z1, w2_ref[...], preferred_element_type=jnp.float32) + b2_ref[...]
    z_ref[...] = z.astype(z_ref.dtype)


def encoder_forward(xp, w9, bcp):
    B, Hp, Wp, C = xp.shape
    H, W = Hp - 2, Wp - 2
    OCp = w9.shape[2]
    # Sublane-dense batch tile (8) when possible; otherwise take the whole
    # (toy-sized) batch as a single block.
    # TODO(synk): pad B to a multiple of 8 for large non-multiple batches so the
    # batch grid stays >= 2 and even (v7x has 2 TensorCores sharing the grid).
    Bt = 8 if B % 8 == 0 else B
    kernel = functools.partial(encoder_kernel, H=H, W=W, inv_hw=1.0 / (H * W))
    return pl.pallas_call(
        kernel,
        out_shape=jax.ShapeDtypeStruct((B, OCp), jnp.float32),
        grid=(B // Bt,),
        in_specs=[
            # Streamed, pipelined padded-image tiles (bf16, 1x image bytes).
            pl.BlockSpec((Bt, Hp, Wp, C), lambda b: (b, 0, 0, 0)),
            # Conv weights/bias: constant block index -> DMA once, VMEM-resident.
            pl.BlockSpec(w9.shape, lambda b: (0, 0, 0)),
            pl.BlockSpec(bcp.shape, lambda b: (0, 0)),
        ],
        out_specs=pl.BlockSpec((Bt, OCp), lambda b: (b, 0)),
        compiler_params=pltpu.CompilerParams(
            dimension_semantics=("parallel",)),
    )(xp, w9, bcp)


def head_forward(h, w1p, b1p, w2p, b2p):
    B, OCp = h.shape
    PDp = w2p.shape[1]
    return pl.pallas_call(
        head_kernel,
        out_shape=jax.ShapeDtypeStruct((B, PDp), jnp.float32),
        grid=(1,),
        in_specs=[pl.BlockSpec((B, OCp), lambda i: (0, 0)),
                  pl.BlockSpec(w1p.shape, lambda i: (0, 0)),
                  pl.BlockSpec(b1p.shape, lambda i: (0, 0)),
                  pl.BlockSpec(w2p.shape, lambda i: (0, 0)),
                  pl.BlockSpec(b2p.shape, lambda i: (0, 0))],
        out_specs=pl.BlockSpec((B, PDp), lambda i: (0, 0)),
    )(h, w1p, b1p, w2p, b2p)


# ---------------------------------------------------------------------------
# Plain-JAX glue (fused into the same jit): layout/pad params, slice outputs.
# ---------------------------------------------------------------------------
@jax.jit
def simclr_apply(x, wc, bc, w1, b1, w2, b2):
    B, C, H, W = x.shape
    dim_mlp = w1.shape[0]
    proj_dim = w2.shape[1]
    OCp = _round_up(dim_mlp, LANE)
    PDp = _round_up(proj_dim, LANE)

    # NCHW -> zero-padded NHWC image, cast to bf16 (the streamed MXU operand).
    xp = jnp.pad(x.transpose(0, 2, 3, 1), ((0, 0), (1, 1), (1, 1), (0, 0)))
    xp = xp.astype(jnp.bfloat16)

    # Conv weight (C*9, dim_mlp), row index c*9 + tap  ->  per-tap (9, C, OCp).
    w9 = wc.reshape(C, 9, dim_mlp).transpose(1, 0, 2)
    w9 = jnp.pad(w9, ((0, 0), (0, 0), (0, OCp - dim_mlp))).astype(jnp.bfloat16)
    bcp = jnp.pad(bc, ((0, 0), (0, OCp - dim_mlp)))

    # Projection-head params, zero-padded to lane-dense widths (kept f32; tiny).
    w1p = jnp.pad(w1, ((0, OCp - dim_mlp), (0, OCp - dim_mlp)))
    b1p = jnp.pad(b1, ((0, 0), (0, OCp - dim_mlp)))
    w2p = jnp.pad(w2, ((0, OCp - dim_mlp), (0, PDp - proj_dim)))
    b2p = jnp.pad(b2, ((0, 0), (0, PDp - proj_dim)))

    h_pad = encoder_forward(xp, w9, bcp)                # (B, OCp) f32
    z_pad = head_forward(h_pad, w1p, b1p, w2p, b2p)     # (B, PDp) f32
    return h_pad[:, :dim_mlp], z_pad[:, :proj_dim]


# Pure-JAX im2col used only by the reference check below.
def im2col_3x3_reference(x):
    B, C, H, W = x.shape
    xp = jnp.pad(x, ((0, 0), (0, 0), (1, 1), (1, 1)))
    cols = []
    for i in range(3):
        for j in range(3):
            cols.append(xp[:, :, i:i + H, j:j + W])      # (B, C, H, W)
    patches = jnp.stack(cols, axis=2)                    # (B, C, 9, H, W)
    patches = patches.transpose(0, 3, 4, 1, 2)           # (B, H, W, C, 9)
    return patches.reshape(B, H * W, C * 9)


if __name__ == "__main__":
    # Shapes consistent with the module: image batch x, dim_mlp encoder width,
    # projection_dim=64 (PyTorch default).
    B, C, H, W = 2, 4, 16, 16
    dim_mlp, proj_dim = 32, 64
    CK = C * 9

    key = jax.random.PRNGKey(0)
    kx, kwc, kbc, kw1, kb1, kw2, kb2 = jax.random.split(key, 7)

    x = jax.random.normal(kx, (B, C, H, W), dtype=jnp.float32)
    wc = jax.random.normal(kwc, (CK, dim_mlp), dtype=jnp.float32) * 0.1
    bc = jax.random.normal(kbc, (1, dim_mlp), dtype=jnp.float32) * 0.1
    w1 = jax.random.normal(kw1, (dim_mlp, dim_mlp), dtype=jnp.float32) * 0.1
    b1 = jax.random.normal(kb1, (1, dim_mlp), dtype=jnp.float32) * 0.1
    w2 = jax.random.normal(kw2, (dim_mlp, proj_dim), dtype=jnp.float32) * 0.1
    b2 = jax.random.normal(kb2, (1, proj_dim), dtype=jnp.float32) * 0.1

    h, z = simclr_apply(x, wc, bc, w1, b1, w2, b2)
    jax.block_until_ready((h, z))

    # Pure-JAX f32 reference of the same math.
    patches = im2col_3x3_reference(x)                    # (B, HW, CK)
    conv_ref = jnp.maximum(jnp.einsum("bpc,cd->bpd", patches, wc) + bc, 0.0)
    h_ref = conv_ref.mean(axis=1)                        # GAP -> (B, dim_mlp)
    z_ref = jnp.maximum(h_ref @ w1 + b1, 0.0) @ w2 + b2

    assert h.shape == (B, dim_mlp) and z.shape == (B, proj_dim)
    # bf16 streamed operands -> slightly looser tolerance than the f32 version.
    assert jnp.allclose(h, h_ref, atol=2e-2, rtol=2e-2)
    assert jnp.allclose(z, z_ref, atol=2e-2, rtol=2e-2)

    print("KERNEL_OK")
</pallas_src>

<mosaic_0001>
module attributes {stable_mosaic.version = 11 : i64} {
  func.func @head_kernel(%arg0: i32, %arg1: memref<2x128xf32, #tpu.memory_space<vmem>>, %arg2: memref<128x128xf32, #tpu.memory_space<vmem>>, %arg3: memref<1x128xf32, #tpu.memory_space<vmem>>, %arg4: memref<128x128xf32, #tpu.memory_space<vmem>>, %arg5: memref<1x128xf32, #tpu.memory_space<vmem>>, %arg6: memref<2x128xf32, #tpu.memory_space<vmem>>) attributes {dimension_semantics = [#tpu.dimension_semantics<arbitrary>], iteration_bounds = array<i64: 1>, scalar_prefetch = 0 : i64, scratch_operands = 0 : i64, tpu.core_type = #tpu.core_type<tc>, window_params = [{pipeline_mode = #tpu.pipeline_mode<synchronous>, transform_indices = @transform_0, window_bounds = array<i64: 2, 128>}, {pipeline_mode = #tpu.pipeline_mode<synchronous>, transform_indices = @transform_1, window_bounds = array<i64: 128, 128>}, {pipeline_mode = #tpu.pipeline_mode<synchronous>, transform_indices = @transform_2, window_bounds = array<i64: 1, 128>}, {pipeline_mode = #tpu.pipeline_mode<synchronous>, transform_indices = @transform_3, window_bounds = array<i64: 128, 128>}, {pipeline_mode = #tpu.pipeline_mode<synchronous>, transform_indices = @transform_4, window_bounds = array<i64: 1, 128>}, {pipeline_mode = #tpu.pipeline_mode<synchronous>, transform_indices = @transform_5, window_bounds = array<i64: 2, 128>}]} {
    %c0 = arith.constant 0 : index
    %c0_0 = arith.constant 0 : index
    %0 = vector.load %arg1[%c0, %c0_0] : memref<2x128xf32, #tpu.memory_space<vmem>>, vector<2x128xf32>
    %c0_1 = arith.constant 0 : index
    %c0_2 = arith.constant 0 : index
    %1 = vector.load %arg2[%c0_1, %c0_2] : memref<128x128xf32, #tpu.memory_space<vmem>>, vector<128x128xf32>
    %cst = arith.constant dense<0.000000e+00> : vector<2x128xf32>
    %2 = tpu.matmul %0, %1, %cst {dimension_numbers = #tpu.dot_dimension_numbers<[1], [0], [0], [1], [0, 0, 1, 1], [], []>} : vector<2x128xf32>, vector<128x128xf32>, vector<2x128xf32> -> vector<2x128xf32>
    %c0_3 = arith.constant 0 : index
    %c0_4 = arith.constant 0 : index
    %3 = vector.load %arg3[%c0_3, %c0_4] : memref<1x128xf32, #tpu.memory_space<vmem>>, vector<1x128xf32>
    %4 = vector.broadcast %3 : vector<1x128xf32> to vector<2x128xf32>
    %5 = arith.addf %2, %4 : vector<2x128xf32>
    %cst_5 = arith.constant 0.000000e+00 : f32
    %6 = vector.broadcast %cst_5 : f32 to vector<2x128xf32>
    %7 = arith.maximumf %5, %6 : vector<2x128xf32>
    %c0_6 = arith.constant 0 : index
    %c0_7 = arith.constant 0 : index
    %8 = vector.load %arg4[%c0_6, %c0_7] : memref<128x128xf32, #tpu.memory_space<vmem>>, vector<128x128xf32>
    %cst_8 = arith.constant dense<0.000000e+00> : vector<2x128xf32>
    %9 = tpu.matmul %7, %8, %cst_8 {dimension_numbers = #tpu.dot_dimension_numbers<[1], [0], [0], [1], [0, 0, 1, 1], [], []>} : vector<2x128xf32>, vector<128x128xf32>, vector<2x128xf32> -> vector<2x128xf32>
    %c0_9 = arith.constant 0 : index
    %c0_10 = arith.constant 0 : index
    %10 = vector.load %arg5[%c0_9, %c0_10] : memref<1x128xf32, #tpu.memory_space<vmem>>, vector<1x128xf32>
    %11 = vector.broadcast %10 : vector<1x128xf32> to vector<2x128xf32>
    %12 = arith.addf %9, %11 : vector<2x128xf32>
    %c0_11 = arith.constant 0 : index
    %c0_12 = arith.constant 0 : index
    %13 = vector.load %arg6[%c0_11, %c0_12] : memref<2x128xf32, #tpu.memory_space<vmem>>, vector<2x128xf32>
    tpu.vector_store %arg6[%c0_11, %c0_12], %12 {strides = array<i32>} : memref<2x128xf32, #tpu.memory_space<vmem>>, vector<2x128xf32>,
    return
  }
  func.func @transform_0(%arg0: i32) -> (i32, i32) {
    %c0_i32 = arith.constant 0 : i32
    %c0_i32_0 = arith.constant 0 : i32
    %c0_i32_1 = arith.constant 0 : i32
    return %c0_i32, %c0_i32_0 : i32, i32
  }
  func.func @transform_1(%arg0: i32) -> (i32, i32) {
    %c0_i32 = arith.constant 0 : i32
    %c0_i32_0 = arith.constant 0 : i32
    %c0_i32_1 = arith.constant 0 : i32
    return %c0_i32, %c0_i32_0 : i32, i32
  }
  func.func @transform_2(%arg0: i32) -> (i32, i32) {
    %c0_i32 = arith.constant 0 : i32
    %c0_i32_0 = arith.constant 0 : i32
    %c0_i32_1 = arith.constant 0 : i32
    return %c0_i32, %c0_i32_0 : i32, i32
  }
  func.func @transform_3(%arg0: i32) -> (i32, i32) {
    %c0_i32 = arith.constant 0 : i32
    %c0_i32_0 = arith.constant 0 : i32
    %c0_i32_1 = arith.constant 0 : i32
    return %c0_i32, %c0_i32_0 : i32, i32
  }
  func.func @transform_4(%arg0: i32) -> (i32, i32) {
    %c0_i32 = arith.constant 0 : i32
    %c0_i32_0 = arith.constant 0 : i32
    %c0_i32_1 = arith.constant 0 : i32
    return %c0_i32, %c0_i32_0 : i32, i32
  }
  func.func @transform_5(%arg0: i32) -> (i32, i32) {
    %c0_i32 = arith.constant 0 : i32
    %c0_i32_0 = arith.constant 0 : i32
    %c0_i32_1 = arith.constant 0 : i32
    return %c0_i32, %c0_i32_0 : i32, i32
  }
}

module attributes {stable_mosaic.version = 11 : i64} {
  func.func @encoder_kernel(%arg0: i32, %arg1: memref<2x18x18x4xbf16, #tpu.memory_space<vmem>>, %arg2: memref<9x4x128xbf16, #tpu.memory_space<vmem>>, %arg3: memref<1x128xf32, #tpu.memory_space<vmem>>, %arg4: memref<2x128xf32, #tpu.memory_space<vmem>>) attributes {dimension_semantics = [#tpu.dimension_semantics<parallel>], iteration_bounds = array<i64: 1>, scalar_prefetch = 0 : i64, scratch_operands = 0 : i64, tpu.core_type = #tpu.core_type<tc>, window_params = [{transform_indices = @transform_0, window_bounds = array<i64: 2, 18, 18, 4>}, {pipeline_mode = #tpu.pipeline_mode<synchronous>, transform_indices = @transform_1, window_bounds = array<i64: 9, 4, 128>}, {pipeline_mode = #tpu.pipeline_mode<synchronous>, transform_indices = @transform_2, window_bounds = array<i64: 1, 128>}, {transform_indices = @transform_3, window_bounds = array<i64: 2, 128>}]} {
    %c0 = arith.constant 0 : index
    %c0_0 = arith.constant 0 : index
    %c0_1 = arith.constant 0 : index
    %c0_2 = arith.constant 0 : index
    %0 = vector.load %arg1[%c0, %c0_0, %c0_1, %c0_2] : memref<2x18x18x4xbf16, #tpu.memory_space<vmem>>, vector<2x18x18x4xbf16>
    %cst = arith.constant 0.000000e+00 : f32
    %1 = vector.broadcast %cst : f32 to vector<512x128xf32>
    %2 = vector.extract_strided_slice %0 {offsets = [0, 0, 0, 0], sizes = [2, 16, 16, 4], strides = [1, 1, 1, 1]} : vector<2x18x18x4xbf16> to vector<2x16x16x4xbf16>
    %3 = vector.shape_cast %2 : vector<2x16x16x4xbf16> to vector<512x4xbf16>
    %c0_3 = arith.constant 0 : index
    %c0_4 = arith.constant 0 : index
    %c0_5 = arith.constant 0 : index
    %4 = vector.load %arg2[%c0_3, %c0_4, %c0_5] : memref<9x4x128xbf16, #tpu.memory_space<vmem>>, vector<1x4x128xbf16>
    %5 = vector.shape_cast %4 : vector<1x4x128xbf16> to vector<4x128xbf16>
    %cst_6 = arith.constant dense<0.000000e+00> : vector<512x128xf32>
    %6 = tpu.matmul %3, %5, %cst_6 {dimension_numbers = #tpu.dot_dimension_numbers<[1], [0], [0], [1], [0, 0, 1, 1], [], []>} : vector<512x4xbf16>, vector<4x128xbf16>, vector<512x128xf32> -> vector<512x128xf32>
    %7 = arith.addf %1, %6 : vector<512x128xf32>
    %8 = vector.extract_strided_slice %0 {offsets = [0, 0, 1, 0], sizes = [2, 16, 16, 4], strides = [1, 1, 1, 1]} : vector<2x18x18x4xbf16> to vector<2x16x16x4xbf16>
    %9 = vector.shape_cast %8 : vector<2x16x16x4xbf16> to vector<512x4xbf16>
    %c1 = arith.constant 1 : index
    %c0_7 = arith.constant 0 : index
    %c0_8 = arith.constant 0 : index
    %10 = vector.load %arg2[%c1, %c0_7, %c0_8] : memref<9x4x128xbf16, #tpu.memory_space<vmem>>, vector<1x4x128xbf16>
    %11 = vector.shape_cast %10 : vector<1x4x128xbf16> to vector<4x128xbf16>
    %cst_9 = arith.constant dense<0.000000e+00> : vector<512x128xf32>
    %12 = tpu.matmul %9, %11, %cst_9 {dimension_numbers = #tpu.dot_dimension_numbers<[1], [0], [0], [1], [0, 0, 1, 1], [], []>} : vector<512x4xbf16>, vector<4x128xbf16>, vector<512x128xf32> -> vector<512x128xf32>
    %13 = arith.addf %7, %12 : vector<512x128xf32>
    %14 = vector.extract_strided_slice %0 {offsets = [0, 0, 2, 0], sizes = [2, 16, 16, 4], strides = [1, 1, 1, 1]} : vector<2x18x18x4xbf16> to vector<2x16x16x4xbf16>
    %15 = vector.shape_cast %14 : vector<2x16x16x4xbf16> to vector<512x4xbf16>
    %c2 = arith.constant 2 : index
    %c0_10 = arith.constant 0 : index
    %c0_11 = arith.constant 0 : index
    %16 = vector.load %arg2[%c2, %c0_10, %c0_11] : memref<9x4x128xbf16, #tpu.memory_space<vmem>>, vector<1x4x128xbf16>
    %17 = vector.shape_cast %16 : vector<1x4x128xbf16> to vector<4x128xbf16>
    %cst_12 = arith.constant dense<0.000000e+00> : vector<512x128xf32>
    %18 = tpu.matmul %15, %17, %cst_12 {dimension_numbers = #tpu.dot_dimension_numbers<[1], [0], [0], [1], [0, 0, 1, 1], [], []>} : vector<512x4xbf16>, vector<4x128xbf16>, vector<512x128xf32> -> vector<512x128xf32>
    %19 = arith.addf %13, %18 : vector<512x128xf32>
    %20 = vector.extract_strided_slice %0 {offsets = [0, 1, 0, 0], sizes = [2, 16, 16, 4], strides = [1, 1, 1, 1]} : vector<2x18x18x4xbf16> to vector<2x16x16x4xbf16>
    %21 = vector.shape_cast %20 : vector<2x16x16x4xbf16> to vector<512x4xbf16>
    %c3 = arith.constant 3 : index
    %c0_13 = arith.constant 0 : index
    %c0_14 = arith.constant 0 : index
    %22 = vector.load %arg2[%c3, %c0_13, %c0_14] : memref<9x4x128xbf16, #tpu.memory_space<vmem>>, vector<1x4x128xbf16>
    %23 = vector.shape_cast %22 : vector<1x4x128xbf16> to vector<4x128xbf16>
    %cst_15 = arith.constant dense<0.000000e+00> : vector<512x128xf32>
    %24 = tpu.matmul %21, %23, %cst_15 {dimension_numbers = #tpu.dot_dimension_numbers<[1], [0], [0], [1], [0, 0, 1, 1], [], []>} : vector<512x4xbf16>, vector<4x128xbf16>, vector<512x128xf32> -> vector<512x128xf32>
    %25 = arith.addf %19, %24 : vector<512x128xf32>
    %26 = vector.extract_strided_slice %0 {offsets = [0, 1, 1, 0], sizes = [2, 16, 16, 4], strides = [1, 1, 1, 1]} : vector<2x18x18x4xbf16> to vector<2x16x16x4xbf16>
    %27 = vector.shape_cast %26 : vector<2x16x16x4xbf16> to vector<512x4xbf16>
    %c4 = arith.constant 4 : index
    %c0_16 = arith.constant 0 : index
    %c0_17 = arith.constant 0 : index
    %28 = vector.load %arg2[%c4, %c0_16, %c0_17] : memref<9x4x128xbf16, #tpu.memory_space<vmem>>, vector<1x4x128xbf16>
    %29 = vector.shape_cast %28 : vector<1x4x128xbf16> to vector<4x128xbf16>
    %cst_18 = arith.constant dense<0.000000e+00> : vector<512x128xf32>
    %30 = tpu.matmul %27, %29, %cst_18 {dimension_numbers = #tpu.dot_dimension_numbers<[1], [0], [0], [1], [0, 0, 1, 1], [], []>} : vector<512x4xbf16>, vector<4x128xbf16>, vector<512x128xf32> -> vector<512x128xf32>
    %31 = arith.addf %25, %30 : vector<512x128xf32>
    %32 = vector.extract_strided_slice %0 {offsets = [0, 1, 2, 0], sizes = [2, 16, 16, 4], strides = [1, 1, 1, 1]} : vector<2x18x18x4xbf16> to vector<2x16x16x4xbf16>
    %33 = vector.shape_cast %32 : vector<2x16x16x4xbf16> to vector<512x4xbf16>
    %c5 = arith.constant 5 : index
    %c0_19 = arith.constant 0 : index
    %c0_20 = arith.constant 0 : index
    %34 = vector.load %arg2[%c5, %c0_19, %c0_20] : memref<9x4x128xbf16, #tpu.memory_space<vmem>>, vector<1x4x128xbf16>
    %35 = vector.shape_cast %34 : vector<1x4x128xbf16> to vector<4x128xbf16>
    %cst_21 = arith.constant dense<0.000000e+00> : vector<512x128xf32>
    %36 = tpu.matmul %33, %35, %cst_21 {dimension_numbers = #tpu.dot_dimension_numbers<[1], [0], [0], [1], [0, 0, 1, 1], [], []>} : vector<512x4xbf16>, vector<4x128xbf16>, vector<512x128xf32> -> vector<512x128xf32>
    %37 = arith.addf %31, %36 : vector<512x128xf32>
    %38 = vector.extract_strided_slice %0 {offsets = [0, 2, 0, 0], sizes = [2, 16, 16, 4], strides = [1, 1, 1, 1]} : vector<2x18x18x4xbf16> to vector<2x16x16x4xbf16>
    %39 = vector.shape_cast %38 : vector<2x16x16x4xbf16> to vector<512x4xbf16>
    %c6 = arith.constant 6 : index
    %c0_22 = arith.constant 0 : index
    %c0_23 = arith.constant 0 : index
    %40 = vector.load %arg2[%c6, %c0_22, %c0_23] : memref<9x4x128xbf16, #tpu.memory_space<vmem>>, vector<1x4x128xbf16>
    %41 = vector.shape_cast %40 : vector<1x4x128xbf16> to vector<4x128xbf16>
    %cst_24 = arith.constant dense<0.000000e+00> : vector<512x128xf32>
    %42 = tpu.matmul %39, %41, %cst_24 {dimension_numbers = #tpu.dot_dimension_numbers<[1], [0], [0], [1], [0, 0, 1, 1], [], []>} : vector<512x4xbf16>, vector<4x128xbf16>, vector<512x128xf32> -> vector<512x128xf32>
    %43 = arith.addf %37, %42 : vector<512x128xf32>
    %44 = vector.extract_strided_slice %0 {offsets = [0, 2, 1, 0], sizes = [2, 16, 16, 4], strides = [1, 1, 1, 1]} : vector<2x18x18x4xbf16> to vector<2x16x16x4xbf16>
    %45 = vector.shape_cast %44 : vector<2x16x16x4xbf16> to vector<512x4xbf16>
    %c7 = arith.constant 7 : index
    %c0_25 = arith.constant 0 : index
    %c0_26 = arith.constant 0 : index
    %46 = vector.load %arg2[%c7, %c0_25, %c0_26] : memref<9x4x128xbf16, #tpu.memory_space<vmem>>, vector<1x4x128xbf16>
    %47 = vector.shape_cast %46 : vector<1x4x128xbf16> to vector<4x128xbf16>
    %cst_27 = arith.constant dense<0.000000e+00> : vector<512x128xf32>
    %48 = tpu.matmul %45, %47, %cst_27 {dimension_numbers = #tpu.dot_dimension_numbers<[1], [0], [0], [1], [0, 0, 1, 1], [], []>} : vector<512x4xbf16>, vector<4x128xbf16>, vector<512x128xf32> -> vector<512x128xf32>
    %49 = arith.addf %43, %48 : vector<512x128xf32>
    %50 = vector.extract_strided_slice %0 {offsets = [0, 2, 2, 0], sizes = [2, 16, 16, 4], strides = [1, 1, 1, 1]} : vector<2x18x18x4xbf16> to vector<2x16x16x4xbf16>
    %51 = vector.shape_cast %50 : vector<2x16x16x4xbf16> to vector<512x4xbf16>
    %c8 = arith.constant 8 : index
    %c0_28 = arith.constant 0 : index
    %c0_29 = arith.constant 0 : index
    %52 = vector.load %arg2[%c8, %c0_28, %c0_29] : memref<9x4x128xbf16, #tpu.memory_space<vmem>>, vector<1x4x128xbf16>
    %53 = vector.shape_cast %52 : vector<1x4x128xbf16> to vector<4x128xbf16>
    %cst_30 = arith.constant dense<0.000000e+00> : vector<512x128xf32>
    %54 = tpu.matmul %51, %53, %cst_30 {dimension_numbers = #tpu.dot_dimension_numbers<[1], [0], [0], [1], [0, 0, 1, 1], [], []>} : vector<512x4xbf16>, vector<4x128xbf16>, vector<512x128xf32> -> vector<512x128xf32>
    %55 = arith.addf %49, %54 : vector<512x128xf32>
    %c0_31 = arith.constant 0 : index
    %c0_32 = arith.constant 0 : index
    %56 = vector.load %arg3[%c0_31, %c0_32] : memref<1x128xf32, #tpu.memory_space<vmem>>, vector<1x128xf32>
    %57 = vector.broadcast %56 : vector<1x128xf32> to vector<512x128xf32>
    %58 = arith.addf %55, %57 : vector<512x128xf32>
    %cst_33 = arith.constant 0.000000e+00 : f32
    %59 = vector.broadcast %cst_33 : f32 to vector<512x128xf32>
    %60 = arith.maximumf %58, %59 : vector<512x128xf32>
    %61 = vector.shape_cast %60 : vector<512x128xf32> to vector<2x256x128xf32>
    %cst_34 = arith.constant dense<0.000000e+00> : vector<2x128xf32>
    %62 = vector.multi_reduction <add>, %61, %cst_34 [1] : vector<2x256x128xf32> to vector<2x128xf32>
    %cst_35 = arith.constant 3.906250e-03 : f32
    %63 = vector.broadcast %cst_35 : f32 to vector<2x128xf32>
    %64 = arith.mulf %62, %63 : vector<2x128xf32>
    %c0_36 = arith.constant 0 : index
    %c0_37 = arith.constant 0 : index
    %65 = vector.load %arg4[%c0_36, %c0_37] : memref<2x128xf32, #tpu.memory_space<vmem>>, vector<2x128xf32>
    tpu.vector_store %arg4[%c0_36, %c0_37], %64 {strides = array<i32>} : memref<2x128xf32, #tpu.memory_space<vmem>>, vector<2x128xf32>,
    return
  }
  func.func @transform_0(%arg0: i32) -> (i32, i32, i32, i32) {
    %c0_i32 = arith.constant 0 : i32
    %c0_i32_0 = arith.constant 0 : i32
    %c0_i32_1 = arith.constant 0 : i32
    %c0_i32_2 = arith.constant 0 : i32
    return %arg0, %c0_i32, %c0_i32_0, %c0_i32_1 : i32, i32, i32, i32
  }
  func.func @transform_1(%arg0: i32) -> (i32, i32, i32) {
    %c0_i32 = arith.constant 0 : i32
    %c0_i32_0 = arith.constant 0 : i32
    %c0_i32_1 = arith.constant 0 : i32
    %c0_i32_2 = arith.constant 0 : i32
    return %c0_i32, %c0_i32_0, %c0_i32_1 : i32, i32, i32
  }
  func.func @transform_2(%arg0: i32) -> (i32, i32) {
    %c0_i32 = arith.constant 0 : i32
    %c0_i32_0 = arith.constant 0 : i32
    %c0_i32_1 = arith.constant 0 : i32
    return %c0_i32, %c0_i32_0 : i32, i32
  }
  func.func @transform_3(%arg0: i32) -> (i32, i32) {
    %c0_i32 = arith.constant 0 : i32
    %c0_i32_0 = arith.constant 0 : i32
    return %arg0, %c0_i32 : i32, i32
  }
}

</mosaic_0001>

<bundles_post_ra>
// kernel: simclr_apply.3
= control target key start
LH: loop header
LB: loop body
LE: loop exit
PB: predicated region body
PF: predicated region fallthrough
CT: control target
= control target key end

     0   :  { %v355_v1 = vmov 0.0   ;;  %vm356_vm0 = vmmov 0   ;;  %s530_s0 = inlined_call_operand.vmem [shape: f32[2,128], index: 0, kind: input, shape index: {}]   ;;  %s531_s1 = inlined_call_operand.vmem [shape: f32[128,128], index: 1, kind: input, shape index: {}]   ;;  %s532_s2 = inlined_call_operand.vmem [shape: f32[1,128], index: 2, kind: input, shape index: {}]   ;;  %s533_s3 = inlined_call_operand.vmem [shape: f32[128,128], index: 3, kind: input, shape index: {}]   ;;  %s534_s4 = inlined_call_operand.vmem [shape: f32[1,128], index: 4, kind: input, shape index: {}]   ;;  %s535_s5 = inlined_call_operand.hbm [shape: f32[2,128], index: 5, kind: output, shape index: {}]  }
   0x1   :  { %v37_v0 = vld [vmem:[%s531_s1 + $0x78] sm:$0xff]  ;;  %260 = vmatprep.subr.mxu0 %v355_v1  ;;  %v36_v2 = vld [vmem:[%s531_s1 + $0x70] sm:$0xff]  ;;  %292 = vmatprep.mubr.msk.f32.mxu0 %vm356_vm0, %v355_v1  ;;  %v35_v3 = vld [vmem:[%s531_s1 + $0x68] sm:$0xff] }
   0x2   :  { %261 = vmatpush3.msra.mxu0 %v37_v0  ;;  %295 = vmatprep.subr.mxu1 %v355_v1  ;;  %v34_v4 = vld [vmem:[%s531_s1 + $0x60] sm:$0xff]  ;;  %v131_v5 = vld [vmem:[%s533_s3 + $0x78] sm:$0xff]  ;;  %v130_v6 = vld [vmem:[%s533_s3 + $0x70] sm:$0xff] }
   0x3   :  { %262 = vmatprep.subr.mxu0 %v355_v1  ;;  %327 = vmatprep.mubr.msk.f32.mxu1 %vm356_vm0, %v355_v1  ;;  %v33_v7 = vld [vmem:[%s531_s1 + $0x58] sm:$0xff]  ;;  %v129_v8 = vld [vmem:[%s533_s3 + $0x68] sm:$0xff]  ;;  %v32_v9 = vld [vmem:[%s531_s1 + $0x50] sm:$0xff] }
   0x4   :  { %263 = vmatpush3.msra.mxu0 %v36_v2  ;;  %296 = vmatpush3.msra.mxu1 %v131_v5  ;;  %v128_v10 = vld [vmem:[%s533_s3 + $0x60] sm:$0xff] }
   0x5   :  { %264 = vmatprep.subr.mxu0 %v355_v1  ;;  %297 = vmatprep.subr.mxu1 %v355_v1 }
   0x6   :  { %265 = vmatpush3.msra.mxu0 %v35_v3  ;;  %298 = vmatpush3.msra.mxu1 %v130_v6 }
   0x7   :  { %266 = vmatprep.subr.mxu0 %v355_v1  ;;  %299 = vmatprep.subr.mxu1 %v355_v1 }
   0x8   :  { %267 = vmatpush3.msra.mxu0 %v34_v4  ;;  %300 = vmatpush3.msra.mxu1 %v129_v8 }
   0x9   :  { %268 = vmatprep.subr.mxu0 %v355_v1 }
   0xa   :  { %269 = vmatpush3.msra.mxu0 %v33_v7 }
   0xb   :  { %10 = vsyncpa [#allocation3], 0  ;;  %270 = vmatprep.subr.mxu0 %v355_v1  ;;  %v31_v11 = vld [vmem:[%s531_s1 + $0x48] sm:$0xff]  ;;  %301 = vmatprep.subr.mxu1 %v355_v1  ;;  %v127_v12 = vld [vmem:[%s533_s3 + $0x58] sm:$0xff]  ;;  %s357_s11 = smov [#allocation2]  }
   0xc   :  { %271 = vmatpush3.msra.mxu0 %v32_v9  ;;  %302 = vmatpush3.msra.mxu1 %v128_v10  ;;  %v30_v13 = vld [vmem:[%s531_s1 + $0x40] sm:$0xff]  ;;  %v126_v14 = vld [vmem:[%s533_s3 + $0x50] sm:$0xff]  ;;  %v29_v15 = vld [vmem:[%s531_s1 + $0x38] sm:$0xff]  ;;  %s216_s12 = sshll.u32 %s357_s11, 4  ;;  %s217_s12 = int_to_ptr.vmem [resolvable:$true] %s216_s12 }
   0xd   :  { %272 = vmatprep.subr.mxu0 %v355_v1  ;;  %303 = vmatprep.subr.mxu1 %v355_v1  ;;  %v125_v16 = vld [vmem:[%s533_s3 + $0x48] sm:$0xff]  ;;  %v28_v17 = vld [vmem:[%s531_s1 + $0x30] sm:$0xff]  ;;  %v124_v18 = vld [vmem:[%s533_s3 + $0x40] sm:$0xff]  ;;  %p338_p1 = scmp.lt.s32.totalorder %s217_s12, %s217_s12 }
   0xe   :  { %273 = vmatpush3.msra.mxu0 %v31_v11  ;;  %304 = vmatpush3.msra.mxu1 %v127_v12  ;;  %v27_v19 = vld [vmem:[%s531_s1 + $0x28] sm:$0xff]  ;;  %v123_v20 = vld [vmem:[%s533_s3 + $0x38] sm:$0xff]  ;;  %v26_v21 = vld [vmem:[%s531_s1 + $0x20] sm:$0xff] }
   0xf   :  { %274 = vmatprep.subr.mxu0 %v355_v1  ;;  %305 = vmatprep.subr.mxu1 %v355_v1  ;;  %v122_v22 = vld [vmem:[%s533_s3 + $0x30] sm:$0xff]  ;;  %v25_v23 = vld [vmem:[%s531_s1 + $0x18] sm:$0xff]  ;;  %v121_v24 = vld [vmem:[%s533_s3 + $0x28] sm:$0xff] }
  0x10   :  { %275 = vmatpush3.msra.mxu0 %v30_v13  ;;  %306 = vmatpush3.msra.mxu1 %v126_v14  ;;  %v24_v25 = vld [vmem:[%s531_s1 + $0x10] sm:$0xff]  ;;  %v120_v26 = vld [vmem:[%s533_s3 + $0x20] sm:$0xff]  ;;  %v23_v27 = vld [vmem:[%s531_s1 + $0x8] sm:$0xff] }
  0x11   :  { %276 = vmatprep.subr.mxu0 %v355_v1  ;;  %307 = vmatprep.subr.mxu1 %v355_v1  ;;  %v119_v28 = vld [vmem:[%s533_s3 + $0x18] sm:$0xff]  ;;  %v22_v29 = vld [vmem:[%s531_s1] sm:$0xff]  ;;  %v118_v31 = vld [vmem:[%s533_s3 + $0x10] sm:$0xff] }
  0x12   :  { %277 = vmatpush3.msra.mxu0 %v29_v15  ;;  %308 = vmatpush3.msra.mxu1 %v125_v16  ;;  %v21_v30 = vld [vmem:[%s530_s0] sm:$0x3]  ;;  %v117_v32 = vld [vmem:[%s533_s3 + $0x8] sm:$0xff] }
  0x13   :  { %278 = vmatprep.subr.mxu0 %v355_v1  ;;  %309 = vmatprep.subr.mxu1 %v355_v1  ;;  %v116_v33 = vld [vmem:[%s533_s3] sm:$0xff]  ;;  %s333_s3 = scalar_lea.vmem %s217_s12, 32 }
  0x14   :  { %279 = vmatpush3.msra.mxu0 %v28_v17  ;;  %310 = vmatpush3.msra.mxu1 %v124_v18  ;;  %v224_v34 = vld [vmem:[%s532_s2] ss:$0 sm:$0xff]  ;;  %p334_p0 = scmp.ne.s32.totalorder %s217_s12, %s333_s3  ;;  %p339_p2 = scmp.lt.s32.totalorder %s333_s3, %s333_s3 }
  0x15   :  { %280 = vmatprep.subr.mxu0 %v355_v1  ;;  %311 = vmatprep.subr.mxu1 %v355_v1  ;;  %v225_v39 = vld [vmem:[%s534_s4] ss:$0 sm:$0xff] }
  0x16   :  { %281 = vmatpush3.msra.mxu0 %v27_v19  ;;  %312 = vmatpush3.msra.mxu1 %v123_v20  ;;  %p340_p3 = por %p339_p2, %p338_p1 }
  0x17   :  { %282 = vmatprep.subr.mxu0 %v355_v1  ;;  %313 = vmatprep.subr.mxu1 %v355_v1 }
  0x18   :  { %283 = vmatpush3.msra.mxu0 %v26_v21  ;;  %314 = vmatpush3.msra.mxu1 %v122_v22  ;;  %p341_p4 = pnand %p340_p3, %p334_p0 }
  0x19   :  { %284 = vmatprep.subr.mxu0 %v355_v1  ;;  %315 = vmatprep.subr.mxu1 %v355_v1 }
  0x1a   :  { %285 = vmatpush3.msra.mxu0 %v25_v23  ;;  %316 = vmatpush3.msra.mxu1 %v121_v24 }
  0x1b   :  { %286 = vmatprep.subr.mxu0 %v355_v1  ;;  %317 = vmatprep.subr.mxu1 %v355_v1 }
  0x1c   :  { %287 = vmatpush3.msra.mxu0 %v24_v25  ;;  %318 = vmatpush3.msra.mxu1 %v120_v26 }
  0x1d   :  { %288 = vmatprep.subr.mxu0 %v355_v1  ;;  %319 = vmatprep.subr.mxu1 %v355_v1 }
  0x1e   :  { %289 = vmatpush3.msra.mxu0 %v23_v27  ;;  %320 = vmatpush3.msra.mxu1 %v119_v28 }
  0x1f   :  { %290 = vmatprep.subr.mxu0 %v355_v1  ;;  %321 = vmatprep.subr.mxu1 %v355_v1 }
  0x20   :  { %291 = vmatpush3.msra.mxu0 %v22_v29  ;;  %322 = vmatpush3.msra.mxu1 %v118_v31 }
  0x21   :  { %293 = vmatmul.mubr.f32.vlgmr.msra.gmra.mxu0 %v21_v30  ;;  %323 = vmatprep.subr.mxu1 %v355_v1 }
  0x22   :  { %324 = vmatpush3.msra.mxu1 %v117_v32 }
  0x23   :  { %325 = vmatprep.subr.mxu1 %v355_v1 }
  0x24   :  { %326 = vmatpush3.msra.mxu1 %v116_v33 }
  0xe1   :  { %v111_v35 = vpop.f32.mrf.mxu0 }
  0xe2   :  { %v112_v36 = vadd.f32 %v224_v34, %v111_v35 }
  0xe3   :  { %v294_v37 = vpop.f32.mrf.mxu0 }
  0xe4   :  { %v115_v38 = vmax.f32 %v112_v36, 0.0 }
  0xe6   :  { %328 = vmatmul.mubr.f32.vlgmr.msra.gmra.mxu1 %v115_v38 }
 0x1a6   :  { %v205_v40 = vpop.f32.mrf.mxu1 }
 0x1a7   :  { %v206_v41 = vadd.f32 %v225_v39, %v205_v40 }
 0x1a8   :  { %v329_v42 = vpop.f32.mrf.mxu1 }
 0x1a9   :  { %209 = vst [vmem:[#allocation2] sm:$0x3] %v206_v41 }
 0x1aa   :  { %344 = shalt.err (!%p341_p4)
}
 0x1ab   :  { %219 = dma.vmem_to_hbm [thread:$0]  %s217_s12, 32, %s535_s5, [#allocation3]  }
 0x1ac   :  { %353 = dma.done.wait [#allocation3], 32  }
 0x1ad   :  { %354 = vsyncadd [#allocation3], 4294967264 }
 0x1ae   :  { %223 = vsyncpa [#allocation3], 1 }

// kernel: simclr_apply.2
= control target key start
LH: loop header
LB: loop body
LE: loop exit
PB: predicated region body
PF: predicated region fallthrough
CT: control target
= control target key end

     0   :  { %vm1090_vm0 = vcmask 1041408   ;;  %vm124_vm1 = vsmask.f32 3328  ;;  %vm125_vm2 = vsmask.f32 7440  ;;  %vm993_vm3 = vcmask 31744   ;;  %s9534_s1 = inlined_call_operand.vmem [shape: bf16[9,4,128], index: 1, kind: input, shape index: {}]   ;;  %s9535_s0 = inlined_call_operand.vmem [shape: bf16[2,18,18,4], index: 0, kind: input, shape index: {}]   ;;  %s9536_s2 = inlined_call_operand.vmem [shape: f32[1,128], index: 2, kind: input, shape index: {}]   ;;  %s9537_s3 = inlined_call_operand.vmem [shape: f32[2,128], index: 3, kind: output, shape index: {}]  }
   0x1   :  { %v5317_v0 = vld [vmem:[%s9534_s1 + $0x2] sm:$0x3]  ;;  %v16_v2 = vld [vmem:[%s9535_s0 + $0x4] sm:$0xf]  ;;  %v6787_v4 = vld [vmem:[%s9535_s0 + $0x8] sm:$0x1] }
   0x2   :  { %v15_v1 = vld [vmem:[%s9535_s0] sm:$0xf]  ;;  %6652 = vmatprep.subr.msk.bf16.mxu1 %vm1090_vm0, %v5317_v0  ;;  %6651 = vmatprep.subr.msk.bf16.mxu0 %vm1090_vm0, %v5317_v0  ;;  %v1092_v3 = vsel %vm1090_vm0, %v5317_v0, 0  ;;  %v137_v7 = vshll.u32 %v16_v2, 16  ;;  %v141_v8 = vshrl.u32 %v16_v2, 16  ;;  %v147_v9 = vshll.u32 %v6787_v4, 16  ;;  %vm6804_vm4 = vmor %vm124_vm1, %vm125_vm2 }
   0x3   :  { %v128_v5 = vshrl.u32 %v15_v1, 16  ;;  %v131_v6 = vshll.u32 %v15_v1, 16  ;;  %6650 = vmatpush3.bf16.msra.mxu1 %v1092_v3  ;;  %6056 = vmatpush3.bf16.msra.mxu0 %v1092_v3  ;;  %v69_v10 = vld [vmem:[%s9535_s0 + $0xd8] sm:$0xf]  ;;  %v70_v14 = vld [vmem:[%s9535_s0 + $0xdc] sm:$0xf] }
   0x4   :  { %v139_v13 = vrot.slane %v137_v7, 5  ;;  %v512_v15 = vshrl.u32 %v69_v10, 16  ;;  %v143_v16 = vrot.slane %v141_v8, 4  ;;  %v71_v17 = vld [vmem:[%s9535_s0 + $0xe0] sm:$0x1]  ;;  %v515_v18 = vshll.u32 %v69_v10, 16 }
   0x5   :  { %v130_v11 = vrot.slane %v128_v5, 4  ;;  %v133_v12 = vrot.slane %v131_v6, 5  ;;  %v521_v19 = vshll.u32 %v70_v14, 16  ;;  %v525_v22 = vshrl.u32 %v70_v14, 16  ;;  %v123_v24 = vld [vmem:[%s9534_s1] sm:$0x3] }
   0x6   :  { %v514_v21 = vrot.slane %v512_v15, 4  ;;  %v531_v23 = vshll.u32 %v71_v17, 16  ;;  %v9699_v25 = vmov 0  ;;  %v144_v26 = vor.u32 %v143_v16, %v139_v13  ;;  %6653 = vmatprep.subr.msk.bf16.mxu1 %vm1090_vm0, %v123_v24  ;;  %v18_v30 = vld [vmem:[%s9535_s0 + $0xc] sm:$0xf] }
   0x7   :  { %v134_v20 = vor.u32 %v133_v12, %v130_v11  ;;  %v9700_v25 = vsel %vm6804_vm4, 4294967295, %v9699_v25  ;;  %v149_v27 = vrot.slane %v147_v9, 5  ;;  %v517_v28 = vrot.slane %v515_v18, 5  ;;  %v19_v34 = vld [vmem:[%s9535_s0 + $0x10] sm:$0xf] }
   0x8   :  { %9701 = vst [vmem:[#allocation2_spill] sm:$0xff] %v9700_v25  ;;  %v523_v29 = vrot.slane %v521_v19, 5  ;;  %v527_v32 = vrot.slane %v525_v22, 4  ;;  %v533_v33 = vrot.slane %v531_v23, 5  ;;  %v152_v35 = vshrl.u32 %v18_v30, 16 }
   0x9   :  { %v135_v31 = vrot.slane %v134_v20, 4  ;;  %v145_v36 = vrot.slane %v144_v26, 4  ;;  %v518_v37 = vor.u32 %v517_v28, %v514_v21  ;;  %v20_v38 = vld [vmem:[%s9535_s0 + $0x14] sm:$0x1]  ;;  %v155_v39 = vshll.u32 %v18_v30, 16 }
   0xa   :  { %v161_v40 = vshll.u32 %v19_v34, 16  ;;  %v528_v42 = vor.u32 %v527_v32, %v523_v29  ;;  %v154_v43 = vrot.slane %v152_v35, 4  ;;  %v165_v44 = vshrl.u32 %v19_v34, 16  ;;  %v72_v45 = vld [vmem:[%s9535_s0 + $0xe4] sm:$0xf] }
   0xb   :  { %v140_v41 = vsel %vm6804_vm4, %v135_v31, %v139_v13  ;;  %v150_v46 = vsel %vm6804_vm4, %v145_v36, %v149_v27  ;;  %v519_v47 = vrot.slane %v518_v37, 4  ;;  %v157_v48 = vrot.slane %v155_v39, 5  ;;  %v73_v50 = vld [vmem:[%s9535_s0 + $0xe8] sm:$0xf]  ;;  %v5478_v55 = vld [vmem:[%s9534_s1 + $0x4] sm:$0x3] }
   0xc   :  { %v163_v49 = vrot.slane %v161_v40, 5  ;;  %v5318_v51 = vcombine.low %v140_v41, %v150_v46  ;;  %v529_v52 = vrot.slane %v528_v42, 4  ;;  %v167_v53 = vrot.slane %v165_v44, 4  ;;  %v74_v59 = vld [vmem:[%s9535_s0 + $0xec] sm:$0x1]  ;;  %6654 = vmatprep.subr.msk.bf16.mxu0 %vm1090_vm0, %v5478_v55 }
   0xd   :  { %v171_v54 = vshll.u32 %v20_v38, 16  ;;  %v524_v57 = vsel %vm6804_vm4, %v519_v47, %v523_v29  ;;  %v158_v58 = vor.u32 %v157_v48, %v154_v43  ;;  %v536_v63 = vshrl.u32 %v72_v45, 16  ;;  %v21_v5 = vld [vmem:[%s9535_s0 + $0x18] sm:$0xf]  ;;  %v22_v10 = vld [vmem:[%s9535_s0 + $0x1c] sm:$0xf] }
   0xe   :  { %6057 = vmatprep.mubr.msk.bf16.mxu0 %vm993_vm3, %v5318_v51  ;;  %v534_v60 = vsel %vm6804_vm4, %v529_v52, %v533_v33  ;;  %v168_v61 = vor.u32 %v167_v53, %v163_v49  ;;  %v539_v2 = vshll.u32 %v72_v45, 16  ;;  %v545_v3 = vshll.u32 %v73_v50, 16  ;;  %v23_v15 = vld [vmem:[%s9535_s0 + $0x20] sm:$0x1]  ;;  %v75_v20 = vld [vmem:[%s9535_s0 + $0xf0] sm:$0xf] }
   0xf   :  { %v173_v62 = vrot.slane %v171_v54, 5  ;;  %v5334_v0 = vcombine.low %v524_v57, %v534_v60  ;;  %v159_v1 = vrot.slane %v158_v58, 4  ;;  %v538_v7 = vrot.slane %v536_v63, 4  ;;  %v76_v33 = vld [vmem:[%s9535_s0 + $0xf4] sm:$0xf] }
  0x10   :  { %v169_v6 = vrot.slane %v168_v61, 4  ;;  %v549_v8 = vshrl.u32 %v73_v50, 16  ;;  %v555_v9 = vshll.u32 %v74_v59, 16  ;;  %v541_v12 = vrot.slane %v539_v2, 5  ;;  %v77_v39 = vld [vmem:[%s9535_s0 + $0xf8] sm:$0x1] }
  0x11   :  { %6089 = vmatprep.mubr.msk.bf16.mxu1 %vm993_vm3, %v5334_v0  ;;  %v164_v11 = vsel %vm6804_vm4, %v159_v1, %v163_v49  ;;  %v547_v13 = vrot.slane %v545_v3, 5  ;;  %v1640_v14 = vsel %vm1090_vm0, %v123_v24, 0  ;;  %v2385_v19 = vsel %vm1090_vm0, %v5478_v55, 0  ;;  %v24_v44 = vld [vmem:[%s9535_s0 + $0x24] sm:$0xf] }
  0x12   :  { %v174_v16 = vsel %vm6804_vm4, %v169_v6, %v173_v62  ;;  %v551_v17 = vrot.slane %v549_v8, 4  ;;  %v557_v18 = vrot.slane %v555_v9, 5  ;;  %v542_v22 = vor.u32 %v541_v12, %v538_v7  ;;  %v25_v53 = vld [vmem:[%s9535_s0 + $0x28] sm:$0xf]  ;;  %v26_v62 = vld [vmem:[%s9535_s0 + $0x2c] sm:$0x1] }
  0x13   :  { %v6860_v21 = vcombine.low %v164_v11, %v174_v16  ;;  %v176_v23 = vshrl.u32 %v21_v5, 16  ;;  %v179_v24 = vshll.u32 %v21_v5, 16  ;;  %v185_v27 = vshll.u32 %v22_v10, 16  ;;  %v78_v0 = vld [vmem:[%s9535_s0 + $0xfc] sm:$0xf] }
  0x14   :  { %v552_v26 = vor.u32 %v551_v17, %v547_v13  ;;  %v189_v28 = vshrl.u32 %v22_v10, 16  ;;  %v195_v29 = vshll.u32 %v23_v15, 16  ;;  %v543_v30 = vrot.slane %v542_v22, 4  ;;  %v79_v10 = vld [vmem:[%s9535_s0 + $0x100] sm:$0xf] }
  0x15   :  { %9702 = vst [vmem:[#allocation3_spill] sm:$0xff] %v6860_v21  ;;  %6058 = vmatmul.mubr.msk.bf16.vlgmr.msra.gmra.mxu0 %vm993_vm3, %v6860_v21  ;;  %v178_v31 = vrot.slane %v176_v23, 4  ;;  %v181_v32 = vrot.slane %v179_v24, 5  ;;  %v560_v34 = vshrl.u32 %v75_v20, 16  ;;  %v187_v36 = vrot.slane %v185_v27, 5 }
  0x16   :  { %v553_v35 = vrot.slane %v552_v26, 4  ;;  %6188 = vmatpush3.bf16.msra.mxu0 %v2385_v19  ;;  %v191_v37 = vrot.slane %v189_v28, 4  ;;  %v197_v38 = vrot.slane %v195_v29, 5  ;;  %v548_v40 = vsel %vm6804_vm4, %v543_v30, %v547_v13 }
  0x17   :  { %v182_v41 = vor.u32 %v181_v32, %v178_v31  ;;  %v562_v42 = vrot.slane %v560_v34, 4  ;;  %v563_v43 = vshll.u32 %v75_v20, 16  ;;  %v569_v47 = vshll.u32 %v76_v33, 16  ;;  %v27_v20 = vld [vmem:[%s9535_s0 + $0x30] sm:$0xf] }
  0x18   :  { %v558_v45 = vsel %vm6804_vm4, %v553_v35, %v557_v18  ;;  %v192_v46 = vor.u32 %v191_v37, %v187_v36  ;;  %v573_v48 = vshrl.u32 %v76_v33, 16  ;;  %v579_v52 = vshll.u32 %v77_v39, 16  ;;  %v80_v18 = vld [vmem:[%s9535_s0 + $0x104] sm:$0x1]  ;;  %v28_v31 = vld [vmem:[%s9535_s0 + $0x34] sm:$0xf] }
  0x19   :  { %v6877_v49 = vcombine.low %v548_v40, %v558_v45  ;;  %v183_v50 = vrot.slane %v182_v41, 4  ;;  %v565_v51 = vrot.slane %v563_v43, 5  ;;  %v571_v55 = vrot.slane %v569_v47, 5  ;;  %v29_v39 = vld [vmem:[%s9535_s0 + $0x38] sm:$0x1] }
  0x1a   :  { %v193_v54 = vrot.slane %v192_v46, 4  ;;  %v575_v57 = vrot.slane %v573_v48, 4  ;;  %v200_v58 = vshrl.u32 %v24_v44, 16  ;;  %v581_v61 = vrot.slane %v579_v52, 5  ;;  %v81_v45 = vld [vmem:[%s9535_s0 + $0x108] sm:$0xf] }
  0x1b   :  { %9703 = vst [vmem:[#allocation4_spill] sm:$0xff] %v6877_v49  ;;  %6090 = vmatmul.mubr.msk.bf16.vlgmr.msra.gmra.mxu1 %vm993_vm3, %v6877_v49  ;;  %v188_v59 = vsel %vm6804_vm4, %v183_v50, %v187_v36  ;;  %v566_v60 = vor.u32 %v565_v51, %v562_v42  ;;  %v203_v63 = vshll.u32 %v24_v44, 16  ;;  %v209_v5 = vshll.u32 %v25_v53, 16  ;;  %v82_v51 = vld [vmem:[%s9535_s0 + $0x10c] sm:$0xf] }
  0x1c   :  { %6122 = vmatpush3.bf16.msra.mxu1 %v1640_v14  ;;  %v198_v1 = vsel %vm6804_vm4, %v193_v54, %v197_v38  ;;  %v576_v2 = vor.u32 %v575_v57, %v571_v55  ;;  %v202_v3 = vrot.slane %v200_v58, 4  ;;  %v213_v9 = vshrl.u32 %v25_v53, 16 }
  0x1d   :  { %v6894_v6 = vcombine.low %v188_v59, %v198_v1  ;;  %v567_v7 = vrot.slane %v566_v60, 4  ;;  %v205_v8 = vrot.slane %v203_v63, 5  ;;  %v211_v12 = vrot.slane %v209_v5, 5  ;;  %v83_v60 = vld [vmem:[%s9535_s0 + $0x110] sm:$0x1] }
  0x1e   :  { %v577_v11 = vrot.slane %v576_v2, 4  ;;  %v219_v13 = vshll.u32 %v26_v62, 16  ;;  %v584_v15 = vshrl.u32 %v78_v0, 16  ;;  %v215_v17 = vrot.slane %v213_v9, 4 }
  0x1f   :  { %9704 = vst [vmem:[#allocation5_spill] sm:$0xff] %v6894_v6  ;;  %6061 = vmatprep.mubr.msk.bf16.mxu0 %vm993_vm3, %v6894_v6  ;;  %v572_v14 = vsel %vm6804_vm4, %v567_v7, %v571_v55  ;;  %v206_v16 = vor.u32 %v205_v8, %v202_v3  ;;  %v587_v19 = vshll.u32 %v78_v0, 16  ;;  %v593_v26 = vshll.u32 %v79_v10, 16  ;;  %v30_v8 = vld [vmem:[%s9535_s0 + $0x3c] sm:$0xf] }
  0x20   :  { %v582_v22 = vsel %vm6804_vm4, %v577_v11, %v581_v61  ;;  %v221_v23 = vrot.slane %v219_v13, 5  ;;  %v586_v24 = vrot.slane %v584_v15, 4  ;;  %v216_v29 = vor.u32 %v215_v17, %v211_v12  ;;  %v31_v13 = vld [vmem:[%s9535_s0 + $0x40] sm:$0xf] }
  0x21   :  { %v6911_v27 = vcombine.low %v572_v14, %v582_v22  ;;  %v207_v28 = vrot.slane %v206_v16, 4  ;;  %v589_v30 = vrot.slane %v587_v19, 5  ;;  %v595_v32 = vrot.slane %v593_v26, 5 }
  0x22   :  { %v597_v33 = vshrl.u32 %v79_v10, 16  ;;  %v603_v34 = vshll.u32 %v80_v18, 16  ;;  %v224_v35 = vshrl.u32 %v27_v20, 16  ;;  %v217_v37 = vrot.slane %v216_v29, 4 }
  0x23   :  { %9705 = vst [vmem:[#allocation6_spill] sm:$0xff] %v6911_v27  ;;  %6093 = vmatprep.mubr.msk.bf16.mxu1 %vm993_vm3, %v6911_v27  ;;  %v212_v36 = vsel %vm6804_vm4, %v207_v28, %v211_v12  ;;  %v590_v38 = vor.u32 %v589_v30, %v586_v24  ;;  %v227_v40 = vshll.u32 %v27_v20, 16  ;;  %v233_v44 = vshll.u32 %v28_v31, 16  ;;  %v32_v20 = vld [vmem:[%s9535_s0 + $0x44] sm:$0x1] }
  0x24   :  { %v599_v41 = vrot.slane %v597_v33, 4  ;;  %v605_v42 = vrot.slane %v603_v34, 5  ;;  %v226_v43 = vrot.slane %v224_v35, 4  ;;  %v222_v46 = vsel %vm6804_vm4, %v217_v37, %v221_v23  ;;  %v84_v30 = vld [vmem:[%s9535_s0 + $0x114] sm:$0xf] }
  0x25   :  { %v591_v47 = vrot.slane %v590_v38, 4  ;;  %v229_v48 = vrot.slane %v227_v40, 5  ;;  %v237_v50 = vshrl.u32 %v28_v31, 16  ;;  %v6931_v52 = vcombine.low %v212_v36, %v222_v46  ;;  %v85_v35 = vld [vmem:[%s9535_s0 + $0x118] sm:$0xf] }
  0x26   :  { %v600_v53 = vor.u32 %v599_v41, %v595_v32  ;;  %v235_v54 = vrot.slane %v233_v44, 5  ;;  %v243_v55 = vshll.u32 %v29_v39, 16  ;;  %v608_v61 = vshrl.u32 %v81_v45, 16 }
  0x27   :  { %9706 = vst [vmem:[#allocation7_spill] sm:$0xff] %v6931_v52  ;;  %v596_v57 = vsel %vm6804_vm4, %v591_v47, %v595_v32  ;;  %v230_v58 = vor.u32 %v229_v48, %v226_v43  ;;  %v239_v59 = vrot.slane %v237_v50, 4  ;;  %6062 = vmatmul.mubr.msk.bf16.gmra.mxu0 %vm993_vm3, %v6931_v52  ;;  %v611_v0 = vshll.u32 %v81_v45, 16  ;;  %v6979_v50 = vld [vmem:[%s9535_s0 + $0x48] sm:$0xf] }
  0x28   :  { %v601_v62 = vrot.slane %v600_v53, 4  ;;  %v245_v63 = vrot.slane %v243_v55, 5  ;;  %v617_v1 = vshll.u32 %v82_v51, 16  ;;  %v610_v5 = vrot.slane %v608_v61, 4 }
  0x29   :  { %v231_v2 = vrot.slane %v230_v58, 4  ;;  %v240_v3 = vor.u32 %v239_v59, %v235_v54  ;;  %v621_v7 = vshrl.u32 %v82_v51, 16  ;;  %v613_v10 = vrot.slane %v611_v0, 5  ;;  %v6995_v0 = vld [vmem:[%s9535_s0 + $0x50] sm:$0x1] }
  0x2a   :  { %v606_v9 = vsel %vm6804_vm4, %v601_v62, %v605_v42  ;;  %v619_v11 = vrot.slane %v617_v1, 5  ;;  %v627_v12 = vshll.u32 %v83_v60, 16  ;;  %v248_v22 = vshrl.u32 %v30_v8, 16  ;;  %v86_v42 = vld [vmem:[%s9535_s0 + $0x11c] sm:$0x1] }
  0x2b   :  { %v6948_v15 = vcombine.low %v596_v57, %v606_v9  ;;  %v236_v14 = vsel %vm6804_vm4, %v231_v2, %v235_v54  ;;  %v241_v16 = vrot.slane %v240_v3, 4  ;;  %v623_v17 = vrot.slane %v621_v7, 4  ;;  %v6986_v57 = vld [vmem:[%s9535_s0 + $0x4c] sm:$0xf]  ;;  %v87_v9 = vld [vmem:[%s9535_s0 + $0x120] sm:$0xf] }
  0x2c   :  { %v614_v18 = vor.u32 %v613_v10, %v610_v5  ;;  %v629_v19 = vrot.slane %v627_v12, 5  ;;  %v251_v23 = vshll.u32 %v30_v8, 16  ;;  %v257_v28 = vshll.u32 %v31_v13, 16 }
  0x2d   :  { %9707 = vst [vmem:[#allocation8_spill] sm:$0xff] %v6948_v15  ;;  %6094 = vmatmul.mubr.msk.bf16.gmra.mxu1 %vm993_vm3, %v6948_v15  ;;  %v246_v24 = vsel %vm6804_vm4, %v241_v16, %v245_v63  ;;  %v624_v26 = vor.u32 %v623_v17, %v619_v11  ;;  %v261_v29 = vshrl.u32 %v31_v13, 16  ;;  %v250_v33 = vrot.slane %v248_v22, 4 }
  0x2e   :  { %v6962_v31 = vcombine.low %v236_v14, %v246_v24  ;;  %v615_v32 = vrot.slane %v614_v18, 4  ;;  %v253_v34 = vrot.slane %v251_v23, 5  ;;  %v259_v37 = vrot.slane %v257_v28, 5  ;;  %v88_v14 = vld [vmem:[%s9535_s0 + $0x124] sm:$0xf] }
  0x2f   :  { %v625_v36 = vrot.slane %v624_v26, 4  ;;  %v263_v38 = vrot.slane %v261_v29, 4  ;;  %v267_v39 = vshll.u32 %v32_v20, 16  ;;  %v632_v43 = vshrl.u32 %v84_v30, 16  ;;  %v89_v23 = vld [vmem:[%s9535_s0 + $0x128] sm:$0x1] }
  0x30   :  { %9708 = vst [vmem:[#allocation9_spill] sm:$0xff] %v6962_v31  ;;  %6065 = vmatprep.mubr.msk.bf16.mxu0 %vm993_vm3, %v6962_v31  ;;  %v620_v40 = vsel %vm6804_vm4, %v615_v32, %v619_v11  ;;  %v254_v41 = vor.u32 %v253_v34, %v250_v33  ;;  %v635_v44 = vshll.u32 %v84_v30, 16  ;;  %v641_v48 = vshll.u32 %v85_v35, 16 }
  0x31   :  { %v630_v45 = vsel %vm6804_vm4, %v625_v36, %v629_v19  ;;  %v264_v46 = vor.u32 %v263_v38, %v259_v37  ;;  %v269_v47 = vrot.slane %v267_v39, 5  ;;  %v634_v54 = vrot.slane %v632_v43, 4 }
  0x32   :  { %v6981_v51 = vcombine.low %v620_v40, %v630_v45  ;;  %v255_v53 = vrot.slane %v254_v41, 4  ;;  %v637_v55 = vrot.slane %v635_v44, 5  ;;  %v643_v59 = vrot.slane %v641_v48, 5 }
  0x33   :  { %v265_v58 = vrot.slane %v264_v46, 4  ;;  %v645_v60 = vshrl.u32 %v85_v35, 16  ;;  %v651_v61 = vshll.u32 %v86_v42, 16  ;;  %v272_v1 = vshrl.u32 %v6979_v50, 16  ;;  %v7029_v42 = vld [vmem:[%s9535_s0 + $0x58] sm:$0xf] }
  0x34   :  { %9709 = vst [vmem:[#allocation10_spill] sm:$0xff] %v6981_v51  ;;  %6097 = vmatprep.mubr.msk.bf16.mxu1 %vm993_vm3, %v6981_v51  ;;  %v260_v62 = vsel %vm6804_vm4, %v255_v53, %v259_v37  ;;  %v638_v63 = vor.u32 %v637_v55, %v634_v54  ;;  %v275_v2 = vshll.u32 %v6979_v50, 16  ;;  %v281_v8 = vshll.u32 %v6986_v57, 16  ;;  %v7022_v37 = vld [vmem:[%s9535_s0 + $0x54] sm:$0xf] }
  0x35   :  { %v270_v3 = vsel %vm6804_vm4, %v265_v58, %v269_v47  ;;  %v647_v5 = vrot.slane %v645_v60, 4  ;;  %v653_v7 = vrot.slane %v651_v61, 5  ;;  %v274_v12 = vrot.slane %v272_v1, 4  ;;  %v7038_v47 = vld [vmem:[%s9535_s0 + $0x5c] sm:$0x1] }
  0x36   :  { %v7005_v10 = vcombine.low %v260_v62, %v270_v3  ;;  %v639_v11 = vrot.slane %v638_v63, 4  ;;  %v277_v13 = vrot.slane %v275_v2, 5  ;;  %v283_v17 = vrot.slane %v281_v8, 5  ;;  %v90_v62 = vld [vmem:[%s9535_s0 + $0x12c] sm:$0xf] }
  0x37   :  { %v648_v16 = vor.u32 %v647_v5, %v643_v59  ;;  %v285_v18 = vshrl.u32 %v6986_v57, 16  ;;  %v291_v19 = vshll.u32 %v6995_v0, 16  ;;  %v656_v24 = vshrl.u32 %v87_v9, 16  ;;  %v91_v5 = vld [vmem:[%s9535_s0 + $0x130] sm:$0xf] }
  0x38   :  { %9710 = vst [vmem:[#allocation11_spill] sm:$0xff] %v7005_v10  ;;  %6066 = vmatmul.mubr.msk.bf16.gmra.mxu0 %vm993_vm3, %v7005_v10  ;;  %v644_v20 = vsel %vm6804_vm4, %v639_v11, %v643_v59  ;;  %v278_v22 = vor.u32 %v277_v13, %v274_v12  ;;  %v659_v26 = vshll.u32 %v87_v9, 16  ;;  %v665_v32 = vshll.u32 %v88_v14, 16 }
  0x39   :  { %v649_v28 = vrot.slane %v648_v16, 4  ;;  %v287_v29 = vrot.slane %v285_v18, 4  ;;  %v293_v30 = vrot.slane %v291_v19, 5  ;;  %v658_v34 = vrot.slane %v656_v24, 4  ;;  %v92_v16 = vld [vmem:[%s9535_s0 + $0x134] sm:$0x1] }
  0x3a   :  { %v279_v33 = vrot.slane %v278_v22, 4  ;;  %v661_v35 = vrot.slane %v659_v26, 5  ;;  %v669_v36 = vshrl.u32 %v88_v14, 16  ;;  %v667_v40 = vrot.slane %v665_v32, 5 }
  0x3b   :  { %v654_v38 = vsel %vm6804_vm4, %v649_v28, %v653_v7  ;;  %v288_v39 = vor.u32 %v287_v29, %v283_v17  ;;  %v675_v41 = vshll.u32 %v89_v23, 16  ;;  %v296_v54 = vshrl.u32 %v7022_v37, 16  ;;  %v7069_v23 = vld [vmem:[%s9535_s0 + $0x60] sm:$0xf] }
  0x3c   :  { %v7031_v43 = vcombine.low %v644_v20, %v654_v38  ;;  %v284_v44 = vsel %vm6804_vm4, %v279_v33, %v283_v17  ;;  %v662_v45 = vor.u32 %v661_v35, %v658_v34  ;;  %v671_v46 = vrot.slane %v669_v36, 4 }
  0x3d   :  { %v289_v48 = vrot.slane %v288_v39, 4  ;;  %v677_v53 = vrot.slane %v675_v41, 5  ;;  %v299_v55 = vshll.u32 %v7022_v37, 16  ;;  %v305_v60 = vshll.u32 %v7029_v42, 16 }
  0x3e   :  { %9711 = vst [vmem:[#allocation12_spill] sm:$0xff] %v7031_v43  ;;  %6098 = vmatmul.mubr.msk.bf16.gmra.mxu1 %vm993_vm3, %v7031_v43  ;;  %v663_v58 = vrot.slane %v662_v45, 4  ;;  %v672_v59 = vor.u32 %v671_v46, %v667_v40  ;;  %v309_v61 = vshrl.u32 %v7029_v42, 16  ;;  %v298_v1 = vrot.slane %v296_v54, 4  ;;  %v7087_v46 = vld [vmem:[%s9535_s0 + $0x68] sm:$0x1] }
  0x3f   :  { %v294_v63 = vsel %vm6804_vm4, %v289_v48, %v293_v30  ;;  %v301_v2 = vrot.slane %v299_v55, 5  ;;  %v315_v3 = vshll.u32 %v7038_v47, 16  ;;  %v307_v11 = vrot.slane %v305_v60, 5  ;;  %v7076_v30 = vld [vmem:[%s9535_s0 + $0x64] sm:$0xf] }
  0x40   :  { %v7055_v7 = vcombine.low %v284_v44, %v294_v63  ;;  %v668_v8 = vsel %vm6804_vm4, %v663_v58, %v667_v40  ;;  %v673_v9 = vrot.slane %v672_v59, 4  ;;  %v311_v13 = vrot.slane %v309_v61, 4  ;;  %v94_v60 = vld [vmem:[%s9535_s0 + $0x13c] sm:$0xf] }
  0x41   :  { %v302_v12 = vor.u32 %v301_v2, %v298_v1  ;;  %v317_v14 = vrot.slane %v315_v3, 5  ;;  %v680_v17 = vshrl.u32 %v90_v62, 16  ;;  %v683_v19 = vshll.u32 %v90_v62, 16  ;;  %v95_v2 = vld [vmem:[%s9535_s0 + $0x140] sm:$0x1] }
  0x42   :  { %9712 = vst [vmem:[#allocation13_spill] sm:$0xff] %v7055_v7  ;;  %6069 = vmatprep.mubr.msk.bf16.mxu0 %vm993_vm3, %v7055_v7  ;;  %v678_v18 = vsel %vm6804_vm4, %v673_v9, %v677_v53  ;;  %v689_v20 = vshll.u32 %v91_v5, 16  ;;  %v693_v22 = vshrl.u32 %v91_v5, 16  ;;  %v312_v28 = vor.u32 %v311_v13, %v307_v11  ;;  %v93_v53 = vld [vmem:[%s9535_s0 + $0x138] sm:$0xf] }
  0x43   :  { %v7071_v24 = vcombine.low %v668_v8, %v678_v18  ;;  %v303_v26 = vrot.slane %v302_v12, 4  ;;  %v682_v29 = vrot.slane %v680_v17, 4  ;;  %v685_v32 = vrot.slane %v683_v19, 5  ;;  %v7119_v17 = vld [vmem:[%s9534_s1 + $0x6] sm:$0x3] }
  0x44   :  { %v691_v33 = vrot.slane %v689_v20, 5  ;;  %v695_v34 = vrot.slane %v693_v22, 4  ;;  %v699_v35 = vshll.u32 %v92_v16, 16  ;;  %v313_v38 = vrot.slane %v312_v28, 4  ;;  %v7124_v18 = vld [vmem:[%s9534_s1 + $0x8] sm:$0x3]  ;;  %6655 = vmatprep.subr.msk.bf16.mxu1 %vm1090_vm0, %v7119_v17 }
  0x45   :  { %9713 = vst [vmem:[#allocation14_spill] sm:$0xff] %v7071_v24  ;;  %6101 = vmatprep.mubr.msk.bf16.mxu1 %vm993_vm3, %v7071_v24  ;;  %v308_v36 = vsel %vm6804_vm4, %v303_v26, %v307_v11  ;;  %v320_v39 = vshrl.u32 %v7069_v23, 16  ;;  %v323_v40 = vshll.u32 %v7069_v23, 16  ;;  %v686_v41 = vor.u32 %v685_v32, %v682_v29  ;;  %v7108_v11 = vld [vmem:[%s9535_s0 + $0x6c] sm:$0xf]  ;;  %6656 = vmatprep.subr.msk.bf16.mxu0 %vm1090_vm0, %v7124_v18 }
  0x46   :  { %v696_v44 = vor.u32 %v695_v34, %v691_v33  ;;  %v701_v45 = vrot.slane %v699_v35, 5  ;;  %v329_v48 = vshll.u32 %v7076_v30, 16  ;;  %v318_v54 = vsel %vm6804_vm4, %v313_v38, %v317_v14  ;;  %v7131_v28 = vld [vmem:[%s9535_s0 + $0x70] sm:$0xf] }
  0x47   :  { %v322_v55 = vrot.slane %v320_v39, 4  ;;  %v325_v58 = vrot.slane %v323_v40, 5  ;;  %v333_v59 = vshrl.u32 %v7076_v30, 16  ;;  %v7099_v61 = vcombine.low %v308_v36, %v318_v54  ;;  %v7144_v39 = vld [vmem:[%s9535_s0 + $0x74] sm:$0x1] }
  0x48   :  { %v687_v62 = vrot.slane %v686_v41, 4  ;;  %v697_v63 = vrot.slane %v696_v44, 4  ;;  %v331_v1 = vrot.slane %v329_v48, 5  ;;  %v339_v8 = vshll.u32 %v7087_v46, 16 }
  0x49   :  { %9714 = vst [vmem:[#allocation15_spill] sm:$0xff] %v7099_v61  ;;  %v326_v3 = vor.u32 %v325_v58, %v322_v55  ;;  %v335_v5 = vrot.slane %v333_v59, 4  ;;  %v704_v9 = vshrl.u32 %v93_v53, 16  ;;  %6070 = vmatmul.mubr.msk.bf16.gmra.mxu0 %vm993_vm3, %v7099_v61  ;;  %v707_v14 = vshll.u32 %v93_v53, 16  ;;  %v96_v53 = vld [vmem:[%s9535_s0 + $0x144] sm:$0xf] }
  0x4a   :  { %v692_v12 = vsel %vm6804_vm4, %v687_v62, %v691_v33  ;;  %v702_v13 = vsel %vm6804_vm4, %v697_v63, %v701_v45  ;;  %v713_v16 = vshll.u32 %v94_v60, 16  ;;  %v341_v26 = vrot.slane %v339_v8, 5 }
  0x4b   :  { %v7126_v19 = vcombine.low %v692_v12, %v702_v13  ;;  %v327_v20 = vrot.slane %v326_v3, 4  ;;  %v336_v22 = vor.u32 %v335_v5, %v331_v1  ;;  %v706_v29 = vrot.slane %v704_v9, 4 }
  0x4c   :  { %v709_v32 = vrot.slane %v707_v14, 5  ;;  %v715_v33 = vrot.slane %v713_v16, 5  ;;  %v717_v34 = vshrl.u32 %v94_v60, 16  ;;  %v723_v38 = vshll.u32 %v95_v2, 16  ;;  %v97_v2 = vld [vmem:[%s9535_s0 + $0x148] sm:$0xf] }
  0x4d   :  { %9715 = vst [vmem:[#allocation16_spill] sm:$0xff] %v7126_v19  ;;  %6102 = vmatmul.mubr.msk.bf16.gmra.mxu1 %vm993_vm3, %v7126_v19  ;;  %v332_v35 = vsel %vm6804_vm4, %v327_v20, %v331_v1  ;;  %v337_v36 = vrot.slane %v336_v22, 4  ;;  %v344_v40 = vshrl.u32 %v7108_v11, 16  ;;  %v347_v45 = vshll.u32 %v7108_v11, 16  ;;  %v98_v16 = vld [vmem:[%s9535_s0 + $0x14c] sm:$0x1] }
  0x4e   :  { %v710_v41 = vor.u32 %v709_v32, %v706_v29  ;;  %v719_v44 = vrot.slane %v717_v34, 4  ;;  %v353_v48 = vshll.u32 %v7131_v28, 16  ;;  %v725_v55 = vrot.slane %v723_v38, 5  ;;  %v7171_v34 = vld [vmem:[%s9535_s0 + $0x78] sm:$0xf] }
  0x4f   :  { %v342_v54 = vsel %vm6804_vm4, %v337_v36, %v341_v26  ;;  %v346_v58 = vrot.slane %v344_v40, 4  ;;  %v357_v59 = vshrl.u32 %v7131_v28, 16  ;;  %v349_v1 = vrot.slane %v347_v45, 5  ;;  %v7178_v40 = vld [vmem:[%s9535_s0 + $0x7c] sm:$0xf] }
  0x50   :  { %v7155_v60 = vcombine.low %v332_v35, %v342_v54  ;;  %v711_v62 = vrot.slane %v710_v41, 4  ;;  %v720_v63 = vor.u32 %v719_v44, %v715_v33  ;;  %v355_v3 = vrot.slane %v353_v48, 5 }
  0x51   :  { %v359_v5 = vrot.slane %v357_v59, 4  ;;  %v363_v8 = vshll.u32 %v7144_v39, 16  ;;  %v728_v9 = vshrl.u32 %v96_v53, 16  ;;  %v350_v14 = vor.u32 %v349_v1, %v346_v58 }
  0x52   :  { %9716 = vst [vmem:[#allocation17_spill] sm:$0xff] %v7155_v60  ;;  %6073 = vmatprep.mubr.msk.bf16.mxu0 %vm993_vm3, %v7155_v60  ;;  %v716_v12 = vsel %vm6804_vm4, %v711_v62, %v715_v33  ;;  %v721_v13 = vrot.slane %v720_v63, 4  ;;  %v731_v20 = vshll.u32 %v96_v53, 16  ;;  %v737_v32 = vshll.u32 %v97_v2, 16 }
  0x53   :  { %v360_v22 = vor.u32 %v359_v5, %v355_v3  ;;  %v365_v26 = vrot.slane %v363_v8, 5  ;;  %v730_v29 = vrot.slane %v728_v9, 4  ;;  %v351_v33 = vrot.slane %v350_v14, 4 }
  0x54   :  { %v726_v35 = vsel %vm6804_vm4, %v721_v13, %v725_v55  ;;  %v733_v36 = vrot.slane %v731_v20, 5  ;;  %v741_v38 = vshrl.u32 %v97_v2, 16  ;;  %v739_v45 = vrot.slane %v737_v32, 5  ;;  %v7187_v55 = vld [vmem:[%s9535_s0 + $0x80] sm:$0x1] }
  0x55   :  { %v7180_v41 = vcombine.low %v716_v12, %v726_v35  ;;  %v361_v44 = vrot.slane %v360_v22, 4  ;;  %v747_v48 = vshll.u32 %v98_v16, 16  ;;  %v356_v53 = vsel %vm6804_vm4, %v351_v33, %v355_v3  ;;  %v99_v3 = vld [vmem:[%s9535_s0 + $0x150] sm:$0xf]  ;;  %v7204_v13 = vld [vmem:[%s9535_s0 + $0x154] sm:$0xf] }
  0x56   :  { %v734_v54 = vor.u32 %v733_v36, %v730_v29  ;;  %v743_v58 = vrot.slane %v741_v38, 4  ;;  %v368_v59 = vshrl.u32 %v7171_v34, 16  ;;  %v371_v1 = vshll.u32 %v7171_v34, 16  ;;  %v7215_v32 = vld [vmem:[%s9535_s0 + $0x158] sm:$0x1] }
  0x57   :  { %9717 = vst [vmem:[#allocation18_spill] sm:$0xff] %v7180_v41  ;;  %6105 = vmatprep.mubr.msk.bf16.mxu1 %vm993_vm3, %v7180_v41  ;;  %v366_v62 = vsel %vm6804_vm4, %v361_v44, %v365_v26  ;;  %v749_v63 = vrot.slane %v747_v48, 5  ;;  %v377_v2 = vshll.u32 %v7178_v40, 16  ;;  %v381_v20 = vshrl.u32 %v7178_v40, 16 }
  0x58   :  { %v7199_v5 = vcombine.low %v356_v53, %v366_v62  ;;  %v735_v8 = vrot.slane %v734_v54, 4  ;;  %v744_v9 = vor.u32 %v743_v58, %v739_v45  ;;  %v370_v12 = vrot.slane %v368_v59, 4  ;;  %v7221_v53 = vld [vmem:[%s9535_s0 + $0x84] sm:$0xf]  ;;  %v7229_v62 = vld [vmem:[%s9535_s0 + $0x88] sm:$0xf] }
  0x59   :  { %v373_v14 = vrot.slane %v371_v1, 5  ;;  %v379_v16 = vrot.slane %v377_v2, 5  ;;  %v387_v22 = vshll.u32 %v7187_v55, 16  ;;  %v752_v35 = vshrl.u32 %v99_v3, 16 }
  0x5a   :  { %9718 = vst [vmem:[#allocation19_spill] sm:$0xff] %v7199_v5  ;;  %6074 = vmatmul.mubr.msk.bf16.gmra.mxu0 %vm993_vm3, %v7199_v5  ;;  %v740_v26 = vsel %vm6804_vm4, %v735_v8, %v739_v45  ;;  %v745_v29 = vrot.slane %v744_v9, 4  ;;  %v755_v33 = vshll.u32 %v99_v3, 16  ;;  %v383_v38 = vrot.slane %v381_v20, 4  ;;  %v7371_v5 = vld [vmem:[%s9535_s0 + $0x178] sm:$0xf] }
  0x5b   :  { %v374_v36 = vor.u32 %v373_v14, %v370_v12  ;;  %v389_v44 = vrot.slane %v387_v22, 5  ;;  %v761_v48 = vshll.u32 %v7204_v13, 16  ;;  %v754_v54 = vrot.slane %v752_v35, 4  ;;  %9728 = vst [vmem:[#allocation29_spill] sm:$0xff] %v7371_v5 }
  0x5c   :  { %v750_v45 = vsel %vm6804_vm4, %v745_v29, %v749_v63  ;;  %v757_v58 = vrot.slane %v755_v33, 5  ;;  %v765_v59 = vshrl.u32 %v7204_v13, 16  ;;  %v384_v3 = vor.u32 %v383_v38, %v379_v16 }
  0x5d   :  { %v7231_v1 = vcombine.low %v740_v26, %v750_v45  ;;  %v375_v2 = vrot.slane %v374_v36, 4  ;;  %v763_v8 = vrot.slane %v761_v48, 5  ;;  %v771_v14 = vshll.u32 %v7215_v32, 16  ;;  %v7242_v26 = vld [vmem:[%s9535_s0 + $0x8c] sm:$0x1] }
  0x5e   :  { %v758_v9 = vor.u32 %v757_v58, %v754_v54  ;;  %v767_v12 = vrot.slane %v765_v59, 4  ;;  %v392_v63 = vshrl.u32 %v7221_v53, 16  ;;  %v385_v22 = vrot.slane %v384_v3, 4  ;;  %v7249_v45 = vld [vmem:[%s9535_s0 + $0x15c] sm:$0xf] }
  0x5f   :  { %9719 = vst [vmem:[#allocation20_spill] sm:$0xff] %v7231_v1  ;;  %6106 = vmatmul.mubr.msk.bf16.gmra.mxu1 %vm993_vm3, %v7231_v1  ;;  %v380_v20 = vsel %vm6804_vm4, %v375_v2, %v379_v16  ;;  %v395_v29 = vshll.u32 %v7221_v53, 16  ;;  %v401_v35 = vshll.u32 %v7229_v62, 16  ;;  %v773_v38 = vrot.slane %v771_v14, 5  ;;  %v7257_v2 = vld [vmem:[%s9535_s0 + $0x160] sm:$0xf] }
  0x60   :  { %v759_v33 = vrot.slane %v758_v9, 4  ;;  %v768_v36 = vor.u32 %v767_v12, %v763_v8  ;;  %v394_v48 = vrot.slane %v392_v63, 4  ;;  %v390_v16 = vsel %vm6804_vm4, %v385_v22, %v389_v44  ;;  %v7267_v44 = vld [vmem:[%s9535_s0 + $0x164] sm:$0x1]  ;;  %v7287_v1 = vld [vmem:[%s9535_s0 + $0x94] sm:$0xf] }
  0x61   :  { %v397_v54 = vrot.slane %v395_v29, 5  ;;  %v403_v58 = vrot.slane %v401_v35, 5  ;;  %v405_v59 = vshrl.u32 %v7229_v62, 16  ;;  %v7259_v3 = vcombine.low %v380_v20, %v390_v16 }
  0x62   :  { %v764_v9 = vsel %vm6804_vm4, %v759_v33, %v763_v8  ;;  %v769_v12 = vrot.slane %v768_v36, 4  ;;  %v411_v14 = vshll.u32 %v7242_v26, 16  ;;  %v776_v22 = vshrl.u32 %v7249_v45, 16  ;;  %v7280_v36 = vld [vmem:[%s9535_s0 + $0x90] sm:$0xf] }
  0x63   :  { %9720 = vst [vmem:[#allocation21_spill] sm:$0xff] %v7259_v3  ;;  %v398_v63 = vor.u32 %v397_v54, %v394_v48  ;;  %v407_v56 = vrot.slane %v405_v59, 4  ;;  %v779_v29 = vshll.u32 %v7249_v45, 16  ;;  %6077 = vmatprep.mubr.msk.bf16.mxu0 %vm993_vm3, %v7259_v3  ;;  %v785_v35 = vshll.u32 %v7257_v2, 16 }
  0x64   :  { %v774_v8 = vsel %vm6804_vm4, %v769_v12, %v773_v38  ;;  %v413_v20 = vrot.slane %v411_v14, 5  ;;  %v789_v33 = vshrl.u32 %v7257_v2, 16  ;;  %v778_v59 = vrot.slane %v776_v22, 4 }
  0x65   :  { %v7282_v48 = vcombine.low %v764_v9, %v774_v8  ;;  %v399_v16 = vrot.slane %v398_v63, 4  ;;  %v408_v54 = vor.u32 %v407_v56, %v403_v58  ;;  %v781_v38 = vrot.slane %v779_v29, 5  ;;  %v7299_v29 = vld [vmem:[%s9535_s0 + $0x98] sm:$0x1] }
  0x66   :  { %v787_v12 = vrot.slane %v785_v35, 5  ;;  %v791_v14 = vrot.slane %v789_v33, 4  ;;  %v795_v41 = vshll.u32 %v7267_v44, 16  ;;  %v416_v56 = vshrl.u32 %v7280_v36, 16  ;;  %v7305_v33 = vld [vmem:[%s9535_s0 + $0x168] sm:$0xf] }
  0x67   :  { %9721 = vst [vmem:[#allocation22_spill] sm:$0xff] %v7282_v48  ;;  %6109 = vmatprep.mubr.msk.bf16.mxu1 %vm993_vm3, %v7282_v48  ;;  %v404_v9 = vsel %vm6804_vm4, %v399_v16, %v403_v58  ;;  %v409_v8 = vrot.slane %v408_v54, 4  ;;  %v419_v63 = vshll.u32 %v7280_v36, 16  ;;  %v782_v22 = vor.u32 %v781_v38, %v778_v59  ;;  %9722 = vst [vmem:[#allocation23_spill] sm:$0xff] %v7305_v33 }
  0x68   :  { %v792_v19 = vor.u32 %v791_v14, %v787_v12  ;;  %v797_v24 = vrot.slane %v795_v41, 5  ;;  %v425_v35 = vshll.u32 %v7287_v1, 16  ;;  %v418_v16 = vrot.slane %v416_v56, 4  ;;  %v7313_v41 = vld [vmem:[%s9535_s0 + $0x16c] sm:$0xf] }
  0x69   :  { %v414_v58 = vsel %vm6804_vm4, %v409_v8, %v413_v20  ;;  %v421_v54 = vrot.slane %v419_v63, 5  ;;  %v429_v59 = vshrl.u32 %v7287_v1, 16  ;;  %v783_v14 = vrot.slane %v782_v22, 4  ;;  %v7335_v22 = vld [vmem:[%s9535_s0 + $0x9c] sm:$0xf] }
  0x6a   :  { %v7315_v38 = vcombine.low %v404_v9, %v414_v58  ;;  %v793_v48 = vrot.slane %v792_v19, 4  ;;  %v427_v43 = vrot.slane %v425_v35, 5  ;;  %v435_v27 = vshll.u32 %v7299_v29, 16  ;;  %v7328_v19 = vld [vmem:[%s9535_s0 + $0x170] sm:$0x1] }
  0x6b   :  { %v422_v51 = vor.u32 %v421_v54, %v418_v16  ;;  %v431_v15 = vrot.slane %v429_v59, 4  ;;  %v800_v20 = vshrl.u32 %v7305_v33, 16  ;;  %v788_v8 = vsel %vm6804_vm4, %v783_v14, %v787_v12  ;;  %9724 = vst [vmem:[#allocation25_spill] sm:$0xff] %v7328_v19 }
  0x6c   :  { %9723 = vst [vmem:[#allocation24_spill] sm:$0xff] %v7315_v38  ;;  %6078 = vmatmul.mubr.msk.bf16.gmra.mxu0 %vm993_vm3, %v7315_v38  ;;  %v798_v56 = vsel %vm6804_vm4, %v793_v48, %v797_v24  ;;  %v803_v9 = vshll.u32 %v7305_v33, 16  ;;  %v809_v63 = vshll.u32 %v7313_v41, 16  ;;  %v437_v16 = vrot.slane %v435_v27, 5  ;;  %v7342_v24 = vld [vmem:[%s9535_s0 + $0xa0] sm:$0xf] }
  0x6d   :  { %v7337_v35 = vcombine.low %v788_v8, %v798_v56  ;;  %v423_v12 = vrot.slane %v422_v51, 4  ;;  %v432_v58 = vor.u32 %v431_v15, %v427_v43  ;;  %v802_v48 = vrot.slane %v800_v20, 4  ;;  %v7353_v27 = vld [vmem:[%s9535_s0 + $0xa4] sm:$0x1] }
  0x6e   :  { %v805_v54 = vrot.slane %v803_v9, 5  ;;  %v811_v59 = vrot.slane %v809_v63, 5  ;;  %v813_v14 = vshrl.u32 %v7313_v41, 16  ;;  %v819_v15 = vshll.u32 %v7328_v19, 16 }
  0x6f   :  { %9725 = vst [vmem:[#allocation26_spill] sm:$0xff] %v7337_v35  ;;  %6110 = vmatmul.mubr.msk.bf16.gmra.mxu1 %vm993_vm3, %v7337_v35  ;;  %v428_v8 = vsel %vm6804_vm4, %v423_v12, %v427_v43  ;;  %v433_v56 = vrot.slane %v432_v58, 4  ;;  %v440_v51 = vshrl.u32 %v7335_v22, 16  ;;  %v443_v63 = vshll.u32 %v7335_v22, 16  ;;  %v7361_v43 = vld [vmem:[%s9535_s0 + $0x174] sm:$0xf] }
  0x70   :  { %v806_v20 = vor.u32 %v805_v54, %v802_v48  ;;  %v815_v9 = vrot.slane %v813_v14, 4  ;;  %v449_v49 = vshll.u32 %v7342_v24, 16  ;;  %9726 = vst [vmem:[#allocation27_spill] sm:$0xff] %v7361_v43  ;;  %v821_v58 = vrot.slane %v819_v15, 5 }
  0x71   :  { %v438_v12 = vsel %vm6804_vm4, %v433_v56, %v437_v16  ;;  %v442_v35 = vrot.slane %v440_v51, 4  ;;  %v453_v38 = vshrl.u32 %v7342_v24, 16  ;;  %v445_v14 = vrot.slane %v443_v63, 5  ;;  %v7382_v51 = vld [vmem:[%s9535_s0 + $0x17c] sm:$0x1] }
  0x72   :  { %v7366_v3 = vcombine.low %v428_v8, %v438_v12  ;;  %v807_v48 = vrot.slane %v806_v20, 4  ;;  %v816_v54 = vor.u32 %v815_v9, %v811_v59  ;;  %v451_v60 = vrot.slane %v449_v49, 5  ;;  %9729 = vst [vmem:[#allocation30_spill] sm:$0xff] %v7382_v51  ;;  %v7389_v12 = vld [vmem:[%s9535_s0 + $0xa8] sm:$0xf] }
  0x73   :  { %v455_v61 = vrot.slane %v453_v38, 4  ;;  %v459_v7 = vshll.u32 %v7353_v27, 16  ;;  %v824_v16 = vshrl.u32 %v7361_v43, 16  ;;  %v446_v15 = vor.u32 %v445_v14, %v442_v35 }
  0x74   :  { %9727 = vst [vmem:[#allocation28_spill] sm:$0xff] %v7366_v3  ;;  %6081 = vmatprep.mubr.msk.bf16.mxu0 %vm993_vm3, %v7366_v3  ;;  %v812_v8 = vsel %vm6804_vm4, %v807_v48, %v811_v59  ;;  %v817_v56 = vrot.slane %v816_v54, 4  ;;  %v827_v49 = vshll.u32 %v7361_v43, 16  ;;  %v833_v63 = vshll.u32 %v7371_v5, 16 }
  0x75   :  { %v456_v38 = vor.u32 %v455_v61, %v451_v60  ;;  %v461_v20 = vrot.slane %v459_v7, 5  ;;  %v826_v9 = vrot.slane %v824_v16, 4  ;;  %v447_v59 = vrot.slane %v446_v15, 4  ;;  %v7397_v61 = vld [vmem:[%s9535_s0 + $0xac] sm:$0xf] }
  0x76   :  { %v822_v35 = vsel %vm6804_vm4, %v817_v56, %v821_v58  ;;  %v829_v48 = vrot.slane %v827_v49, 5  ;;  %v837_v54 = vshrl.u32 %v7371_v5, 16  ;;  %v835_v16 = vrot.slane %v833_v63, 5  ;;  %v7407_v56 = vld [vmem:[%s9535_s0 + $0xb0] sm:$0x1] }
  0x77   :  { %v7399_v7 = vcombine.low %v812_v8, %v822_v35  ;;  %v457_v14 = vrot.slane %v456_v38, 4  ;;  %v843_v3 = vshll.u32 %v7382_v51, 16  ;;  %v452_v10 = vsel %vm6804_vm4, %v447_v59, %v451_v60 }
  0x78   :  { %v830_v31 = vor.u32 %v829_v48, %v826_v9  ;;  %v839_v58 = vrot.slane %v837_v54, 4  ;;  %v464_v15 = vshrl.u32 %v7389_v12, 16  ;;  %v467_v38 = vshll.u32 %v7389_v12, 16  ;;  %v7419_v9 = vld [vmem:[%s9535_s0 + $0x180] sm:$0xf] }
  0x79   :  { %9730 = vst [vmem:[#allocation31_spill] sm:$0xff] %v7399_v7  ;;  %6113 = vmatprep.mubr.msk.bf16.mxu1 %vm993_vm3, %v7399_v7  ;;  %v462_v8 = vsel %vm6804_vm4, %v457_v14, %v461_v20  ;;  %v845_v49 = vrot.slane %v843_v3, 5  ;;  %v473_v60 = vshll.u32 %v7397_v61, 16  ;;  %9731 = vst [vmem:[#allocation32_spill] sm:$0xff] %v7419_v9  ;;  %v7426_v54 = vld [vmem:[%s9535_s0 + $0x184] sm:$0xf] }
  0x7a   :  { %v7421_v63 = vcombine.low %v452_v10, %v462_v8  ;;  %v831_v35 = vrot.slane %v830_v31, 4  ;;  %v840_v59 = vor.u32 %v839_v58, %v835_v16  ;;  %v466_v48 = vrot.slane %v464_v15, 4  ;;  %9733 = vst [vmem:[#allocation34_spill] sm:$0xff] %v7426_v54  ;;  %v7437_v58 = vld [vmem:[%s9535_s0 + $0x188] sm:$0x1] }
  0x7b   :  { %v469_v3 = vrot.slane %v467_v38, 5  ;;  %v475_v20 = vrot.slane %v473_v60, 5  ;;  %v477_v14 = vshrl.u32 %v7397_v61, 16  ;;  %v483_v7 = vshll.u32 %v7407_v56, 16  ;;  %9734 = vst [vmem:[#allocation35_spill] sm:$0xff] %v7437_v58 }
  0x7c   :  { %9732 = vst [vmem:[#allocation33_spill] sm:$0xff] %v7421_v63  ;;  %6082 = vmatmul.mubr.msk.bf16.gmra.mxu0 %vm993_vm3, %v7421_v63  ;;  %v836_v10 = vsel %vm6804_vm4, %v831_v35, %v835_v16  ;;  %v841_v31 = vrot.slane %v840_v59, 4  ;;  %v848_v15 = vshrl.u32 %v7419_v9, 16  ;;  %v851_v8 = vshll.u32 %v7419_v9, 16  ;;  %v7445_v63 = vld [vmem:[%s9535_s0 + $0xb4] sm:$0xf] }
  0x7d   :  { %v470_v38 = vor.u32 %v469_v3, %v466_v48  ;;  %v479_v60 = vrot.slane %v477_v14, 4  ;;  %v485_v52 = vrot.slane %v483_v7, 5  ;;  %v857_v6 = vshll.u32 %v7426_v54, 16  ;;  %v7453_v48 = vld [vmem:[%s9535_s0 + $0xb8] sm:$0xf] }
  0x7e   :  { %v846_v16 = vsel %vm6804_vm4, %v841_v31, %v845_v49  ;;  %v850_v35 = vrot.slane %v848_v15, 4  ;;  %v853_v59 = vrot.slane %v851_v8, 5  ;;  %v861_v21 = vshrl.u32 %v7426_v54, 16 }
  0x7f   :  { %v7455_v7 = vcombine.low %v836_v10, %v846_v16  ;;  %v471_v3 = vrot.slane %v470_v38, 4  ;;  %v480_v14 = vor.u32 %v479_v60, %v475_v20  ;;  %v859_v9 = vrot.slane %v857_v6, 5  ;;  %v7466_v10 = vld [vmem:[%s9535_s0 + $0xbc] sm:$0x1] }
  0x80   :  { %v854_v51 = vor.u32 %v853_v59, %v850_v35  ;;  %v863_v43 = vrot.slane %v861_v21, 4  ;;  %v867_v5 = vshll.u32 %v7437_v58, 16  ;;  %v488_v49 = vshrl.u32 %v7445_v63, 16  ;;  %v7473_v35 = vld [vmem:[%s9535_s0 + $0x18c] sm:$0xf] }
  0x81   :  { %9735 = vst [vmem:[#allocation36_spill] sm:$0xff] %v7455_v7  ;;  %6114 = vmatmul.mubr.msk.bf16.gmra.mxu1 %vm993_vm3, %v7455_v7  ;;  %v476_v31 = vsel %vm6804_vm4, %v471_v3, %v475_v20  ;;  %v481_v15 = vrot.slane %v480_v14, 4  ;;  %v491_v6 = vshll.u32 %v7445_v63, 16  ;;  %v497_v21 = vshll.u32 %v7453_v48, 16  ;;  %9736 = vst [vmem:[#allocation37_spill] sm:$0xff] %v7473_v35 }
  0x82   :  { %v855_v8 = vrot.slane %v854_v51, 4  ;;  %v864_v38 = vor.u32 %v863_v43, %v859_v9  ;;  %v869_v60 = vrot.slane %v867_v5, 5  ;;  %v490_v16 = vrot.slane %v488_v49, 4  ;;  %v7481_v7 = vld [vmem:[%s9535_s0 + $0x190] sm:$0xf] }
  0x83   :  { %v486_v20 = vsel %vm6804_vm4, %v481_v15, %v485_v52  ;;  %v493_v59 = vrot.slane %v491_v6, 5  ;;  %v499_v3 = vrot.slane %v497_v21, 5  ;;  %v501_v14 = vshrl.u32 %v7453_v48, 16  ;;  %9737 = vst [vmem:[#allocation38_spill] sm:$0xff] %v7481_v7  ;;  %v7491_v52 = vld [vmem:[%s9535_s0 + $0x194] sm:$0x1] }
  0x84   :  { %v7483_v43 = vcombine.low %v476_v31, %v486_v20  ;;  %v860_v5 = vsel %vm6804_vm4, %v855_v8, %v859_v9  ;;  %v865_v51 = vrot.slane %v864_v38, 4  ;;  %v507_v49 = vshll.u32 %v7466_v10, 16  ;;  %9739 = vst [vmem:[#allocation40_spill] sm:$0xff] %v7491_v52 }
  0x85   :  { %v494_v58 = vor.u32 %v493_v59, %v490_v16  ;;  %v503_v54 = vrot.slane %v501_v14, 4  ;;  %v872_v15 = vshrl.u32 %v7473_v35, 16  ;;  %v875_v6 = vshll.u32 %v7473_v35, 16 }
  0x86   :  { %9738 = vst [vmem:[#allocation39_spill] sm:$0xff] %v7483_v43  ;;  %6085 = vmatprep.mubr.msk.bf16.mxu0 %vm993_vm3, %v7483_v43  ;;  %v870_v9 = vsel %vm6804_vm4, %v865_v51, %v869_v60  ;;  %v509_v31 = vrot.slane %v507_v49, 5  ;;  %v881_v21 = vshll.u32 %v7481_v7, 16  ;;  %v885_v8 = vshrl.u32 %v7481_v7, 16  ;;  %v6697_v43 = vld [vmem:[%s9535_s0 + $0x10] sm:$0xf] }
  0x87   :  { %v7501_v38 = vcombine.low %v860_v5, %v870_v9  ;;  %v495_v16 = vrot.slane %v494_v58, 4  ;;  %v504_v20 = vor.u32 %v503_v54, %v499_v3  ;;  %v874_v59 = vrot.slane %v872_v15, 4  ;;  %v6698_v15 = vld [vmem:[%s9535_s0 + $0x14] sm:$0x1] }
  0x88   :  { %v877_v14 = vrot.slane %v875_v6, 5  ;;  %v883_v19 = vrot.slane %v881_v21, 5  ;;  %v887_v33 = vrot.slane %v885_v8, 4  ;;  %v891_v35 = vshll.u32 %v7491_v52, 16 }
  0x89   :  { %9740 = vst [vmem:[#allocation41_spill] sm:$0xff] %v7501_v38  ;;  %v1975_v60 = vrot.slane %v6697_v43, 5  ;;  %6117 = vmatprep.mubr.msk.bf16.mxu1 %vm993_vm3, %v7501_v38  ;;  %v500_v5 = vsel %vm6804_vm4, %v495_v16, %v499_v3  ;;  %v505_v51 = vrot.slane %v504_v20, 4  ;;  %vm1963_vm5 = vcmask 1042432   ;;  %v6699_v3 = vld [vmem:[%s9535_s0] sm:$0xf] }
  0x8a   :  { %v878_v54 = vor.u32 %v877_v14, %v874_v59  ;;  %v888_v58 = vor.u32 %v887_v33, %v883_v19  ;;  %v893_v49 = vrot.slane %v891_v35, 5  ;;  %vm1964_vm6 = vcmask 1046532   ;;  %v6700_v33 = vld [vmem:[%s9535_s0 + $0x4] sm:$0xf] }
  0x8b   :  { %v1978_v6 = vrot.slane %v6698_v15, 5  ;;  %v510_v9 = vsel %vm6804_vm4, %v505_v51, %v509_v31  ;;  %vm7516_vm7 = vmor %vm1963_vm5, %vm1964_vm6  ;;  %v9741_v21 = vmov 0  ;;  %v5446_v8 = vrot.slane %v6699_v3, 9  ;;  %v6701_v31 = vld [vmem:[%s9535_s0 + $0xc] sm:$0xf] }
  0x8c   :  { %v9742_v21 = vsel %vm7516_vm7, 4294967295, %v9741_v21  ;;  %v1968_v35 = vrot.slane %v6700_v33, 5  ;;  %v7526_v16 = vcombine.low %v500_v5, %v510_v9  ;;  %v879_v20 = vrot.slane %v878_v54, 4 }
  0x8d   :  { %9743 = vst [vmem:[#allocation42_spill] sm:$0xff] %v9742_v21  ;;  %v889_v59 = vrot.slane %v888_v58, 4  ;;  %v5447_v14 = vrot.slane %v6701_v31, 9  ;;  %v1977_v38 = vrot.slane %v1975_v60, 4  ;;  %v5382_v54 = vcombine.low %v6699_v3, %v6700_v33 }
  0x8e   :  { %9744 = vst [vmem:[#allocation43_spill] sm:$0xff] %v7526_v16  ;;  %v1969_v51 = vsel %vm7516_vm7, %v5446_v8, %v1968_v35  ;;  %v1970_v15 = vrot.slane %v1968_v35, 4  ;;  %6086 = vmatmul.mubr.msk.bf16.gmra.mxu0 %vm993_vm3, %v7526_v16  ;;  %v884_v52 = vsel %vm6804_vm4, %v879_v20, %v883_v19  ;;  %v9746_v7 = vrot.slane %v6787_v4, 5  ;;  %v6702_v19 = vld [vmem:[%s9535_s0 + $0x18] sm:$0xf] }
  0x8f   :  { %v894_v5 = vsel %vm6804_vm4, %v889_v59, %v893_v49  ;;  %v1976_v58 = vsel %vm7516_vm7, %v5447_v14, %v1975_v60  ;;  %v1979_v35 = vsel %vm7516_vm7, %v1977_v38, %v1978_v6  ;;  %v5448_v49 = vrot.slane %v6702_v19, 9  ;;  %v6703_v60 = vld [vmem:[%s9535_s0 + $0x1c] sm:$0xf]  ;;  %v6705_v6 = vld [vmem:[%s9535_s0 + $0x28] sm:$0xf] }
  0x90   :  { %v7541_v9 = vcombine.low %v884_v52, %v894_v5  ;;  %v1972_v8 = vsel %vm7516_vm7, %v1970_v15, %v9746_v7  ;;  %v1982_v52 = vrot.slane %v6703_v60, 5  ;;  %v7557_v4 = vcombine.low %v1976_v58, %v1979_v35  ;;  %v6704_v7 = vld [vmem:[%s9535_s0 + $0x20] sm:$0x1]  ;;  %v6706_v59 = vld [vmem:[%s9535_s0 + $0x24] sm:$0xf] }
  0x91   :  { %v5479_v16 = vcombine.low %v1969_v51, %v1972_v8  ;;  %v1985_v38 = vrot.slane %v6704_v7, 5  ;;  %v1989_v3 = vrot.slane %v6705_v6, 5  ;;  %v5449_v14 = vrot.slane %v6706_v59, 9  ;;  %v6707_v51 = vld [vmem:[%s9535_s0 + $0x2c] sm:$0x1] }
  0x92   :  { %9745 = vst [vmem:[#allocation44_spill] sm:$0xff] %v7541_v9  ;;  %6118 = vmatmul.mubr.msk.bf16.gmra.mxu1 %vm993_vm3, %v7541_v9  ;;  %v1983_v33 = vsel %vm7516_vm7, %v5448_v49, %v1982_v52  ;;  %v1984_v20 = vrot.slane %v1982_v52, 4  ;;  %v1992_v15 = vrot.slane %v6707_v51, 5  ;;  %v3177_v58 = vsel %vm1090_vm0, %v7124_v18, 0  ;;  %v6709_v35 = vld [vmem:[%s9535_s0 + $0x30] sm:$0xf] }
  0x93   :  { %6123 = vmatprep.mubr.msk.bf16.mxu1 %vm993_vm3, %v5382_v54  ;;  %6189 = vmatprep.mubr.msk.bf16.mxu0 %vm993_vm3, %v5479_v16  ;;  %v1991_v5 = vrot.slane %v1989_v3, 4  ;;  %v6708_v54 = vld [vmem:[%s9535_s0 + $0x34] sm:$0xf]  ;;  %v5450_v49 = vrot.slane %v6709_v35, 9  ;;  %v6710_v52 = vld [vmem:[%s9535_s0 + $0x38] sm:$0x1]  ;;  %v7588_v51 = vcombine.low %v6701_v31, %v6697_v43  ;;  %v7594_v18 = vcombine.low %v6702_v19, %v6703_v60 }
  0x94   :  { %v1996_v16 = vrot.slane %v6708_v54, 5  ;;  %v1986_v8 = vsel %vm7516_vm7, %v1984_v20, %v1985_v38  ;;  %v1999_v7 = vrot.slane %v6710_v52, 5  ;;  %v1990_v38 = vsel %vm7516_vm7, %v5449_v14, %v1989_v3  ;;  %v6711_v52 = vld [vmem:[%s9535_s0 + $0x40] sm:$0xf] }
  0x95   :  { %v7590_v9 = vcombine.low %v1983_v33, %v1986_v8  ;;  %v1993_v20 = vsel %vm7516_vm7, %v1991_v5, %v1992_v15  ;;  %v2003_v43 = vrot.slane %v6711_v52, 5  ;;  %v2759_v31 = vsel %vm1090_vm0, %v7119_v17, 0  ;;  %v7615_v33 = vld [vmem:[%s9534_s1 + $0xa] sm:$0x3]  ;;  %v6713_v15 = vld [vmem:[%s9535_s0 + $0x44] sm:$0x1] }
  0x96   :  { %v1998_v25 = vrot.slane %v1996_v16, 4  ;;  %6190 = vmatmul.mubr.msk.bf16.vlgmr.msra.gmra.mxu0 %vm993_vm3, %v7557_v4  ;;  %v2010_v19 = vrot.slane %v6986_v57, 5  ;;  %v1997_v60 = vsel %vm7516_vm7, %v5450_v49, %v1996_v16  ;;  %v7619_v17 = vcombine.low %v1990_v38, %v1993_v20  ;;  %v6712_v57 = vld [vmem:[%s9535_s0 + $0x3c] sm:$0xf] }
  0x97   :  { %9747 = vst [vmem:[#allocation45_spill] sm:$0xff] %v7590_v9  ;;  %6320 = vmatpush3.bf16.msra.mxu0 %v3177_v58  ;;  %6193 = vmatprep.mubr.msk.bf16.mxu0 %vm993_vm3, %v7590_v9  ;;  %v5451_v14 = vrot.slane %v6712_v57, 9  ;;  %v5452_v5 = vrot.slane %v6979_v50, 9  ;;  %v2005_v16 = vrot.slane %v2003_v43, 4  ;;  %v2013_v8 = vrot.slane %v6995_v0, 5 }
  0x98   :  { %v2000_v3 = vsel %vm7516_vm7, %v1998_v25, %v1999_v7  ;;  %9748 = vst [vmem:[#allocation46_spill] sm:$0xff] %v7619_v17  ;;  %v2006_v25 = vrot.slane %v6713_v15, 5  ;;  %v2012_v58 = vrot.slane %v2010_v19, 4  ;;  %v2017_v49 = vrot.slane %v7029_v42, 5  ;;  %v7635_v7 = vld [vmem:[%s9534_s1 + $0xc] sm:$0x3] }
  0x99   :  { %v7637_v38 = vcombine.low %v1997_v60, %v2000_v3  ;;  %6658 = vmatprep.subr.msk.bf16.mxu0 %vm1090_vm0, %v7635_v7  ;;  %v7643_v50 = vcombine.low %v6706_v59, %v6705_v6  ;;  %v7645_v20 = vcombine.low %v6709_v35, %v6708_v54  ;;  %v2004_v0 = vsel %vm7516_vm7, %v5451_v14, %v2003_v43  ;;  %v6714_v3 = vld [vmem:[%s9535_s0 + $0x48] sm:$0xf] }
  0x9a   :  { %6124 = vmatmul.mubr.msk.bf16.vlgmr.msra.gmra.mxu1 %vm993_vm3, %v7588_v51  ;;  %v2011_v42 = vsel %vm7516_vm7, %v5452_v5, %v2010_v19  ;;  %v2007_v60 = vsel %vm7516_vm7, %v2005_v16, %v2006_v25  ;;  %v2014_v6 = vsel %vm7516_vm7, %v2012_v58, %v2013_v8  ;;  %v2019_v59 = vrot.slane %v2017_v49, 4 }
  0x9b   :  { %6254 = vmatpush3.bf16.msra.mxu1 %v2759_v31  ;;  %6127 = vmatprep.mubr.msk.bf16.mxu1 %vm993_vm3, %v7594_v18  ;;  %9749 = vst [vmem:[#allocation47_spill] sm:$0xff] %v7637_v38  ;;  %9750 = vst [vmem:[#allocation48_spill] sm:$0xff] %v7643_v50  ;;  %v5453_v31 = vrot.slane %v7022_v37, 9  ;;  %v2020_v54 = vrot.slane %v7038_v47, 5  ;;  %v2024_v35 = vrot.slane %v7076_v30, 5  ;;  %v7662_v43 = vcombine.low %v6712_v57, %v6711_v52 }
  0x9c   :  { %6657 = vmatprep.subr.msk.bf16.mxu1 %vm1090_vm0, %v7615_v33  ;;  %9751 = vst [vmem:[#allocation49_spill] sm:$0xff] %v7645_v20  ;;  %v5454_v37 = vrot.slane %v7069_v23, 9  ;;  %v7667_v19 = vcombine.low %v2004_v0, %v2007_v60  ;;  %v6715_v47 = vld [vmem:[%s9535_s0 + $0x4c] sm:$0xf]  ;;  %v7677_v15 = vcombine.low %v2011_v42, %v2014_v6  ;;  %v2027_v25 = vrot.slane %v7087_v46, 5 }
  0x9d   :  { %9752 = vst [vmem:[#allocation50_spill] sm:$0xff] %v7662_v43  ;;  %v7675_v14 = vcombine.low %v6714_v3, %v6715_v47  ;;  %v2018_v52 = vsel %vm7516_vm7, %v5453_v31, %v2017_v49  ;;  %v2021_v57 = vsel %vm7516_vm7, %v2019_v59, %v2020_v54  ;;  %v5455_v5 = vrot.slane %v7108_v11, 9 }
  0x9e   :  { %6194 = vmatmul.mubr.msk.bf16.gmra.mxu0 %vm993_vm3, %v7619_v17  ;;  %9753 = vst [vmem:[#allocation51_spill] sm:$0xff] %v7667_v19  ;;  %9755 = vst [vmem:[#allocation53_spill] sm:$0xff] %v7677_v15  ;;  %v7689_v16 = vcombine.low %v7280_v36, %v7287_v1  ;;  %v2026_v58 = vrot.slane %v2024_v35, 4  ;;  %v5458_v8 = vrot.slane %v7280_v36, 9  ;;  %v2052_v0 = vrot.slane %v7287_v1, 5 }
  0x9f   :  { %6197 = vmatprep.mubr.msk.bf16.mxu0 %vm993_vm3, %v7637_v38  ;;  %9754 = vst [vmem:[#allocation52_spill] sm:$0xff] %v7675_v14  ;;  %v2055_v49 = vrot.slane %v7299_v29, 5  ;;  %v2025_v42 = vsel %vm7516_vm7, %v5454_v37, %v2024_v35  ;;  %v2031_v31 = vrot.slane %v7131_v28, 5  ;;  %v2034_v46 = vrot.slane %v7144_v39, 5 }
  0xa0   :  { %9756 = vst [vmem:[#allocation54_spill] sm:$0xff] %v7689_v16  ;;  %v7700_v60 = vcombine.low %v7335_v22, %v7342_v24  ;;  %v2053_v6 = vsel %vm7516_vm7, %v5458_v8, %v2052_v0  ;;  %v2054_v59 = vrot.slane %v2052_v0, 4  ;;  %v5459_v36 = vrot.slane %v7335_v22, 9 }
  0xa1   :  { %v2059_v1 = vrot.slane %v7342_v24, 5  ;;  %v2038_v29 = vrot.slane %v7178_v40, 5  ;;  %v2062_v54 = vrot.slane %v7353_v27, 5  ;;  %v7712_v39 = vcombine.low %v7389_v12, %v7397_v61 }
  0xa2   :  { %6128 = vmatmul.mubr.msk.bf16.gmra.mxu1 %vm993_vm3, %v7643_v50  ;;  %9757 = vst [vmem:[#allocation55_spill] sm:$0xff] %v7700_v60  ;;  %v5460_v35 = vrot.slane %v7389_v12, 9  ;;  %v2028_v22 = vsel %vm7516_vm7, %v2026_v58, %v2027_v25  ;;  %v2056_v24 = vsel %vm7516_vm7, %v2054_v59, %v2055_v49  ;;  %v2066_v47 = vrot.slane %v7397_v61, 5 }
  0xa3   :  { %6131 = vmatprep.mubr.msk.bf16.mxu1 %vm993_vm3, %v7645_v20  ;;  %9758 = vst [vmem:[#allocation56_spill] sm:$0xff] %v7712_v39  ;;  %v2060_v37 = vsel %vm7516_vm7, %v5459_v36, %v2059_v1  ;;  %v2061_v3 = vrot.slane %v2059_v1, 4  ;;  %v7723_v27 = vcombine.low %v2053_v6, %v2056_v24  ;;  %v2069_v8 = vrot.slane %v7407_v56, 5 }
  0xa4   :  { %v7729_v12 = vcombine.low %v7445_v63, %v7453_v48  ;;  %v5461_v58 = vrot.slane %v7445_v63, 9  ;;  %v2073_v0 = vrot.slane %v7453_v48, 5  ;;  %v2076_v49 = vrot.slane %v7466_v10, 5 }
  0xa5   :  { %9759 = vst [vmem:[#allocation57_spill] sm:$0xff] %v7723_v27  ;;  %v2063_v25 = vsel %vm7516_vm7, %v2061_v3, %v2062_v54  ;;  %v7740_v61 = vcombine.low %v2018_v52, %v2021_v57  ;;  %v2067_v6 = vsel %vm7516_vm7, %v5460_v35, %v2066_v47  ;;  %v2068_v59 = vrot.slane %v2066_v47, 4  ;;  %v6716_v57 = vld [vmem:[%s9535_s0 + $0x54] sm:$0xf] }
  0xa6   :  { %6198 = vmatmul.mubr.msk.bf16.gmra.mxu0 %vm993_vm3, %v7667_v19  ;;  %9760 = vst [vmem:[#allocation58_spill] sm:$0xff] %v7729_v12  ;;  %v7742_v56 = vcombine.low %v2060_v37, %v2063_v25  ;;  %v7746_v36 = vcombine.low %v2025_v42, %v2028_v22  ;;  %v2033_v1 = vrot.slane %v2031_v31, 4  ;;  %v2074_v63 = vsel %vm7516_vm7, %v5461_v58, %v2073_v0  ;;  %v6717_v42 = vld [vmem:[%s9535_s0 + $0x58] sm:$0xf] }
  0xa7   :  { %6201 = vmatprep.mubr.msk.bf16.mxu0 %vm993_vm3, %v7677_v15  ;;  %9761 = vst [vmem:[#allocation59_spill] sm:$0xff] %v7740_v61  ;;  %v2075_v48 = vrot.slane %v2073_v0, 4  ;;  %v5456_v10 = vrot.slane %v7171_v34, 9  ;;  %v2040_v54 = vrot.slane %v2038_v29, 4  ;;  %v2041_v24 = vrot.slane %v7187_v55, 5 }
  0xa8   :  { %9762 = vst [vmem:[#allocation60_spill] sm:$0xff] %v7742_v56  ;;  %9763 = vst [vmem:[#allocation61_spill] sm:$0xff] %v7746_v36  ;;  %v2070_v52 = vsel %vm7516_vm7, %v2068_v59, %v2069_v8  ;;  %v7760_v35 = vcombine.low %v6716_v57, %v6717_v42  ;;  %v7770_v55 = vcombine.low %v7069_v23, %v7076_v30  ;;  %v2045_v25 = vrot.slane %v7229_v62, 5  ;;  %v6720_v59 = vld [vmem:[%s9535_s0 + $0xd8] sm:$0xf] }
  0xa9   :  { %v7762_v22 = vcombine.low %v2067_v6, %v2070_v52  ;;  %v2077_v37 = vsel %vm7516_vm7, %v2075_v48, %v2076_v49  ;;  %v2032_v47 = vsel %vm7516_vm7, %v5455_v5, %v2031_v31  ;;  %v2035_v8 = vsel %vm7516_vm7, %v2033_v1, %v2034_v46  ;;  %v6721_v48 = vld [vmem:[%s9535_s0 + $0xe8] sm:$0xf]  ;;  %v6722_v52 = vld [vmem:[%s9535_s0 + $0xf4] sm:$0xf] }
  0xaa   :  { %6132 = vmatmul.mubr.msk.bf16.gmra.mxu1 %vm993_vm3, %v7662_v43  ;;  %9764 = vst [vmem:[#allocation62_spill] sm:$0xff] %v7760_v35  ;;  %9766 = vst [vmem:[#allocation64_spill] sm:$0xff] %v7770_v55  ;;  %v7772_v3 = vcombine.low %v2074_v63, %v2077_v37  ;;  %v2039_v58 = vsel %vm7516_vm7, %v5456_v10, %v2038_v29  ;;  %v2042_v23 = vsel %vm7516_vm7, %v2040_v54, %v2041_v24  ;;  %v6723_v37 = vld [vmem:[%s9535_s0 + $0xe4] sm:$0xf]  ;;  %vm5309_vm8 = vcmask 1041409  }
  0xab   :  { %6135 = vmatprep.mubr.msk.bf16.mxu1 %vm993_vm3, %v7675_v14  ;;  %9765 = vst [vmem:[#allocation63_spill] sm:$0xff] %v7762_v22  ;;  %v7789_v30 = vcombine.low %v2032_v47, %v2035_v8  ;;  %v7791_v5 = vcombine.low %v2039_v58, %v2042_v23  ;;  %v5457_v31 = vrot.slane %v7221_v53, 9  ;;  %v2047_v46 = vrot.slane %v2045_v25, 4  ;;  %v6725_v23 = vld [vmem:[%s9535_s0 + $0xf0] sm:$0xf] }
  0xac   :  { %9767 = vst [vmem:[#allocation65_spill] sm:$0xff] %v7772_v3  ;;  %v2048_v0 = vrot.slane %v7242_v26, 5  ;;  %v7797_v29 = vcombine.low %v7108_v11, %v7131_v28  ;;  %v7803_v49 = vcombine.low %v7171_v34, %v7178_v40  ;;  %v7819_v28 = vcombine.low %v7221_v53, %v7229_v62  ;;  %v6718_v34 = vld [vmem:[%s9535_s0 + $0xdc] sm:$0xf]  ;;  %v6719_v53 = vld [vmem:[%s9535_s0 + $0xe0] sm:$0x1] }
  0xad   :  { %9768 = vst [vmem:[#allocation66_spill] sm:$0xff] %v7789_v30  ;;  %9769 = vst [vmem:[#allocation67_spill] sm:$0xff] %v7791_v5  ;;  %v2046_v6 = vsel %vm7516_vm7, %v5457_v31, %v2045_v25  ;;  %v2080_v40 = vrot.slane %v6718_v34, 5  ;;  %v2083_v62 = vrot.slane %v6719_v53, 5  ;;  %v5462_v1 = vrot.slane %v6720_v59, 9 }
  0xae   :  { %6202 = vmatmul.mubr.msk.bf16.gmra.mxu0 %vm993_vm3, %v7740_v61  ;;  %9770 = vst [vmem:[#allocation68_spill] sm:$0xff] %v7797_v29  ;;  %9771 = vst [vmem:[#allocation69_spill] sm:$0xff] %v7803_v49  ;;  %v2049_v26 = vsel %vm7516_vm7, %v2047_v46, %v2048_v0  ;;  %v2087_v10 = vrot.slane %v6721_v48, 5  ;;  %v2094_v57 = vrot.slane %v6722_v52, 5  ;;  %v5463_v47 = vrot.slane %v6723_v37, 9 }
  0xaf   :  { %6205 = vmatprep.mubr.msk.bf16.mxu0 %vm993_vm3, %v7746_v36  ;;  %v7815_v11 = vcombine.low %v2046_v6, %v2049_v26  ;;  %9773 = vst [vmem:[#allocation71_spill] sm:$0xff] %v7819_v28  ;;  %v2082_v63 = vrot.slane %v2080_v40, 4  ;;  %v2081_v54 = vsel %vm7516_vm7, %v5462_v1, %v2080_v40  ;;  %v6724_v25 = vld [vmem:[%s9535_s0 + $0xec] sm:$0x1]  ;;  %v5464_v31 = vrot.slane %v6725_v23, 9 }
  0xb0   :  { %v2089_v8 = vrot.slane %v2087_v10, 4  ;;  %v2090_v58 = vrot.slane %v6724_v25, 5  ;;  %v2096_v46 = vrot.slane %v2094_v57, 4  ;;  %v6726_v0 = vld [vmem:[%s9535_s0 + $0xf8] sm:$0x1]  ;;  %v5398_v26 = vcombine.low %v6720_v59, %v6718_v34 }
  0xb1   :  { %9772 = vst [vmem:[#allocation70_spill] sm:$0xff] %v7815_v11  ;;  %v2084_v24 = vsel %vm7516_vm7, %v2082_v63, %v2083_v62  ;;  %v2097_v6 = vrot.slane %v6726_v0, 5  ;;  %v2088_v40 = vsel %vm7516_vm7, %v5463_v47, %v2087_v10  ;;  %v6727_v62 = vld [vmem:[%s9535_s0 + $0x100] sm:$0xf]  ;;  %v2095_v63 = vsel %vm7516_vm7, %v5464_v31, %v2094_v57  ;;  %v6728_v34 = vld [vmem:[%s9535_s0 + $0x10c] sm:$0xf] }
  0xb2   :  { %6136 = vmatmul.mubr.msk.bf16.gmra.mxu1 %vm993_vm3, %v7760_v35  ;;  %v5495_v42 = vcombine.low %v2081_v54, %v2084_v24  ;;  %v2091_v53 = vsel %vm7516_vm7, %v2089_v8, %v2090_v58  ;;  %v2101_v1 = vrot.slane %v6727_v62, 5  ;;  %v2108_v59 = vrot.slane %v6728_v34, 5  ;;  %v6729_v57 = vld [vmem:[%s9535_s0 + $0xfc] sm:$0xf]  ;;  %v6730_v8 = vld [vmem:[%s9535_s0 + $0x104] sm:$0x1] }
  0xb3   :  { %6139 = vmatprep.mubr.msk.bf16.mxu1 %vm993_vm3, %v7770_v55  ;;  %v2098_v54 = vsel %vm7516_vm7, %v2096_v46, %v2097_v6  ;;  %v7888_v10 = vcombine.low %v2088_v40, %v2091_v53  ;;  %v2104_v25 = vrot.slane %v6730_v8, 5  ;;  %v6731_v58 = vld [vmem:[%s9535_s0 + $0x108] sm:$0xf]  ;;  %v6732_v0 = vld [vmem:[%s9535_s0 + $0x110] sm:$0x1]  ;;  %v7908_v40 = vcombine.low %v6725_v23, %v6722_v52 }
  0xb4   :  { %v7890_v24 = vcombine.low %v2095_v63, %v2098_v54  ;;  %v2103_v47 = vrot.slane %v2101_v1, 4  ;;  %v5466_v31 = vrot.slane %v6731_v58, 9  ;;  %v2110_v46 = vrot.slane %v2108_v59, 4  ;;  %v6733_v54 = vld [vmem:[%s9535_s0 + $0x118] sm:$0xf] }
  0xb5   :  { %9774 = vst [vmem:[#allocation72_spill] sm:$0xff] %v7888_v10  ;;  %v2111_v6 = vrot.slane %v6732_v0, 5  ;;  %v6734_v23 = vld [vmem:[%s9535_s0 + $0x124] sm:$0xf]  ;;  %v6737_v0 = vld [vmem:[%s9535_s0 + $0x120] sm:$0xf] }
  0xb6   :  { %6206 = vmatmul.mubr.msk.bf16.gmra.mxu0 %vm993_vm3, %v7789_v30  ;;  %9775 = vst [vmem:[#allocation73_spill] sm:$0xff] %v7890_v24  ;;  %v2105_v63 = vsel %vm7516_vm7, %v2103_v47, %v2104_v25  ;;  %v2122_v8 = vrot.slane %v6734_v23, 5 }
  0xb7   :  { %6209 = vmatprep.mubr.msk.bf16.mxu0 %vm993_vm3, %v7791_v5  ;;  %v2112_v52 = vsel %vm7516_vm7, %v2110_v46, %v2111_v6  ;;  %v5468_v6 = vrot.slane %v6737_v0, 9 }
  0xba   :  { %6140 = vmatmul.mubr.msk.bf16.gmra.mxu1 %vm993_vm3, %v7797_v29 }
  0xbb   :  { %6143 = vmatprep.mubr.msk.bf16.mxu1 %vm993_vm3, %v7803_v49 }
  0xbe   :  { %6210 = vmatmul.mubr.msk.bf16.gmra.mxu0 %vm993_vm3, %v7815_v11  ;;  %v8000_v11 = vcombine.low %v6737_v0, %v6734_v23 }
  0xbf   :  { %6213 = vmatprep.mubr.msk.bf16.mxu0 %vm993_vm3, %v7723_v27 }
  0xc2   :  { %6144 = vmatmul.mubr.msk.bf16.gmra.mxu1 %vm993_vm3, %v7819_v28 }
  0xc3   :  { %6147 = vmatprep.mubr.msk.bf16.mxu1 %vm993_vm3, %v7689_v16 }
  0xc6   :  { %6214 = vmatmul.mubr.msk.bf16.gmra.mxu0 %vm993_vm3, %v7742_v56 }
  0xc7   :  { %6217 = vmatprep.mubr.msk.bf16.mxu0 %vm993_vm3, %v7762_v22 }
  0xca   :  { %6148 = vmatmul.mubr.msk.bf16.gmra.mxu1 %vm993_vm3, %v7700_v60 }
  0xcb   :  { %6151 = vmatprep.mubr.msk.bf16.mxu1 %vm993_vm3, %v7712_v39 }
  0xce   :  { %6218 = vmatmul.mubr.msk.bf16.gmra.mxu0 %vm993_vm3, %v7772_v3 }
  0xcf   :  { %6221 = vmatprep.mubr.msk.bf16.mxu0 %vm993_vm3, %v5495_v42  ;;  %v5465_v42 = vrot.slane %v6729_v57, 9 }
  0xd1   :  { %v2102_v53 = vsel %vm7516_vm7, %v5465_v42, %v2101_v1 }
  0xd2   :  { %6152 = vmatmul.mubr.msk.bf16.gmra.mxu1 %vm993_vm3, %v7729_v12  ;;  %v7930_v1 = vcombine.low %v2102_v53, %v2105_v63  ;;  %v2124_v53 = vrot.slane %v2122_v8, 4  ;;  %v6738_v63 = vld [vmem:[%s9535_s0 + $0x128] sm:$0x1] }
  0xd3   :  { %6155 = vmatprep.mubr.msk.bf16.mxu1 %vm993_vm3, %v5398_v26  ;;  %v7904_v26 = vcombine.low %v6723_v37, %v6721_v48  ;;  %v2115_v48 = vrot.slane %v6733_v54, 5  ;;  %v2109_v37 = vsel %vm7516_vm7, %v5466_v31, %v2108_v59  ;;  %v6735_v59 = vld [vmem:[%s9535_s0 + $0x114] sm:$0xf]  ;;  %v6736_v31 = vld [vmem:[%s9535_s0 + $0x11c] sm:$0x1] }
  0xd4   :  { %9776 = vst [vmem:[#allocation74_spill] sm:$0xff] %v7930_v1  ;;  %v7932_v42 = vcombine.low %v2109_v37, %v2112_v52  ;;  %v5467_v47 = vrot.slane %v6735_v59, 9  ;;  %v2118_v46 = vrot.slane %v6736_v31, 5  ;;  %v2125_v37 = vrot.slane %v6738_v63, 5  ;;  %v6740_v63 = vld [vmem:[%s9535_s0 + $0x13c] sm:$0xf] }
  0xd5   :  { %v2117_v25 = vrot.slane %v2115_v48, 4  ;;  %v7946_v52 = vcombine.low %v6729_v57, %v6727_v62  ;;  %v6739_v62 = vld [vmem:[%s9535_s0 + $0x130] sm:$0xf]  ;;  %v7994_v56 = vcombine.low %v6735_v59, %v6733_v54  ;;  %v6745_v54 = vld [vmem:[%s9535_s0 + $0x148] sm:$0xf] }
  0xd6   :  { %6222 = vmatmul.mubr.msk.bf16.gmra.mxu0 %vm993_vm3, %v7888_v10  ;;  %9777 = vst [vmem:[#allocation75_spill] sm:$0xff] %v7932_v42  ;;  %v7952_v10 = vpop.f32.mrf.mxu0  ;;  %v2116_v31 = vsel %vm7516_vm7, %v5467_v47, %v2115_v48  ;;  %v2129_v57 = vrot.slane %v6739_v62, 5  ;;  %v2143_v59 = vrot.slane %v6745_v54, 5 }
  0xd7   :  { %6225 = vmatprep.mubr.msk.bf16.mxu0 %vm993_vm3, %v7890_v24  ;;  %9778 = vst [vmem:[#allocation76_spill] sm:$0xff] %v7946_v52  ;;  %v7950_v24 = vcombine.low %v6731_v58, %v6728_v34  ;;  %v2119_v3 = vsel %vm7516_vm7, %v2117_v25, %v2118_v46  ;;  %v2123_v34 = vsel %vm7516_vm7, %v5468_v6, %v2122_v8  ;;  %v6741_v46 = vld [vmem:[%s9535_s0 + $0x12c] sm:$0xf] }
  0xd8   :  { %v2126_v58 = vsel %vm7516_vm7, %v2124_v53, %v2125_v37  ;;  %v7976_v47 = vcombine.low %v2116_v31, %v2119_v3  ;;  %v7978_v25 = vpop.f32.mrf.mxu0  ;;  %v5469_v6 = vrot.slane %v6741_v46, 9  ;;  %v2131_v53 = vrot.slane %v2129_v57, 4  ;;  %v6742_v37 = vld [vmem:[%s9535_s0 + $0x134] sm:$0x1]  ;;  %v6743_v3 = vld [vmem:[%s9535_s0 + $0x138] sm:$0xf] }
  0xd9   :  { %v7980_v8 = vcombine.low %v2123_v34, %v2126_v58  ;;  %v5470_v31 = vrot.slane %v6743_v3, 9  ;;  %v6744_v34 = vld [vmem:[%s9535_s0 + $0x140] sm:$0x1]  ;;  %v8046_v36 = vcombine.low %v6743_v3, %v6740_v63  ;;  %v2164_v3 = vrot.slane %v7313_v41, 5 }
  0xda   :  { %6156 = vmatmul.mubr.msk.bf16.gmra.mxu1 %vm993_vm3, %v7904_v26  ;;  %9780 = vst [vmem:[#allocation78_spill] sm:$0xff] %v7976_v47  ;;  %v2139_v58 = vrot.slane %v6744_v34, 5  ;;  %v2130_v5 = vsel %vm7516_vm7, %v5469_v6, %v2129_v57 }
  0xdb   :  { %6159 = vmatprep.mubr.msk.bf16.mxu1 %vm993_vm3, %v7908_v40  ;;  %v7972_v48 = vpop.f32.mrf.mxu1  ;;  %9781 = vst [vmem:[#allocation79_spill] sm:$0xff] %v7980_v8 }
  0xdc   :  { %9779 = vst [vmem:[#allocation77_spill] sm:$0xff] %v7972_v48  ;;  %v8327_v48 = vld [vmem:[%s9535_s0 + $0xc8] sm:$0x1] }
  0xdd   :  { %v7996_v27 = vpop.f32.mrf.mxu1  ;;  %9839 = vst [vmem:[#allocation103_spill] sm:$0xff] %v8327_v48 }
  0xde   :  { %6226 = vmatmul.mubr.msk.bf16.gmra.mxu0 %vm993_vm3, %v7930_v1  ;;  %v2132_v1 = vrot.slane %v6742_v37, 5  ;;  %9782 = vst [vmem:[#allocation80_spill] sm:$0xff] %v7996_v27  ;;  %v8002_v37 = vpop.f32.mrf.mxu0 }
  0xdf   :  { %6229 = vmatprep.mubr.msk.bf16.mxu0 %vm993_vm3, %v7932_v42  ;;  %v2136_v42 = vrot.slane %v6740_v63, 5  ;;  %v8020_v57 = vpop.f32.mrf.mxu1 }
  0xe0   :  { %v2133_v34 = vsel %vm7516_vm7, %v2131_v53, %v2132_v1  ;;  %9783 = vst [vmem:[#allocation81_spill] sm:$0xff] %v8020_v57  ;;  %v8026_v6 = vpop.f32.mrf.mxu0 }
  0xe1   :  { %v2138_v22 = vrot.slane %v2136_v42, 4  ;;  %v2137_v23 = vsel %vm7516_vm7, %v5470_v31, %v2136_v42  ;;  %v8024_v1 = vcombine.low %v2130_v5, %v2133_v34  ;;  %v6747_v31 = vld [vmem:[%s9535_s0 + $0x14c] sm:$0x1]  ;;  %v6748_v5 = vld [vmem:[%s9535_s0 + $0x150] sm:$0xf]  ;;  %v8042_v30 = vpop.f32.mrf.mxu1 }
  0xe2   :  { %6160 = vmatmul.mubr.msk.bf16.gmra.mxu1 %vm993_vm3, %v7946_v52  ;;  %v5472_v34 = vrot.slane %v6748_v5, 9  ;;  %9786 = vst [vmem:[#allocation84_spill] sm:$0xff] %v8042_v30  ;;  %v9802_v30 = vld [vmem:[#allocation35_spill] sm:$0xff] }
  0xe3   :  { %6163 = vmatprep.mubr.msk.bf16.mxu1 %vm993_vm3, %v7950_v24  ;;  %v2140_v0 = vsel %vm7516_vm7, %v2138_v22, %v2139_v58  ;;  %9784 = vst [vmem:[#allocation82_spill] sm:$0xff] %v8024_v1  ;;  %v6746_v22 = vld [vmem:[%s9535_s0 + $0x144] sm:$0xf]  ;;  %v2146_v58 = vrot.slane %v6747_v31, 5  ;;  %v2181_v57 = vrot.slane %v9802_v30, 5 }
  0xe4   :  { %v8028_v53 = vcombine.low %v2137_v23, %v2140_v0  ;;  %v5471_v42 = vrot.slane %v6746_v22, 9  ;;  %v2153_v23 = vrot.slane %v7215_v32, 5  ;;  %v8040_v0 = vcombine.low %v6741_v46, %v6739_v62 }
  0xe5   :  { %v2157_v62 = vrot.slane %v7257_v2, 5  ;;  %v8078_v19 = vcombine.low %v6746_v22, %v6745_v54 }
  0xe6   :  { %6230 = vmatmul.mubr.msk.bf16.gmra.mxu0 %vm993_vm3, %v7976_v47  ;;  %v2150_v47 = vrot.slane %v7204_v13, 5  ;;  %9785 = vst [vmem:[#allocation83_spill] sm:$0xff] %v8028_v53  ;;  %v2145_v13 = vrot.slane %v2143_v59, 4  ;;  %v2144_v31 = vsel %vm7516_vm7, %v5471_v42, %v2143_v59 }
  0xe7   :  { %6233 = vmatprep.mubr.msk.bf16.mxu0 %vm993_vm3, %v7980_v8  ;;  %v8048_v61 = vpop.f32.mrf.mxu0 }
  0xe8   :  { %v2152_v8 = vrot.slane %v2150_v47, 4  ;;  %v2147_v32 = vsel %vm7516_vm7, %v2145_v13, %v2146_v58  ;;  %v2151_v46 = vsel %vm7516_vm7, %v5472_v34, %v2150_v47  ;;  %v5473_v47 = vrot.slane %v7249_v45, 9  ;;  %v9790_v58 = vld [vmem:[#allocation23_spill] sm:$0xff] }
  0xe9   :  { %v8068_v59 = vcombine.low %v2144_v31, %v2147_v32  ;;  %v8070_v42 = vpop.f32.mrf.mxu0  ;;  %v2159_v13 = vrot.slane %v2157_v62, 4  ;;  %v5474_v34 = vrot.slane %v9790_v58, 9  ;;  %9792 = vst [vmem:[#allocation23_spill] sm:$0xff] %v8078_v19  ;;  %v6749_v31 = vld [vmem:[%s9535_s0 + $0x154] sm:$0xf] }
  0xea   :  { %6164 = vmatmul.mubr.msk.bf16.gmra.mxu1 %vm993_vm3, %v7994_v56  ;;  %v2154_v63 = vsel %vm7516_vm7, %v2152_v8, %v2153_v23  ;;  %v2160_v8 = vrot.slane %v7267_v44, 5  ;;  %v2166_v23 = vrot.slane %v2164_v3, 4  ;;  %v8087_v45 = vcombine.low %v6748_v5, %v6749_v31 }
  0xeb   :  { %6167 = vmatprep.mubr.msk.bf16.mxu1 %vm993_vm3, %v8000_v11  ;;  %9788 = vst [vmem:[#allocation86_spill] sm:$0xff] %v8068_v59  ;;  %v8072_v2 = vcombine.low %v2151_v46, %v2154_v63  ;;  %v8089_v32 = vpop.f32.mrf.mxu0  ;;  %v2158_v44 = vsel %vm7516_vm7, %v5473_v47, %v2157_v62  ;;  %v2165_v46 = vsel %vm7516_vm7, %v5474_v34, %v2164_v3  ;;  %v9795_v63 = vld [vmem:[#allocation34_spill] sm:$0xff]  ;;  %v9799_v3 = vld [vmem:[#allocation27_spill] sm:$0xff] }
  0xec   :  { %v2161_v54 = vsel %vm7516_vm7, %v2159_v13, %v2160_v8  ;;  %v2178_v31 = vrot.slane %v9795_v63, 5  ;;  %v5475_v8 = vrot.slane %v9799_v3, 9 }
  0xed   :  { %9789 = vst [vmem:[#allocation87_spill] sm:$0xff] %v8072_v2  ;;  %v8109_v62 = vcombine.low %v2158_v44, %v2161_v54  ;;  %v8111_v47 = vpop.f32.mrf.mxu0  ;;  %v6751_v44 = vld [vmem:[%s9535_s0 + $0x160] sm:$0xf] }
  0xee   :  { %6234 = vmatmul.mubr.msk.bf16.gmra.mxu0 %vm993_vm3, %v8024_v1  ;;  %v9791_v1 = vld [vmem:[#allocation25_spill] sm:$0xff]  ;;  %v2180_v38 = vrot.slane %v2178_v31, 4 }
  0xef   :  { %6237 = vmatprep.mubr.msk.bf16.mxu0 %vm993_vm3, %v8028_v53  ;;  %v8064_v53 = vpop.f32.mrf.mxu1  ;;  %v2167_v15 = vrot.slane %v9791_v1, 5  ;;  %v9794_v1 = vld [vmem:[#allocation29_spill] sm:$0xff]  ;;  %9797 = vst [vmem:[#allocation34_spill] sm:$0xff] %v8109_v62 }
  0xf0   :  { %9787 = vst [vmem:[#allocation85_spill] sm:$0xff] %v8064_v53  ;;  %v2171_v22 = vrot.slane %v9794_v1, 5 }
  0xf1   :  { %v8080_v53 = vpop.f32.mrf.mxu1  ;;  %v2168_v5 = vsel %vm7516_vm7, %v2166_v23, %v2167_v15  ;;  %v9800_v15 = vld [vmem:[#allocation30_spill] sm:$0xff] }
  0xf2   :  { %6168 = vmatmul.mubr.msk.bf16.gmra.mxu1 %vm993_vm3, %v8040_v0  ;;  %9793 = vst [vmem:[#allocation25_spill] sm:$0xff] %v8080_v53  ;;  %v8113_v13 = vcombine.low %v2165_v46, %v2168_v5  ;;  %v2173_v34 = vrot.slane %v2171_v22, 4  ;;  %v2174_v23 = vrot.slane %v9800_v15, 5  ;;  %v8133_v5 = vcombine.low %v9790_v58, %v7313_v41 }
  0xf3   :  { %6171 = vmatprep.mubr.msk.bf16.mxu1 %vm993_vm3, %v8046_v36  ;;  %v2172_v15 = vsel %vm7516_vm7, %v5475_v8, %v2171_v22  ;;  %v2182_v41 = vsel %vm7516_vm7, %v2180_v38, %v2181_v57  ;;  %v8164_v38 = vcombine.low %v9799_v3, %v9794_v1 }
  0xf4   :  { %9798 = vst [vmem:[#allocation88_spill] sm:$0xff] %v8113_v13 }
  0xf6   :  { %6238 = vmatmul.mubr.msk.bf16.gmra.mxu0 %vm993_vm3, %v8068_v59  ;;  %v9801_v59 = vld [vmem:[#allocation32_spill] sm:$0xff] }
  0xf7   :  { %6241 = vmatprep.mubr.msk.bf16.mxu0 %vm993_vm3, %v8072_v2  ;;  %v8105_v2 = vpop.f32.mrf.mxu1  ;;  %v5476_v53 = vrot.slane %v9801_v59, 9 }
  0xf8   :  { %9796 = vst [vmem:[#allocation29_spill] sm:$0xff] %v8105_v2  ;;  %v6750_v2 = vld [vmem:[%s9535_s0 + $0x15c] sm:$0xf]  ;;  %v8135_v30 = vpop.f32.mrf.mxu0 }
  0xf9   :  { %v8125_v54 = vcombine.low %v6750_v2, %v6751_v44  ;;  %v8127_v46 = vpop.f32.mrf.mxu1  ;;  %v2175_v2 = vsel %vm7516_vm7, %v2173_v34, %v2174_v23  ;;  %v9804_v44 = vld [vmem:[#allocation38_spill] sm:$0xff]  ;;  %v9808_v23 = vld [vmem:[#allocation37_spill] sm:$0xff] }
  0xfa   :  { %6172 = vmatmul.mubr.msk.bf16.gmra.mxu1 %vm993_vm3, %v8078_v19  ;;  %9803 = vst [vmem:[#allocation27_spill] sm:$0xff] %v8127_v46  ;;  %v2185_v46 = vrot.slane %v9804_v44, 5  ;;  %v8154_v22 = vcombine.low %v2172_v15, %v2175_v2  ;;  %v8156_v8 = vpop.f32.mrf.mxu0  ;;  %v8172_v15 = vcombine.low %v9801_v59, %v9795_v63 }
  0xfb   :  { %6175 = vmatprep.mubr.msk.bf16.mxu1 %vm993_vm3, %v8087_v45 }
  0xfc   :  { %9806 = vst [vmem:[#allocation32_spill] sm:$0xff] %v8154_v22 }
  0xfe   :  { %6242 = vmatmul.mubr.msk.bf16.gmra.mxu0 %vm993_vm3, %v8109_v62  ;;  %v2179_v62 = vsel %vm7516_vm7, %v5476_v53, %v2178_v31  ;;  %v8150_v58 = vpop.f32.mrf.mxu1  ;;  %v2187_v53 = vrot.slane %v2185_v46, 4  ;;  %v9809_v31 = vld [vmem:[#allocation40_spill] sm:$0xff] }
  0xff   :  { %6245 = vmatprep.mubr.msk.bf16.mxu0 %vm993_vm3, %v8113_v13  ;;  %9805 = vst [vmem:[#allocation30_spill] sm:$0xff] %v8150_v58  ;;  %v8158_v34 = vcombine.low %v2179_v62, %v2182_v41  ;;  %v5477_v13 = vrot.slane %v9808_v23, 9  ;;  %v2188_v27 = vrot.slane %v9809_v31, 5  ;;  %v8174_v62 = vpop.f32.mrf.mxu0  ;;  %v8194_v41 = vcombine.low %v9808_v23, %v9804_v44 }
 0x100   :  { %v8166_v57 = vpop.f32.mrf.mxu1  ;;  %v3937_v23 = vsel %vm1090_vm0, %v7635_v7, 0 }
 0x101   :  { %9807 = vst [vmem:[#allocation35_spill] sm:$0xff] %v8158_v34  ;;  %9810 = vst [vmem:[#allocation38_spill] sm:$0xff] %v8166_v57  ;;  %v2186_v2 = vsel %vm7516_vm7, %v5477_v13, %v2185_v46  ;;  %v2189_v1 = vsel %vm7516_vm7, %v2187_v53, %v2188_v27  ;;  %v8190_v63 = vpop.f32.mrf.mxu0  ;;  %v9814_v46 = vld [vmem:[#allocation3_spill] sm:$0xff] }
 0x102   :  { %6176 = vmatmul.mubr.msk.bf16.gmra.mxu1 %vm993_vm3, %v8125_v54  ;;  %v8184_v3 = vpop.f32.mrf.mxu1  ;;  %v8188_v59 = vcombine.low %v2186_v2, %v2189_v1  ;;  %v9817_v2 = vld [vmem:[#allocation5_spill] sm:$0xff] }
 0x103   :  { %6179 = vmatprep.mubr.msk.bf16.mxu1 %vm993_vm3, %v8133_v5  ;;  %9811 = vst [vmem:[#allocation37_spill] sm:$0xff] %v8184_v3  ;;  %v9836_v3 = vld [vmem:[#allocation21_spill] sm:$0xff] }
 0x104   :  { %9812 = vst [vmem:[#allocation40_spill] sm:$0xff] %v8188_v59  ;;  %v8196_v13 = vpop.f32.mrf.mxu1 }
 0x105   :  { %9813 = vst [vmem:[#allocation89_spill] sm:$0xff] %v8196_v13  ;;  %v9831_v13 = vld [vmem:[#allocation19_spill] sm:$0xff] }
 0x106   :  { %6246 = vmatmul.mubr.msk.bf16.gmra.mxu0 %vm993_vm3, %v8154_v22 }
 0x107   :  { %6249 = vmatprep.mubr.msk.bf16.mxu0 %vm993_vm3, %v8158_v34  ;;  %v9823_v34 = vld [vmem:[#allocation11_spill] sm:$0xff] }
 0x109   :  { %v8200_v27 = vpop.f32.mrf.mxu0 }
 0x10a   :  { %6180 = vmatmul.mubr.msk.bf16.gmra.mxu1 %vm993_vm3, %v8164_v38 }
 0x10b   :  { %6183 = vmatprep.mubr.msk.bf16.mxu1 %vm993_vm3, %v8172_v15  ;;  %v8210_v44 = vpop.f32.mrf.mxu0 }
 0x10d   :  { %v8206_v53 = vpop.f32.mrf.mxu1  ;;  %v8218_v1 = vpop.f32.mrf.mxu0 }
 0x10e   :  { %6250 = vmatmul.mubr.msk.bf16.gmra.mxu0 %vm993_vm3, %v8188_v59  ;;  %9815 = vst [vmem:[#allocation3_spill] sm:$0xff] %v8206_v53  ;;  %v9818_v59 = vld [vmem:[#allocation7_spill] sm:$0xff] }
 0x10f   :  { %6321 = vmatprep.mubr.msk.bf16.mxu0 %vm993_vm3, %v9814_v46  ;;  %v8214_v31 = vpop.f32.mrf.mxu1  ;;  %v3563_v46 = vsel %vm1090_vm0, %v7615_v33, 0  ;;  %v8230_v7 = vpop.f32.mrf.mxu0  ;;  %v8242_v33 = vld [vmem:[%s9534_s1 + $0x10] sm:$0x3] }
 0x110   :  { %9816 = vst [vmem:[#allocation90_spill] sm:$0xff] %v8214_v31  ;;  %v9827_v31 = vld [vmem:[#allocation15_spill] sm:$0xff] }
 0x112   :  { %6184 = vmatmul.mubr.msk.bf16.gmra.mxu1 %vm993_vm3, %v8194_v41 }
 0x113   :  { %6255 = vmatprep.mubr.msk.bf16.mxu1 %vm993_vm3, %v7588_v51  ;;  %v8226_v51 = vpop.f32.mrf.mxu1 }
 0x114   :  { %9819 = vst [vmem:[#allocation91_spill] sm:$0xff] %v8226_v51  ;;  %v9826_v51 = vld [vmem:[#allocation13_spill] sm:$0xff] }
 0x116   :  { %6322 = vmatmul.mubr.msk.bf16.vlgmr.msra.gmra.mxu0 %vm993_vm3, %v9817_v2  ;;  %v8235_v2 = vld [vmem:[%s9534_s1 + $0xe] sm:$0x3] }
 0x117   :  { %6452 = vmatpush3.bf16.msra.mxu0 %v3937_v23  ;;  %6325 = vmatprep.mubr.msk.bf16.mxu0 %vm993_vm3, %v9818_v59  ;;  %9820 = vst [vmem:[#allocation92_spill] sm:$0xff] %v8235_v2  ;;  %v8244_v23 = vpop.f32.mrf.mxu1 }
 0x118   :  { %9821 = vst [vmem:[#allocation93_spill] sm:$0xff] %v8244_v23  ;;  %6660 = vmatprep.subr.msk.bf16.mxu0 %vm1090_vm0, %v8242_v33 }
 0x11a   :  { %6256 = vmatmul.mubr.msk.bf16.vlgmr.msra.gmra.mxu1 %vm993_vm3, %v7594_v18  ;;  %v8250_v59 = vpop.f32.mrf.mxu0 }
 0x11b   :  { %6386 = vmatpush3.bf16.msra.mxu1 %v3563_v46  ;;  %6259 = vmatprep.mubr.msk.bf16.mxu1 %vm993_vm3, %v7643_v50  ;;  %v9822_v46 = vld [vmem:[#allocation9_spill] sm:$0xff] }
 0x11c   :  { %6659 = vmatprep.subr.msk.bf16.mxu1 %vm1090_vm0, %v8235_v2  ;;  %v8260_v21 = vpop.f32.mrf.mxu0 }
 0x11e   :  { %6326 = vmatmul.mubr.msk.bf16.gmra.mxu0 %vm993_vm3, %v9822_v46  ;;  %v8266_v46 = vpop.f32.mrf.mxu0 }
 0x11f   :  { %6329 = vmatprep.mubr.msk.bf16.mxu0 %vm993_vm3, %v9823_v34  ;;  %v8256_v22 = vpop.f32.mrf.mxu1 }
 0x120   :  { %9824 = vst [vmem:[#allocation94_spill] sm:$0xff] %v8256_v22  ;;  %v8276_v22 = vpop.f32.mrf.mxu0 }
 0x121   :  { %v8262_v23 = vpop.f32.mrf.mxu1 }
 0x122   :  { %6260 = vmatmul.mubr.msk.bf16.gmra.mxu1 %vm993_vm3, %v7645_v20  ;;  %9825 = vst [vmem:[#allocation95_spill] sm:$0xff] %v8262_v23  ;;  %v9830_v23 = vld [vmem:[#allocation17_spill] sm:$0xff]  ;;  %v9841_v20 = vld [vmem:[#allocation28_spill] sm:$0xff] }
 0x123   :  { %6263 = vmatprep.mubr.msk.bf16.mxu1 %vm993_vm3, %v7662_v43  ;;  %v8272_v34 = vpop.f32.mrf.mxu1 }
 0x124   :  { %9828 = vst [vmem:[#allocation96_spill] sm:$0xff] %v8272_v34 }
 0x125   :  { %v8278_v53 = vpop.f32.mrf.mxu1 }
 0x126   :  { %6330 = vmatmul.mubr.msk.bf16.gmra.mxu0 %vm993_vm3, %v9826_v51  ;;  %9829 = vst [vmem:[#allocation97_spill] sm:$0xff] %v8278_v53  ;;  %v8297_v53 = vld [vmem:[%s9535_s0 + $0xc0] sm:$0xf] }
 0x127   :  { %6333 = vmatprep.mubr.msk.bf16.mxu0 %vm993_vm3, %v9827_v31  ;;  %9833 = vst [vmem:[#allocation99_spill] sm:$0xff] %v8297_v53  ;;  %v3115_v57 = vshrl.u32 %v8297_v53, 16  ;;  %v3118_v58 = vshll.u32 %v8297_v53, 16 }
 0x12a   :  { %6264 = vmatmul.mubr.msk.bf16.gmra.mxu1 %vm993_vm3, %v7675_v14  ;;  %v3117_v14 = vrot.slane %v3115_v57, 4 }
 0x12b   :  { %6267 = vmatprep.mubr.msk.bf16.mxu1 %vm993_vm3, %v7760_v35 }
 0x12c   :  { %v8282_v51 = vpop.f32.mrf.mxu0 }
 0x12e   :  { %6334 = vmatmul.mubr.msk.bf16.gmra.mxu0 %vm993_vm3, %v9830_v23  ;;  %v8292_v34 = vpop.f32.mrf.mxu0  ;;  %v8302_v23 = vld [vmem:[%s9535_s0 + $0xc4] sm:$0xf] }
 0x12f   :  { %6337 = vmatprep.mubr.msk.bf16.mxu0 %vm993_vm3, %v9831_v13  ;;  %v8288_v31 = vpop.f32.mrf.mxu1  ;;  %9834 = vst [vmem:[#allocation100_spill] sm:$0xff] %v8302_v23  ;;  %v3124_v35 = vshll.u32 %v8302_v23, 16 }
 0x130   :  { %9832 = vst [vmem:[#allocation98_spill] sm:$0xff] %v8288_v31  ;;  %v8308_v31 = vpop.f32.mrf.mxu0 }
 0x131   :  { %v8304_v13 = vpop.f32.mrf.mxu1  ;;  %v3126_v43 = vrot.slane %v3124_v35, 5  ;;  %v3134_v35 = vshll.u32 %v8327_v48, 16 }
 0x132   :  { %6268 = vmatmul.mubr.msk.bf16.gmra.mxu1 %vm993_vm3, %v7770_v55  ;;  %9835 = vst [vmem:[#allocation101_spill] sm:$0xff] %v8304_v13  ;;  %v3128_v55 = vshrl.u32 %v8302_v23, 16 }
 0x133   :  { %6271 = vmatprep.mubr.msk.bf16.mxu1 %vm993_vm3, %v7797_v29  ;;  %v9837_v29 = vld [vmem:[#allocation24_spill] sm:$0xff]  ;;  %v8318_v13 = vpop.f32.mrf.mxu1  ;;  %v3136_v2 = vrot.slane %v3134_v35, 5 }
 0x134   :  { %9838 = vst [vmem:[#allocation102_spill] sm:$0xff] %v8318_v13  ;;  %v3130_v17 = vrot.slane %v3128_v55, 4 }
 0x135   :  { %v8329_v9 = vpop.f32.mrf.mxu1 }
 0x136   :  { %6338 = vmatmul.mubr.msk.bf16.gmra.mxu0 %vm993_vm3, %v9836_v3  ;;  %v8322_v3 = vpop.f32.mrf.mxu0  ;;  %9840 = vst [vmem:[#allocation104_spill] sm:$0xff] %v8329_v9  ;;  %v3131_v57 = vor.u32 %v3130_v17, %v3126_v43 }
 0x137   :  { %6341 = vmatprep.mubr.msk.bf16.mxu0 %vm993_vm3, %v9837_v29  ;;  %v3120_v29 = vrot.slane %v3118_v58, 5 }
 0x138   :  { %v3132_v9 = vrot.slane %v3131_v57, 4 }
 0x13a   :  { %6272 = vmatmul.mubr.msk.bf16.gmra.mxu1 %vm993_vm3, %v7803_v49  ;;  %v9842_v49 = vld [vmem:[#allocation33_spill] sm:$0xff]  ;;  %v3137_v48 = vsel %vm6804_vm4, %v3132_v9, %v3136_v2  ;;  %v9852_v9 = vld [vmem:[#allocation4_spill] sm:$0xff] }
 0x13b   :  { %6275 = vmatprep.mubr.msk.bf16.mxu1 %vm993_vm3, %v7819_v28  ;;  %v3121_v28 = vor.u32 %v3120_v29, %v3117_v14  ;;  %v9846_v14 = vld [vmem:[#allocation43_spill] sm:$0xff]  ;;  %v9902_v29 = vld [vmem:[#allocation29_spill] sm:$0xff] }
 0x13c   :  { %v8333_v13 = vpop.f32.mrf.mxu0 }
 0x13e   :  { %6342 = vmatmul.mubr.msk.bf16.gmra.mxu0 %vm993_vm3, %v9841_v20  ;;  %v8344_v58 = vpop.f32.mrf.mxu0  ;;  %v3122_v20 = vrot.slane %v3121_v28, 4 }
 0x13f   :  { %6345 = vmatprep.mubr.msk.bf16.mxu0 %vm993_vm3, %v9842_v49  ;;  %v9845_v49 = vld [vmem:[#allocation39_spill] sm:$0xff] }
 0x140   :  { %v8350_v17 = vpop.f32.mrf.mxu0 }
 0x141   :  { %v8340_v55 = vpop.f32.mrf.mxu1 }
 0x142   :  { %6276 = vmatmul.mubr.msk.bf16.gmra.mxu1 %vm993_vm3, %v7689_v16  ;;  %9843 = vst [vmem:[#allocation105_spill] sm:$0xff] %v8340_v55  ;;  %v3127_v55 = vsel %vm6804_vm4, %v3122_v20, %v3126_v43  ;;  %v8362_v57 = vpop.f32.mrf.mxu0  ;;  %v8372_v20 = vcombine.low %v8297_v53, %v8302_v23  ;;  %v9859_v16 = vld [vmem:[#allocation10_spill] sm:$0xff] }
 0x143   :  { %6279 = vmatprep.mubr.msk.bf16.mxu1 %vm993_vm3, %v7700_v60  ;;  %v8346_v50 = vpop.f32.mrf.mxu1  ;;  %v8366_v35 = vcombine.low %v3127_v55, %v3137_v48 }
 0x144   :  { %9844 = vst [vmem:[#allocation106_spill] sm:$0xff] %v8346_v50  ;;  %9851 = vst [vmem:[#allocation110_spill] sm:$0xff] %v8372_v20 }
 0x145   :  { %v8360_v28 = vpop.f32.mrf.mxu1  ;;  %9849 = vst [vmem:[#allocation108_spill] sm:$0xff] %v8366_v35 }
 0x146   :  { %6346 = vmatmul.mubr.msk.bf16.gmra.mxu0 %vm993_vm3, %v9845_v49  ;;  %9848 = vst [vmem:[#allocation107_spill] sm:$0xff] %v8360_v28 }
 0x147   :  { %6349 = vmatprep.mubr.msk.bf16.mxu0 %vm993_vm3, %v9846_v14  ;;  %v8368_v49 = vpop.f32.mrf.mxu1 }
 0x148   :  { %9850 = vst [vmem:[#allocation109_spill] sm:$0xff] %v8368_v49 }
 0x14a   :  { %6280 = vmatmul.mubr.msk.bf16.gmra.mxu1 %vm993_vm3, %v7712_v39 }
 0x14b   :  { %6283 = vmatprep.mubr.msk.bf16.mxu1 %vm993_vm3, %v7729_v12 }
 0x14e   :  { %v8374_v43 = vpop.f32.mrf.mxu0  ;;  %6350 = vmatmul.mubr.msk.bf16.gmra.mxu0 %vm993_vm3, %v8366_v35 }
 0x14f   :  { %6353 = vmatprep.mubr.msk.bf16.mxu0 %vm993_vm3, %v9852_v9  ;;  %v9856_v9 = vld [vmem:[#allocation6_spill] sm:$0xff] }
 0x150   :  { %v8380_v2 = vpop.f32.mrf.mxu0 }
 0x152   :  { %v8382_v14 = vpop.f32.mrf.mxu1  ;;  %6284 = vmatmul.mubr.msk.bf16.gmra.mxu1 %vm993_vm3, %v8372_v20  ;;  %v8386_v48 = vpop.f32.mrf.mxu0 }
 0x153   :  { %9853 = vst [vmem:[#allocation4_spill] sm:$0xff] %v8382_v14  ;;  %6287 = vmatprep.mubr.msk.bf16.mxu1 %vm993_vm3, %v7904_v26  ;;  %v9858_v14 = vld [vmem:[#allocation8_spill] sm:$0xff] }
 0x154   :  { %v8390_v55 = vpop.f32.mrf.mxu1  ;;  %v8392_v49 = vpop.f32.mrf.mxu0 }
 0x155   :  { %9854 = vst [vmem:[#allocation111_spill] sm:$0xff] %v8390_v55 }
 0x156   :  { %v8394_v35 = vpop.f32.mrf.mxu1  ;;  %v6191_v28 = vpop.f32.mrf.mxu0  ;;  %6354 = vmatmul.mubr.msk.bf16.gmra.mxu0 %vm993_vm3, %v9856_v9 }
 0x157   :  { %9855 = vst [vmem:[#allocation112_spill] sm:$0xff] %v8394_v35  ;;  %6357 = vmatprep.mubr.msk.bf16.mxu0 %vm993_vm3, %v9858_v14 }
 0x158   :  { %v8398_v50 = vpop.f32.mrf.mxu1  ;;  %v2421_v20 = vpop.f32.mrf.mxu0 }
 0x159   :  { %9857 = vst [vmem:[#allocation113_spill] sm:$0xff] %v8398_v50 }
 0x15a   :  { %v6125_v12 = vpop.f32.mrf.mxu1  ;;  %6288 = vmatmul.mubr.msk.bf16.gmra.mxu1 %vm993_vm3, %v7908_v40  ;;  %v6192_v55 = vpop.f32.mrf.mxu0 }
 0x15b   :  { %v1685_v26 = vadd.f32 %v6125_v12, %v7952_v10  ;;  %6291 = vmatprep.mubr.msk.bf16.mxu1 %vm993_vm3, %v7946_v52  ;;  %v9860_v10 = vld [vmem:[#allocation12_spill] sm:$0xff] }
 0x15c   :  { %v1676_v35 = vpop.f32.mrf.mxu1  ;;  %v2424_v50 = vpop.f32.mrf.mxu0 }
 0x15d   :  { %v8407_v53 = vadd.f32 %v6191_v28, %v1685_v26  ;;  %v1677_v9 = vadd.f32 %v1676_v35, %v7978_v25 }
 0x15e   :  { %v6126_v23 = vpop.f32.mrf.mxu1  ;;  %v6195_v60 = vpop.f32.mrf.mxu0  ;;  %6358 = vmatmul.mubr.msk.bf16.gmra.mxu0 %vm993_vm3, %v9859_v16 }
 0x15f   :  { %v8410_v39 = vadd.f32 %v2421_v20, %v1677_v9  ;;  %v1688_v14 = vadd.f32 %v6126_v23, %v8002_v37  ;;  %6361 = vmatprep.mubr.msk.bf16.mxu0 %vm993_vm3, %v9860_v10 }
 0x160   :  { %v1679_v12 = vpop.f32.mrf.mxu1  ;;  %v2437_v26 = vpop.f32.mrf.mxu0 }
 0x161   :  { %v8417_v52 = vadd.f32 %v6192_v55, %v1688_v14  ;;  %v1680_v28 = vadd.f32 %v1679_v12, %v8026_v6 }
 0x162   :  { %v6129_v25 = vpop.f32.mrf.mxu1  ;;  %6292 = vmatmul.mubr.msk.bf16.gmra.mxu1 %vm993_vm3, %v7950_v24  ;;  %v6196_v23 = vpop.f32.mrf.mxu0 }
 0x163   :  { %v8422_v35 = vadd.f32 %v2424_v50, %v1680_v28  ;;  %v1701_v37 = vadd.f32 %v6129_v25, %v8048_v61  ;;  %6295 = vmatprep.mubr.msk.bf16.mxu1 %vm993_vm3, %v7994_v56  ;;  %v9861_v50 = vld [vmem:[#allocation14_spill] sm:$0xff]  ;;  %v9862_v28 = vld [vmem:[#allocation16_spill] sm:$0xff] }
 0x164   :  { %v1692_v20 = vpop.f32.mrf.mxu1  ;;  %v2440_v55 = vpop.f32.mrf.mxu0 }
 0x165   :  { %v8427_v9 = vadd.f32 %v6195_v60, %v1701_v37  ;;  %v1693_v14 = vadd.f32 %v1692_v20, %v8070_v42 }
 0x166   :  { %v6130_v6 = vpop.f32.mrf.mxu1  ;;  %v6199_v16 = vpop.f32.mrf.mxu0  ;;  %6362 = vmatmul.mubr.msk.bf16.gmra.mxu0 %vm993_vm3, %v9861_v50 }
 0x167   :  { %v8430_v12 = vadd.f32 %v2437_v26, %v1693_v14  ;;  %v1704_v10 = vadd.f32 %v6130_v6, %v8089_v32  ;;  %6365 = vmatprep.mubr.msk.bf16.mxu0 %vm993_vm3, %v9862_v28 }
 0x168   :  { %v1695_v61 = vpop.f32.mrf.mxu1  ;;  %v2453_v37 = vpop.f32.mrf.mxu0 }
 0x169   :  { %v8437_v25 = vadd.f32 %v6196_v23, %v1704_v10  ;;  %v1696_v60 = vadd.f32 %v1695_v61, %v8111_v47 }
 0x16a   :  { %v6133_v42 = vpop.f32.mrf.mxu1  ;;  %6296 = vmatmul.mubr.msk.bf16.gmra.mxu1 %vm993_vm3, %v8000_v11  ;;  %v6200_v20 = vpop.f32.mrf.mxu0 }
 0x16b   :  { %v8442_v26 = vadd.f32 %v2440_v55, %v1696_v60  ;;  %v1717_v32 = vadd.f32 %v6133_v42, %v8135_v30  ;;  %6299 = vmatprep.mubr.msk.bf16.mxu1 %vm993_vm3, %v8040_v0  ;;  %v9863_v55 = vld [vmem:[#allocation18_spill] sm:$0xff]  ;;  %v9864_v60 = vld [vmem:[#allocation20_spill] sm:$0xff] }
 0x16c   :  { %v1708_v14 = vpop.f32.mrf.mxu1  ;;  %v2456_v23 = vpop.f32.mrf.mxu0 }
 0x16d   :  { %v8447_v6 = vadd.f32 %v6199_v16, %v1717_v32  ;;  %v1709_v10 = vadd.f32 %v1708_v14, %v8156_v8 }
 0x16e   :  { %v6134_v47 = vpop.f32.mrf.mxu1  ;;  %v6203_v50 = vpop.f32.mrf.mxu0  ;;  %6366 = vmatmul.mubr.msk.bf16.gmra.mxu0 %vm993_vm3, %v9863_v55 }
 0x16f   :  { %v8450_v61 = vadd.f32 %v2453_v37, %v1709_v10  ;;  %v1720_v28 = vadd.f32 %v6134_v47, %v8174_v62  ;;  %6369 = vmatprep.mubr.msk.bf16.mxu0 %vm993_vm3, %v9864_v60 }
 0x170   :  { %v1711_v30 = vpop.f32.mrf.mxu1  ;;  %v2469_v32 = vpop.f32.mrf.mxu0 }
 0x171   :  { %v8457_v42 = vadd.f32 %v6200_v20, %v1720_v28  ;;  %v1712_v16 = vadd.f32 %v1711_v30, %v8190_v63  ;;  %v8473_v63 = vld [vmem:[%s9535_s0 + $0x198] sm:$0xf] }
 0x172   :  { %v6137_v8 = vpop.f32.mrf.mxu1  ;;  %6300 = vmatmul.mubr.msk.bf16.gmra.mxu1 %vm993_vm3, %v8046_v36  ;;  %v6204_v14 = vpop.f32.mrf.mxu0  ;;  %v3142_v60 = vshll.u32 %v8473_v63, 16 }
 0x173   :  { %9865 = vst [vmem:[#allocation114_spill] sm:$0xff] %v8457_v42  ;;  %v8462_v37 = vadd.f32 %v2456_v23, %v1712_v16  ;;  %v1733_v62 = vadd.f32 %v6137_v8, %v8200_v27  ;;  %6303 = vmatprep.mubr.msk.bf16.mxu1 %vm993_vm3, %v8078_v19  ;;  %v8478_v23 = vld [vmem:[%s9535_s0 + $0x19c] sm:$0xf]  ;;  %v9869_v8 = vld [vmem:[#allocation22_spill] sm:$0xff] }
 0x174   :  { %v1724_v10 = vpop.f32.mrf.mxu1  ;;  %v2472_v20 = vpop.f32.mrf.mxu0  ;;  %v3152_v55 = vshrl.u32 %v8478_v23, 16  ;;  %v3144_v42 = vrot.slane %v3142_v60, 5  ;;  %v9875_v60 = vld [vmem:[#allocation36_spill] sm:$0xff] }
 0x175   :  { %9866 = vst [vmem:[#allocation115_spill] sm:$0xff] %v8462_v37  ;;  %v8467_v47 = vadd.f32 %v6203_v50, %v1733_v62  ;;  %v1725_v28 = vadd.f32 %v1724_v10, %v8210_v44  ;;  %v9870_v62 = vld [vmem:[#allocation26_spill] sm:$0xff]  ;;  %v3139_v10 = vshrl.u32 %v8473_v63, 16 }
 0x176   :  { %v6138_v27 = vpop.f32.mrf.mxu1  ;;  %v6207_v50 = vpop.f32.mrf.mxu0  ;;  %6370 = vmatmul.mubr.msk.bf16.gmra.mxu0 %vm993_vm3, %v9869_v8 }
 0x177   :  { %9867 = vst [vmem:[#allocation116_spill] sm:$0xff] %v8467_v47  ;;  %v8480_v30 = vadd.f32 %v2469_v32, %v1725_v28  ;;  %v1736_v16 = vadd.f32 %v6138_v27, %v8218_v1  ;;  %6373 = vmatprep.mubr.msk.bf16.mxu0 %vm993_vm3, %v9870_v62  ;;  %v3148_v47 = vshll.u32 %v8478_v23, 16  ;;  %v3141_v19 = vrot.slane %v3139_v10, 4  ;;  %v9874_v10 = vld [vmem:[#allocation31_spill] sm:$0xff] }
 0x178   :  { %v1727_v44 = vpop.f32.mrf.mxu1  ;;  %v2485_v28 = vpop.f32.mrf.mxu0 }
 0x179   :  { %9868 = vst [vmem:[#allocation117_spill] sm:$0xff] %v8480_v30  ;;  %v8491_v32 = vadd.f32 %v6204_v14, %v1736_v16  ;;  %v1728_v1 = vadd.f32 %v1727_v44, %v8230_v7  ;;  %v3150_v14 = vrot.slane %v3148_v47, 5  ;;  %v3154_v16 = vrot.slane %v3152_v55, 4 }
 0x17a   :  { %v6141_v27 = vpop.f32.mrf.mxu1  ;;  %6304 = vmatmul.mubr.msk.bf16.gmra.mxu1 %vm993_vm3, %v8087_v45  ;;  %v6208_v30 = vpop.f32.mrf.mxu0 }
 0x17b   :  { %9871 = vst [vmem:[#allocation118_spill] sm:$0xff] %v8491_v32  ;;  %v8496_v8 = vadd.f32 %v2472_v20, %v1728_v1  ;;  %v1749_v62 = vadd.f32 %v6141_v27, %v8250_v59  ;;  %6307 = vmatprep.mubr.msk.bf16.mxu1 %vm993_vm3, %v8125_v54  ;;  %v8507_v20 = vld [vmem:[%s9535_s0 + $0x1a0] sm:$0x1] }
 0x17c   :  { %v1740_v37 = vpop.f32.mrf.mxu1  ;;  %v2488_v44 = vpop.f32.mrf.mxu0  ;;  %9873 = vst [vmem:[#allocation120_spill] sm:$0xff] %v8507_v20  ;;  %v3158_v47 = vshll.u32 %v8507_v20, 16 }
 0x17d   :  { %9872 = vst [vmem:[#allocation119_spill] sm:$0xff] %v8496_v8  ;;  %v8501_v32 = vadd.f32 %v6207_v50, %v1749_v62  ;;  %v1741_v7 = vadd.f32 %v1740_v37, %v8260_v21  ;;  %v3145_v21 = vor.u32 %v3144_v42, %v3141_v19  ;;  %v3155_v37 = vor.u32 %v3154_v16, %v3150_v14 }
 0x17e   :  { %v6142_v59 = vpop.f32.mrf.mxu1  ;;  %v6211_v8 = vpop.f32.mrf.mxu0  ;;  %6374 = vmatmul.mubr.msk.bf16.gmra.mxu0 %vm993_vm3, %v9874_v10 }
 0x17f   :  { %v8509_v1 = vadd.f32 %v2485_v28, %v1741_v7  ;;  %v1752_v27 = vadd.f32 %v6142_v59, %v8266_v46  ;;  %6377 = vmatprep.mubr.msk.bf16.mxu0 %vm993_vm3, %v9875_v60  ;;  %v3146_v42 = vrot.slane %v3145_v21, 4  ;;  %v3156_v16 = vrot.slane %v3155_v37, 4 }
 0x180   :  { %v1743_v55 = vpop.f32.mrf.mxu1  ;;  %v2501_v28 = vpop.f32.mrf.mxu0 }
 0x181   :  { %v8517_v50 = vadd.f32 %v6208_v30, %v1752_v27  ;;  %v1744_v62 = vadd.f32 %v1743_v55, %v8276_v22  ;;  %v3160_v30 = vrot.slane %v3158_v47, 5 }
 0x182   :  { %v6145_v7 = vpop.f32.mrf.mxu1  ;;  %6308 = vmatmul.mubr.msk.bf16.gmra.mxu1 %vm993_vm3, %v8133_v5  ;;  %v6212_v10 = vpop.f32.mrf.mxu0 }
 0x183   :  { %v8522_v46 = vadd.f32 %v2488_v44, %v1744_v62  ;;  %v1765_v59 = vadd.f32 %v6145_v7, %v8282_v51  ;;  %6311 = vmatprep.mubr.msk.bf16.mxu1 %vm993_vm3, %v8164_v38  ;;  %v9877_v51 = vld [vmem:[#allocation41_spill] sm:$0xff] }
 0x184   :  { %v1756_v19 = vpop.f32.mrf.mxu1  ;;  %v2504_v55 = vpop.f32.mrf.mxu0 }
 0x185   :  { %9876 = vst [vmem:[#allocation121_spill] sm:$0xff] %v8522_v46  ;;  %v8527_v27 = vadd.f32 %v6211_v8, %v1765_v59  ;;  %v1757_v22 = vadd.f32 %v1756_v19, %v8292_v34  ;;  %v9878_v46 = vld [vmem:[#allocation44_spill] sm:$0xff]  ;;  %v3151_v8 = vsel %vm6804_vm4, %v3146_v42, %v3150_v14  ;;  %v3161_v34 = vsel %vm6804_vm4, %v3156_v16, %v3160_v30 }
 0x186   :  { %v6146_v60 = vpop.f32.mrf.mxu1  ;;  %v6215_v62 = vpop.f32.mrf.mxu0  ;;  %6378 = vmatmul.mubr.msk.bf16.gmra.mxu0 %vm993_vm3, %v9877_v51  ;;  %v8551_v14 = vcombine.low %v3151_v8, %v3161_v34  ;;  %v8558_v30 = vcombine.low %v8473_v63, %v8478_v23 }
 0x187   :  { %v8530_v20 = vadd.f32 %v2501_v28, %v1757_v22  ;;  %v1768_v44 = vadd.f32 %v6146_v60, %v8308_v31  ;;  %6381 = vmatprep.mubr.msk.bf16.mxu0 %vm993_vm3, %v9878_v46  ;;  %v9898_v46 = vld [vmem:[#allocation51_spill] sm:$0xff] }
 0x188   :  { %v1759_v7 = vpop.f32.mrf.mxu1  ;;  %v2517_v47 = vpop.f32.mrf.mxu0  ;;  %9879 = vst [vmem:[#allocation122_spill] sm:$0xff] %v8551_v14 }
 0x189   :  { %v8541_v21 = vadd.f32 %v6212_v10, %v1768_v44  ;;  %v1760_v37 = vadd.f32 %v1759_v7, %v8322_v3 }
 0x18a   :  { %v6149_v31 = vpop.f32.mrf.mxu1  ;;  %6312 = vmatmul.mubr.msk.bf16.gmra.mxu1 %vm993_vm3, %v8172_v15  ;;  %v6216_v59 = vpop.f32.mrf.mxu0 }
 0x18b   :  { %v8546_v60 = vadd.f32 %v2504_v55, %v1760_v37  ;;  %v1781_v28 = vadd.f32 %v6149_v31, %v8333_v13  ;;  %6315 = vmatprep.mubr.msk.bf16.mxu1 %vm993_vm3, %v8194_v41 }
 0x18c   :  { %v1772_v19 = vpop.f32.mrf.mxu1  ;;  %v2520_v42 = vpop.f32.mrf.mxu0 }
 0x18d   :  { %v8553_v10 = vadd.f32 %v6215_v62, %v1781_v28  ;;  %v1773_v3 = vadd.f32 %v1772_v19, %v8344_v58 }
 0x18e   :  { %v6150_v16 = vpop.f32.mrf.mxu1  ;;  %v6219_v55 = vpop.f32.mrf.mxu0  ;;  %6382 = vmatmul.mubr.msk.bf16.gmra.mxu0 %vm993_vm3, %v8551_v14 }
 0x18f   :  { %v8560_v22 = vadd.f32 %v2517_v47, %v1773_v3  ;;  %v1784_v13 = vadd.f32 %v6150_v16, %v8350_v17  ;;  %6453 = vmatprep.mubr.msk.bf16.mxu0 %vm993_vm3, %v7594_v18 }
 0x190   :  { %v1775_v44 = vpop.f32.mrf.mxu1  ;;  %v2533_v7 = vpop.f32.mrf.mxu0 }
 0x191   :  { %v8567_v62 = vadd.f32 %v6216_v59, %v1784_v13  ;;  %v1776_v58 = vadd.f32 %v1775_v44, %v8362_v57  ;;  %v4741_v57 = vsel %vm1090_vm0, %v8242_v33, 0 }
 0x192   :  { %v6153_v8 = vpop.f32.mrf.mxu1  ;;  %6316 = vmatmul.mubr.msk.bf16.gmra.mxu1 %vm993_vm3, %v8558_v30  ;;  %v6220_v37 = vpop.f32.mrf.mxu0 }
 0x193   :  { %v8572_v34 = vadd.f32 %v2520_v42, %v1776_v58  ;;  %v1797_v17 = vadd.f32 %v6153_v8, %v8374_v43  ;;  %6387 = vmatprep.mubr.msk.bf16.mxu1 %vm993_vm3, %v7557_v4  ;;  %v9880_v43 = vld [vmem:[#allocation48_spill] sm:$0xff]  ;;  %v9885_v8 = vld [vmem:[#allocation77_spill] sm:$0xff] }
 0x194   :  { %v1788_v47 = vpop.f32.mrf.mxu1  ;;  %v2536_v28 = vpop.f32.mrf.mxu0  ;;  %v9881_v4 = vld [vmem:[#allocation92_spill] sm:$0xff] }
 0x195   :  { %v8577_v31 = vadd.f32 %v6219_v55, %v1797_v17  ;;  %v1789_v18 = vadd.f32 %v1788_v47, %v8380_v2  ;;  %v4355_v13 = vsel %vm1090_vm0, %v9881_v4, 0  ;;  %v9882_v55 = vld [vmem:[#allocation49_spill] sm:$0xff] }
 0x196   :  { %v6154_v59 = vpop.f32.mrf.mxu1  ;;  %v6223_v42 = vpop.f32.mrf.mxu0  ;;  %6454 = vmatmul.mubr.msk.bf16.vlgmr.msra.gmra.mxu0 %vm993_vm3, %v9880_v43  ;;  %v9890_v4 = vld [vmem:[#allocation81_spill] sm:$0xff] }
 0x197   :  { %v8582_v19 = vadd.f32 %v2533_v7, %v1789_v18  ;;  %v1800_v3 = vadd.f32 %v6154_v59, %v8386_v48  ;;  %6584 = vmatpush3.bf16.msra.mxu0 %v4741_v57  ;;  %6457 = vmatprep.mubr.msk.bf16.mxu0 %vm993_vm3, %v9882_v55  ;;  %v9883_v7 = vld [vmem:[#allocation45_spill] sm:$0xff]  ;;  %v9886_v18 = vld [vmem:[#allocation46_spill] sm:$0xff] }
 0x198   :  { %v1791_v16 = vpop.f32.mrf.mxu1  ;;  %v2549_v44 = vpop.f32.mrf.mxu0 }
 0x199   :  { %v8591_v2 = vadd.f32 %v6220_v37, %v1800_v3  ;;  %v1792_v33 = vadd.f32 %v1791_v16, %v8392_v49  ;;  %v9888_v37 = vld [vmem:[#allocation80_spill] sm:$0xff] }
 0x19a   :  { %v6157_v58 = vpop.f32.mrf.mxu1  ;;  %6388 = vmatmul.mubr.msk.bf16.vlgmr.msra.gmra.mxu1 %vm993_vm3, %v9883_v7  ;;  %v6224_v47 = vpop.f32.mrf.mxu0 }
 0x19b   :  { %v8596_v48 = vadd.f32 %v2536_v28, %v1792_v33  ;;  %v1813_v17 = vadd.f32 %v6157_v58, %v9885_v8  ;;  %6518 = vmatpush3.bf16.msra.mxu1 %v4355_v13  ;;  %6391 = vmatprep.mubr.msk.bf16.mxu1 %vm993_vm3, %v9886_v18  ;;  %v9891_v33 = vld [vmem:[#allocation50_spill] sm:$0xff]  ;;  %v9892_v58 = vld [vmem:[#allocation52_spill] sm:$0xff]  ;;  %v9962_v18 = vld [vmem:[#allocation65_spill] sm:$0xff] }
 0x19c   :  { %v1804_v57 = vpop.f32.mrf.mxu1  ;;  %v2552_v49 = vpop.f32.mrf.mxu0 }
 0x19d   :  { %9884 = vst [vmem:[#allocation48_spill] sm:$0xff] %v8596_v48  ;;  %v8601_v59 = vadd.f32 %v6223_v42, %v1813_v17  ;;  %v1805_v3 = vadd.f32 %v1804_v57, %v9888_v37  ;;  %v9894_v42 = vld [vmem:[#allocation84_spill] sm:$0xff]  ;;  %v9895_v37 = vld [vmem:[#allocation47_spill] sm:$0xff] }
 0x19e   :  { %v6158_v43 = vpop.f32.mrf.mxu1  ;;  %v6227_v28 = vpop.f32.mrf.mxu0  ;;  %6458 = vmatmul.mubr.msk.bf16.gmra.mxu0 %vm993_vm3, %v9891_v33 }
 0x19f   :  { %9887 = vst [vmem:[#allocation92_spill] sm:$0xff] %v8601_v59  ;;  %v8604_v16 = vadd.f32 %v2549_v44, %v1805_v3  ;;  %v1816_v55 = vadd.f32 %v6158_v43, %v9890_v4  ;;  %6461 = vmatprep.mubr.msk.bf16.mxu0 %vm993_vm3, %v9892_v58  ;;  %v9897_v3 = vld [vmem:[#allocation85_spill] sm:$0xff] }
 0x1a0   :  { %v1807_v13 = vpop.f32.mrf.mxu1  ;;  %v2565_v14 = vpop.f32.mrf.mxu0 }
 0x1a1   :  { %9889 = vst [vmem:[#allocation49_spill] sm:$0xff] %v8604_v16  ;;  %v8611_v8 = vadd.f32 %v6224_v47, %v1816_v55  ;;  %v1808_v17 = vadd.f32 %v1807_v13, %v9894_v42  ;;  %v9900_v47 = vld [vmem:[#allocation25_spill] sm:$0xff] }
 0x1a2   :  { %v6161_v57 = vpop.f32.mrf.mxu1  ;;  %6392 = vmatmul.mubr.msk.bf16.gmra.mxu1 %vm993_vm3, %v9895_v37  ;;  %v6228_v4 = vpop.f32.mrf.mxu0 }
 0x1a3   :  { %9893 = vst [vmem:[#allocation45_spill] sm:$0xff] %v8611_v8  ;;  %v8616_v44 = vadd.f32 %v2552_v49, %v1808_v17  ;;  %v1829_v43 = vadd.f32 %v6161_v57, %v9897_v3  ;;  %6395 = vmatprep.mubr.msk.bf16.mxu1 %vm993_vm3, %v9898_v46  ;;  %v9903_v49 = vld [vmem:[#allocation62_spill] sm:$0xff]  ;;  %v9904_v57 = vld [vmem:[#allocation64_spill] sm:$0xff] }
 0x1a4   :  { %v1820_v33 = vpop.f32.mrf.mxu1  ;;  %v2568_v58 = vpop.f32.mrf.mxu0 }
 0x1a5   :  { %9896 = vst [vmem:[#allocation77_spill] sm:$0xff] %v8616_v44  ;;  %v8621_v51 = vadd.f32 %v6227_v28, %v1829_v43  ;;  %v1821_v55 = vadd.f32 %v1820_v33, %v9900_v47  ;;  %v9906_v28 = vld [vmem:[#allocation27_spill] sm:$0xff]  ;;  %v9907_v47 = vld [vmem:[#allocation53_spill] sm:$0xff] }
 0x1a6   :  { %v6162_v13 = vpop.f32.mrf.mxu1  ;;  %v6231_v16 = vpop.f32.mrf.mxu0  ;;  %6462 = vmatmul.mubr.msk.bf16.gmra.mxu0 %vm993_vm3, %v9903_v49 }
 0x1a7   :  { %9899 = vst [vmem:[#allocation80_spill] sm:$0xff] %v8621_v51  ;;  %v8624_v42 = vadd.f32 %v2565_v14, %v1821_v55  ;;  %v1832_v8 = vadd.f32 %v6162_v13, %v9902_v29  ;;  %6465 = vmatprep.mubr.msk.bf16.mxu0 %vm993_vm3, %v9904_v57  ;;  %v9909_v29 = vld [vmem:[#allocation30_spill] sm:$0xff] }
 0x1a8   :  { %v1823_v17 = vpop.f32.mrf.mxu1  ;;  %v2581_v51 = vpop.f32.mrf.mxu0 }
 0x1a9   :  { %9901 = vst [vmem:[#allocation81_spill] sm:$0xff] %v8624_v42  ;;  %v8631_v3 = vadd.f32 %v6228_v4, %v1832_v8  ;;  %v1824_v43 = vadd.f32 %v1823_v17, %v9906_v28  ;;  %v9910_v42 = vld [vmem:[#allocation59_spill] sm:$0xff]  ;;  %v9912_v8 = vld [vmem:[#allocation38_spill] sm:$0xff] }
 0x1aa   :  { %v6165_v33 = vpop.f32.mrf.mxu1  ;;  %6396 = vmatmul.mubr.msk.bf16.gmra.mxu1 %vm993_vm3, %v9907_v47  ;;  %v6232_v13 = vpop.f32.mrf.mxu0 }
 0x1ab   :  { %9905 = vst [vmem:[#allocation50_spill] sm:$0xff] %v8631_v3  ;;  %v8636_v14 = vadd.f32 %v2568_v58, %v1824_v43  ;;  %v1845_v55 = vadd.f32 %v6165_v33, %v9909_v29  ;;  %6399 = vmatprep.mubr.msk.bf16.mxu1 %vm993_vm3, %v9910_v42  ;;  %v9914_v3 = vld [vmem:[#allocation37_spill] sm:$0xff]  ;;  %v9915_v58 = vld [vmem:[#allocation68_spill] sm:$0xff] }
 0x1ac   :  { %v1836_v49 = vpop.f32.mrf.mxu1  ;;  %v2584_v57 = vpop.f32.mrf.mxu0  ;;  %v9916_v33 = vld [vmem:[#allocation69_spill] sm:$0xff] }
 0x1ad   :  { %9908 = vst [vmem:[#allocation52_spill] sm:$0xff] %v8636_v14  ;;  %v8641_v44 = vadd.f32 %v6231_v16, %v1845_v55  ;;  %v1837_v4 = vadd.f32 %v1836_v49, %v9912_v8  ;;  %v9918_v16 = vld [vmem:[#allocation89_spill] sm:$0xff] }
 0x1ae   :  { %v6166_v17 = vpop.f32.mrf.mxu1  ;;  %v6235_v47 = vpop.f32.mrf.mxu0  ;;  %6466 = vmatmul.mubr.msk.bf16.gmra.mxu0 %vm993_vm3, %v9915_v58  ;;  %v9919_v8 = vld [vmem:[#allocation61_spill] sm:$0xff] }
 0x1af   :  { %9911 = vst [vmem:[#allocation84_spill] sm:$0xff] %v8641_v44  ;;  %v8644_v28 = vadd.f32 %v2581_v51, %v1837_v4  ;;  %v1848_v46 = vadd.f32 %v6166_v17, %v9914_v3  ;;  %6469 = vmatprep.mubr.msk.bf16.mxu0 %vm993_vm3, %v9916_v33  ;;  %v9921_v3 = vld [vmem:[#allocation3_spill] sm:$0xff] }
 0x1b0   :  { %v1839_v43 = vpop.f32.mrf.mxu1  ;;  %v2597_v44 = vpop.f32.mrf.mxu0 }
 0x1b1   :  { %9913 = vst [vmem:[#allocation85_spill] sm:$0xff] %v8644_v28  ;;  %v8651_v29 = vadd.f32 %v6232_v13, %v1848_v46  ;;  %v1840_v55 = vadd.f32 %v1839_v43, %v9918_v16  ;;  %v9922_v28 = vld [vmem:[#allocation66_spill] sm:$0xff] }
 0x1b2   :  { %v6169_v49 = vpop.f32.mrf.mxu1  ;;  %6400 = vmatmul.mubr.msk.bf16.gmra.mxu1 %vm993_vm3, %v9919_v8  ;;  %v6236_v17 = vpop.f32.mrf.mxu0  ;;  %v9924_v46 = vld [vmem:[#allocation90_spill] sm:$0xff] }
 0x1b3   :  { %9917 = vst [vmem:[#allocation25_spill] sm:$0xff] %v8651_v29  ;;  %v8656_v51 = vadd.f32 %v2584_v57, %v1840_v55  ;;  %v1861_v4 = vadd.f32 %v6169_v49, %v9921_v3  ;;  %6403 = vmatprep.mubr.msk.bf16.mxu1 %vm993_vm3, %v9922_v28  ;;  %v9926_v29 = vld [vmem:[#allocation91_spill] sm:$0xff]  ;;  %v9928_v49 = vld [vmem:[#allocation54_spill] sm:$0xff] }
 0x1b4   :  { %v1852_v58 = vpop.f32.mrf.mxu1  ;;  %v2600_v33 = vpop.f32.mrf.mxu0  ;;  %v9927_v57 = vld [vmem:[#allocation71_spill] sm:$0xff] }
 0x1b5   :  { %9920 = vst [vmem:[#allocation29_spill] sm:$0xff] %v8656_v51  ;;  %v8661_v14 = vadd.f32 %v6235_v47, %v1861_v4  ;;  %v1853_v13 = vadd.f32 %v1852_v58, %v9924_v46  ;;  %v9930_v47 = vld [vmem:[#allocation93_spill] sm:$0xff]  ;;  %v9931_v46 = vld [vmem:[#allocation67_spill] sm:$0xff] }
 0x1b6   :  { %v6170_v43 = vpop.f32.mrf.mxu1  ;;  %v6239_v8 = vpop.f32.mrf.mxu0  ;;  %6470 = vmatmul.mubr.msk.bf16.gmra.mxu0 %vm993_vm3, %v9927_v57 }
 0x1b7   :  { %9923 = vst [vmem:[#allocation62_spill] sm:$0xff] %v8661_v14  ;;  %v8664_v16 = vadd.f32 %v2597_v44, %v1853_v13  ;;  %v1864_v42 = vadd.f32 %v6170_v43, %v9926_v29  ;;  %6473 = vmatprep.mubr.msk.bf16.mxu0 %vm993_vm3, %v9928_v49  ;;  %v9933_v29 = vld [vmem:[#allocation94_spill] sm:$0xff] }
 0x1b8   :  { %v1855_v55 = vpop.f32.mrf.mxu1  ;;  %v2613_v14 = vpop.f32.mrf.mxu0 }
 0x1b9   :  { %9925 = vst [vmem:[#allocation64_spill] sm:$0xff] %v8664_v16  ;;  %v8671_v3 = vadd.f32 %v6236_v17, %v1864_v42  ;;  %v1856_v4 = vadd.f32 %v1855_v55, %v9930_v47  ;;  %v9934_v16 = vld [vmem:[#allocation70_spill] sm:$0xff]  ;;  %v9936_v42 = vld [vmem:[#allocation95_spill] sm:$0xff] }
 0x1ba   :  { %v6173_v58 = vpop.f32.mrf.mxu1  ;;  %6404 = vmatmul.mubr.msk.bf16.gmra.mxu1 %vm993_vm3, %v9931_v46  ;;  %v6240_v43 = vpop.f32.mrf.mxu0 }
 0x1bb   :  { %9929 = vst [vmem:[#allocation27_spill] sm:$0xff] %v8671_v3  ;;  %v8676_v44 = vadd.f32 %v2600_v33, %v1856_v4  ;;  %v1877_v13 = vadd.f32 %v6173_v58, %v9933_v29  ;;  %6407 = vmatprep.mubr.msk.bf16.mxu1 %vm993_vm3, %v9934_v16  ;;  %v9938_v3 = vld [vmem:[#allocation96_spill] sm:$0xff]  ;;  %v9939_v33 = vld [vmem:[#allocation55_spill] sm:$0xff] }
 0x1bc   :  { %v1868_v57 = vpop.f32.mrf.mxu1  ;;  %v2616_v49 = vpop.f32.mrf.mxu0  ;;  %v9940_v58 = vld [vmem:[#allocation56_spill] sm:$0xff]  ;;  %v9950_v16 = vld [vmem:[#allocation99_spill] sm:$0xff] }
 0x1bd   :  { %9932 = vst [vmem:[#allocation30_spill] sm:$0xff] %v8676_v44  ;;  %v8681_v51 = vadd.f32 %v6239_v8, %v1877_v13  ;;  %v1869_v17 = vadd.f32 %v1868_v57, %v9936_v42  ;;  %v9942_v8 = vld [vmem:[#allocation97_spill] sm:$0xff]  ;;  %v5613_v59 = vrot.slane %v9950_v16, 9 }
 0x1be   :  { %v6174_v55 = vpop.f32.mrf.mxu1  ;;  %v6243_v46 = vpop.f32.mrf.mxu0  ;;  %6474 = vmatmul.mubr.msk.bf16.gmra.mxu0 %vm993_vm3, %v9939_v33  ;;  %v9943_v42 = vld [vmem:[#allocation57_spill] sm:$0xff]  ;;  %v9947_v33 = vld [vmem:[#allocation100_spill] sm:$0xff] }
 0x1bf   :  { %9935 = vst [vmem:[#allocation38_spill] sm:$0xff] %v8681_v51  ;;  %v8684_v47 = vadd.f32 %v2613_v14, %v1869_v17  ;;  %v1880_v28 = vadd.f32 %v6174_v55, %v9938_v3  ;;  %6477 = vmatprep.mubr.msk.bf16.mxu0 %vm993_vm3, %v9940_v58  ;;  %v9945_v3 = vld [vmem:[#allocation98_spill] sm:$0xff]  ;;  %v3536_v44 = vrot.slane %v9947_v33, 5 }
 0x1c0   :  { %v1871_v4 = vpop.f32.mrf.mxu1  ;;  %v2629_v51 = vpop.f32.mrf.mxu0 }
 0x1c1   :  { %9937 = vst [vmem:[#allocation37_spill] sm:$0xff] %v8684_v47  ;;  %v8691_v29 = vadd.f32 %v6240_v43, %v1880_v28  ;;  %v1872_v13 = vadd.f32 %v1871_v4, %v9942_v8  ;;  %v9946_v47 = vld [vmem:[#allocation60_spill] sm:$0xff]  ;;  %v9949_v43 = vld [vmem:[#allocation101_spill] sm:$0xff] }
 0x1c2   :  { %v6177_v57 = vpop.f32.mrf.mxu1  ;;  %6408 = vmatmul.mubr.msk.bf16.gmra.mxu1 %vm993_vm3, %v9943_v42  ;;  %v6244_v55 = vpop.f32.mrf.mxu0 }
 0x1c3   :  { %9941 = vst [vmem:[#allocation68_spill] sm:$0xff] %v8691_v29  ;;  %v8696_v14 = vadd.f32 %v2616_v49, %v1872_v13  ;;  %v1893_v17 = vadd.f32 %v6177_v57, %v9945_v3  ;;  %6411 = vmatprep.mubr.msk.bf16.mxu1 %vm993_vm3, %v9946_v47  ;;  %v9952_v49 = vld [vmem:[#allocation102_spill] sm:$0xff]  ;;  %v9954_v47 = vld [vmem:[#allocation103_spill] sm:$0xff] }
 0x1c4   :  { %v1884_v58 = vpop.f32.mrf.mxu1  ;;  %v2632_v8 = vpop.f32.mrf.mxu0  ;;  %v9953_v3 = vld [vmem:[#allocation58_spill] sm:$0xff]  ;;  %v3539_v33 = vrot.slane %v9954_v47, 5 }
 0x1c5   :  { %9944 = vst [vmem:[#allocation69_spill] sm:$0xff] %v8696_v14  ;;  %v8702_v28 = vadd.f32 %v6243_v46, %v1893_v17  ;;  %v1885_v4 = vadd.f32 %v1884_v58, %v9949_v43  ;;  %v3538_v14 = vrot.slane %v3536_v44, 4  ;;  %v9955_v46 = vld [vmem:[#allocation110_spill] sm:$0xff]  ;;  %v8717_v17 = vld [vmem:[%s9535_s0 + $0xcc] sm:$0xf] }
 0x1c6   :  { %v6178_v29 = vpop.f32.mrf.mxu1  ;;  %v6247_v57 = vpop.f32.mrf.mxu0  ;;  %6478 = vmatmul.mubr.msk.bf16.gmra.mxu0 %vm993_vm3, %v9953_v3  ;;  %v3537_v3 = vsel %vm7516_vm7, %v5613_v59, %v3536_v44 }
 0x1c7   :  { %9948 = vst [vmem:[#allocation89_spill] sm:$0xff] %v8702_v28  ;;  %v8706_v42 = vadd.f32 %v2629_v51, %v1885_v4  ;;  %v1896_v13 = vadd.f32 %v6178_v29, %v9952_v49  ;;  %6481 = vmatprep.mubr.msk.bf16.mxu0 %vm993_vm3, %v9955_v46  ;;  %v8722_v51 = vld [vmem:[%s9535_s0 + $0xd0] sm:$0xf]  ;;  %v9958_v4 = vld [vmem:[#allocation63_spill] sm:$0xff] }
 0x1c8   :  { %v1887_v48 = vpop.f32.mrf.mxu1  ;;  %v9957_v29 = vld [vmem:[#allocation104_spill] sm:$0xff]  ;;  %v2645_v43 = vpop.f32.mrf.mxu0 }
 0x1c9   :  { %9951 = vst [vmem:[#allocation3_spill] sm:$0xff] %v8706_v42  ;;  %v8724_v16 = vadd.f32 %v6244_v55, %v1896_v13  ;;  %v1888_v58 = vadd.f32 %v1887_v48, %v9957_v29  ;;  %v9961_v42 = vld [vmem:[#allocation105_spill] sm:$0xff]  ;;  %v3540_v55 = vsel %vm7516_vm7, %v3538_v14, %v3539_v33  ;;  %v5651_v48 = vcombine.low %v8717_v17, %v8722_v51 }
 0x1ca   :  { %v6181_v47 = vpop.f32.mrf.mxu1  ;;  %6412 = vmatmul.mubr.msk.bf16.gmra.mxu1 %vm993_vm3, %v9958_v4  ;;  %v6248_v37 = vpop.f32.mrf.mxu0 }
 0x1cb   :  { %9956 = vst [vmem:[#allocation90_spill] sm:$0xff] %v8724_v16  ;;  %v8731_v46 = vadd.f32 %v2632_v8, %v1888_v58  ;;  %v1909_v28 = vadd.f32 %v6181_v47, %v9961_v42  ;;  %6415 = vmatprep.mubr.msk.bf16.mxu1 %vm993_vm3, %v9962_v18  ;;  %v9964_v16 = vld [vmem:[#allocation106_spill] sm:$0xff]  ;;  %v8743_v8 = vcombine.low %v3537_v3, %v3540_v55  ;;  %v9966_v58 = vld [vmem:[#allocation107_spill] sm:$0xff] }
 0x1cc   :  { %v1900_v13 = vpop.f32.mrf.mxu1  ;;  %v2648_v59 = vpop.f32.mrf.mxu0 }
 0x1cd   :  { %9960 = vst [vmem:[#allocation91_spill] sm:$0xff] %v8731_v46  ;;  %v8740_v29 = vadd.f32 %v6247_v57, %v1909_v28  ;;  %v1901_v4 = vadd.f32 %v1900_v13, %v9964_v16  ;;  %v9968_v28 = vld [vmem:[#allocation109_spill] sm:$0xff] }
 0x1ce   :  { %v6182_v44 = vpop.f32.mrf.mxu1  ;;  %v6251_v46 = vpop.f32.mrf.mxu0  ;;  %6482 = vmatmul.mubr.msk.bf16.gmra.mxu0 %vm993_vm3, %v5651_v48 }
 0x1cf   :  { %9963 = vst [vmem:[#allocation71_spill] sm:$0xff] %v8740_v29  ;;  %v8745_v42 = vadd.f32 %v2645_v43, %v1901_v4  ;;  %v1912_v47 = vadd.f32 %v6182_v44, %v9966_v58  ;;  %6485 = vmatprep.mubr.msk.bf16.mxu0 %vm993_vm3, %v7908_v40  ;;  %v9969_v4 = vld [vmem:[#allocation4_spill] sm:$0xff]  ;;  %v9971_v40 = vld [vmem:[#allocation111_spill] sm:$0xff] }
 0x1d0   :  { %v1903_v14 = vpop.f32.mrf.mxu1  ;;  %v2661_v16 = vpop.f32.mrf.mxu0  ;;  %v9970_v44 = vld [vmem:[#allocation72_spill] sm:$0xff] }
 0x1d1   :  { %9965 = vst [vmem:[#allocation54_spill] sm:$0xff] %v8745_v42  ;;  %v8751_v33 = vadd.f32 %v6248_v37, %v1912_v47  ;;  %v1904_v57 = vadd.f32 %v1903_v14, %v9968_v28 }
 0x1d2   :  { %v6185_v13 = vpop.f32.mrf.mxu1  ;;  %6416 = vmatmul.mubr.msk.bf16.gmra.mxu1 %vm993_vm3, %v8743_v8  ;;  %v6252_v55 = vpop.f32.mrf.mxu0 }
 0x1d3   :  { %9967 = vst [vmem:[#allocation93_spill] sm:$0xff] %v8751_v33  ;;  %v8756_v43 = vadd.f32 %v2648_v59, %v1904_v57  ;;  %v1925_v3 = vadd.f32 %v6185_v13, %v9969_v4  ;;  %6419 = vmatprep.mubr.msk.bf16.mxu1 %vm993_vm3, %v9970_v44  ;;  %v9972_v33 = vld [vmem:[#allocation112_spill] sm:$0xff] }
 0x1d4   :  { %v1916_v48 = vpop.f32.mrf.mxu1  ;;  %v2664_v47 = vpop.f32.mrf.mxu0  ;;  %v9973_v59 = vld [vmem:[#allocation76_spill] sm:$0xff] }
 0x1d5   :  { %v8761_v58 = vadd.f32 %v6251_v46, %v1925_v3  ;;  %v1917_v37 = vadd.f32 %v1916_v48, %v9971_v40  ;;  %v9975_v46 = vld [vmem:[#allocation113_spill] sm:$0xff] }
 0x1d6   :  { %v6186_v14 = vpop.f32.mrf.mxu1  ;;  %v6323_v29 = vpop.f32.mrf.mxu0  ;;  %6486 = vmatmul.mubr.msk.bf16.gmra.mxu0 %vm993_vm3, %v9973_v59  ;;  %v9976_v48 = vld [vmem:[#allocation73_spill] sm:$0xff] }
 0x1d7   :  { %v8764_v28 = vadd.f32 %v2661_v16, %v1917_v37  ;;  %v1928_v42 = vadd.f32 %v6186_v14, %v9972_v33  ;;  %6489 = vmatprep.mubr.msk.bf16.mxu0 %vm993_vm3, %v7950_v24  ;;  %v9977_v37 = vld [vmem:[#allocation74_spill] sm:$0xff] }
 0x1d8   :  { %v1919_v57 = vpop.f32.mrf.mxu1  ;;  %v3213_v3 = vpop.f32.mrf.mxu0 }
 0x1d9   :  { %v8771_v13 = vadd.f32 %v6252_v55, %v1928_v42  ;;  %v1920_v4 = vadd.f32 %v1919_v57, %v9975_v46 }
 0x1da   :  { %v6257_v44 = vpop.f32.mrf.mxu1  ;;  %6420 = vmatmul.mubr.msk.bf16.gmra.mxu1 %vm993_vm3, %v9976_v48  ;;  %v6324_v40 = vpop.f32.mrf.mxu0 }
 0x1db   :  { %9974 = vst [vmem:[#allocation94_spill] sm:$0xff] %v8771_v13  ;;  %v8776_v16 = vadd.f32 %v2664_v47, %v1920_v4  ;;  %v3052_v33 = vadd.f32 %v6257_v44, %v8407_v53  ;;  %6423 = vmatprep.mubr.msk.bf16.mxu1 %vm993_vm3, %v9977_v37  ;;  %v9978_v44 = vld [vmem:[#allocation75_spill] sm:$0xff] }
 0x1dc   :  { %v2795_v14 = vpop.f32.mrf.mxu1  ;;  %v3216_v42 = vpop.f32.mrf.mxu0 }
 0x1dd   :  { %v8781_v59 = vadd.f32 %v6323_v29, %v3052_v33  ;;  %v3050_v24 = vadd.f32 %v2795_v14, %v8410_v39  ;;  %v9979_v14 = vld [vmem:[#allocation78_spill] sm:$0xff] }
 0x1de   :  { %v6258_v55 = vpop.f32.mrf.mxu1  ;;  %v6327_v13 = vpop.f32.mrf.mxu0  ;;  %6490 = vmatmul.mubr.msk.bf16.gmra.mxu0 %vm993_vm3, %v7994_v56 }
 0x1df   :  { %v8784_v57 = vadd.f32 %v3213_v3, %v3050_v24  ;;  %v3053_v46 = vadd.f32 %v6258_v55, %v8417_v52  ;;  %6493 = vmatprep.mubr.msk.bf16.mxu0 %vm993_vm3, %v8000_v11 }
 0x1e0   :  { %v2798_v53 = vpop.f32.mrf.mxu1  ;;  %v3229_v4 = vpop.f32.mrf.mxu0 }
 0x1e1   :  { %v8791_v47 = vadd.f32 %v6324_v40, %v3053_v46  ;;  %v3051_v29 = vadd.f32 %v2798_v53, %v8422_v35 }
 0x1e2   :  { %v6261_v39 = vpop.f32.mrf.mxu1  ;;  %6424 = vmatmul.mubr.msk.bf16.gmra.mxu1 %vm993_vm3, %v9978_v44  ;;  %v6328_v33 = vpop.f32.mrf.mxu0 }
 0x1e3   :  { %v8796_v3 = vadd.f32 %v3216_v42, %v3051_v29  ;;  %v3056_v52 = vadd.f32 %v6261_v39, %v8427_v9  ;;  %6427 = vmatprep.mubr.msk.bf16.mxu1 %vm993_vm3, %v9979_v14  ;;  %v9981_v39 = vld [vmem:[#allocation79_spill] sm:$0xff] }
 0x1e4   :  { %v2811_v56 = vpop.f32.mrf.mxu1  ;;  %v3232_v40 = vpop.f32.mrf.mxu0 }
 0x1e5   :  { %v8801_v24 = vadd.f32 %v6327_v13, %v3056_v52  ;;  %v3054_v11 = vadd.f32 %v2811_v56, %v8430_v12  ;;  %v9983_v56 = vld [vmem:[#allocation82_spill] sm:$0xff] }
 0x1e6   :  { %v6262_v35 = vpop.f32.mrf.mxu1  ;;  %v6331_v53 = vpop.f32.mrf.mxu0  ;;  %6494 = vmatmul.mubr.msk.bf16.gmra.mxu0 %vm993_vm3, %v8040_v0 }
 0x1e7   :  { %v8804_v55 = vadd.f32 %v3229_v4, %v3054_v11  ;;  %v3057_v46 = vadd.f32 %v6262_v35, %v8437_v25  ;;  %6497 = vmatprep.mubr.msk.bf16.mxu0 %vm993_vm3, %v8046_v36 }
 0x1e8   :  { %v2814_v9 = vpop.f32.mrf.mxu1  ;;  %v3245_v29 = vpop.f32.mrf.mxu0 }
 0x1e9   :  { %v8811_v42 = vadd.f32 %v6328_v33, %v3057_v46  ;;  %v3055_v13 = vadd.f32 %v2814_v9, %v8442_v26  ;;  %v9986_v46 = vld [vmem:[#allocation114_spill] sm:$0xff] }
 0x1ea   :  { %v6265_v12 = vpop.f32.mrf.mxu1  ;;  %6428 = vmatmul.mubr.msk.bf16.gmra.mxu1 %vm993_vm3, %v9981_v39  ;;  %v6332_v52 = vpop.f32.mrf.mxu0 }
 0x1eb   :  { %9980 = vst [vmem:[#allocation95_spill] sm:$0xff] %v8811_v42  ;;  %v8816_v4 = vadd.f32 %v3232_v40, %v3055_v13  ;;  %v3060_v25 = vadd.f32 %v6265_v12, %v8447_v6  ;;  %6431 = vmatprep.mubr.msk.bf16.mxu1 %vm993_vm3, %v9983_v56  ;;  %v9987_v40 = vld [vmem:[#allocation23_spill] sm:$0xff] }
 0x1ec   :  { %v2827_v0 = vpop.f32.mrf.mxu1  ;;  %v3248_v33 = vpop.f32.mrf.mxu0 }
 0x1ed   :  { %9982 = vst [vmem:[#allocation96_spill] sm:$0xff] %v8816_v4  ;;  %v8821_v11 = vadd.f32 %v6331_v53, %v3060_v25  ;;  %v3058_v36 = vadd.f32 %v2827_v0, %v8450_v61  ;;  %v9989_v53 = vld [vmem:[#allocation115_spill] sm:$0xff] }
 0x1ee   :  { %v6266_v26 = vpop.f32.mrf.mxu1  ;;  %v6335_v42 = vpop.f32.mrf.mxu0  ;;  %6498 = vmatmul.mubr.msk.bf16.gmra.mxu0 %vm993_vm3, %v9987_v40  ;;  %v9990_v0 = vld [vmem:[#allocation83_spill] sm:$0xff] }
 0x1ef   :  { %9984 = vst [vmem:[#allocation55_spill] sm:$0xff] %v8821_v11  ;;  %v8824_v35 = vadd.f32 %v3245_v29, %v3058_v36  ;;  %v3061_v9 = vadd.f32 %v6266_v26, %v9986_v46  ;;  %6501 = vmatprep.mubr.msk.bf16.mxu0 %vm993_vm3, %v8087_v45  ;;  %v9991_v36 = vld [vmem:[#allocation116_spill] sm:$0xff]  ;;  %v9993_v45 = vld [vmem:[#allocation117_spill] sm:$0xff] }
 0x1f0   :  { %v2830_v6 = vpop.f32.mrf.mxu1  ;;  %v3261_v25 = vpop.f32.mrf.mxu0 }
 0x1f1   :  { %9985 = vst [vmem:[#allocation56_spill] sm:$0xff] %v8824_v35  ;;  %v8831_v13 = vadd.f32 %v6332_v52, %v3061_v9  ;;  %v3059_v12 = vadd.f32 %v2830_v6, %v9989_v53  ;;  %v9992_v35 = vld [vmem:[#allocation86_spill] sm:$0xff] }
 0x1f2   :  { %v6269_v61 = vpop.f32.mrf.mxu1  ;;  %6432 = vmatmul.mubr.msk.bf16.gmra.mxu1 %vm993_vm3, %v9990_v0  ;;  %v6336_v46 = vpop.f32.mrf.mxu0 }
 0x1f3   :  { %9988 = vst [vmem:[#allocation97_spill] sm:$0xff] %v8831_v13  ;;  %v8836_v29 = vadd.f32 %v3248_v33, %v3059_v12  ;;  %v3064_v26 = vadd.f32 %v6269_v61, %v9991_v36  ;;  %6435 = vmatprep.mubr.msk.bf16.mxu1 %vm993_vm3, %v9992_v35  ;;  %v9994_v13 = vld [vmem:[#allocation118_spill] sm:$0xff] }
 0x1f4   :  { %v2843_v40 = vpop.f32.mrf.mxu1  ;;  %v3264_v9 = vpop.f32.mrf.mxu0 }
 0x1f5   :  { %v8841_v11 = vadd.f32 %v6335_v42, %v3064_v26  ;;  %v3062_v52 = vadd.f32 %v2843_v40, %v9993_v45  ;;  %v9996_v42 = vld [vmem:[#allocation119_spill] sm:$0xff] }
 0x1f6   :  { %v6270_v6 = vpop.f32.mrf.mxu1  ;;  %v6339_v0 = vpop.f32.mrf.mxu0  ;;  %6502 = vmatmul.mubr.msk.bf16.gmra.mxu0 %vm993_vm3, %v8125_v54  ;;  %v9997_v40 = vld [vmem:[#allocation87_spill] sm:$0xff] }
 0x1f7   :  { %v8844_v53 = vadd.f32 %v3261_v25, %v3062_v52  ;;  %v3065_v4 = vadd.f32 %v6270_v6, %v9994_v13  ;;  %6505 = vmatprep.mubr.msk.bf16.mxu0 %vm993_vm3, %v8133_v5  ;;  %v9998_v52 = vld [vmem:[#allocation34_spill] sm:$0xff] }
 0x1f8   :  { %v2846_v33 = vpop.f32.mrf.mxu1  ;;  %v3277_v36 = vpop.f32.mrf.mxu0 }
 0x1f9   :  { %v8851_v12 = vadd.f32 %v6336_v46, %v3065_v4  ;;  %v3063_v61 = vadd.f32 %v2846_v33, %v9996_v42 }
 0x1fa   :  { %v6273_v26 = vpop.f32.mrf.mxu1  ;;  %6436 = vmatmul.mubr.msk.bf16.gmra.mxu1 %vm993_vm3, %v9997_v40  ;;  %v6340_v45 = vpop.f32.mrf.mxu0 }
 0x1fb   :  { %9995 = vst [vmem:[#allocation98_spill] sm:$0xff] %v8851_v12  ;;  %v8856_v25 = vadd.f32 %v3264_v9, %v3063_v61  ;;  %v3068_v13 = vadd.f32 %v6273_v26, %v8501_v32  ;;  %6439 = vmatprep.mubr.msk.bf16.mxu1 %vm993_vm3, %v9998_v52 }
 0x1fc   :  { %v2859_v54 = vpop.f32.mrf.mxu1  ;;  %v3280_v4 = vpop.f32.mrf.mxu0 }
 0x1fd   :  { %v8861_v6 = vadd.f32 %v6339_v0, %v3068_v13  ;;  %v3066_v5 = vadd.f32 %v2859_v54, %v8509_v1  ;;  %v10000_v0 = vld [vmem:[#allocation121_spill] sm:$0xff]  ;;  %v10001_v13 = vld [vmem:[#allocation88_spill] sm:$0xff] }
 0x1fe   :  { %v6274_v46 = vpop.f32.mrf.mxu1  ;;  %v6343_v12 = vpop.f32.mrf.mxu0  ;;  %6506 = vmatmul.mubr.msk.bf16.gmra.mxu0 %vm993_vm3, %v8164_v38  ;;  %v3543_v38 = vrot.slane %v8478_v23, 5 }
 0x1ff   :  { %v8864_v33 = vadd.f32 %v3277_v36, %v3066_v5  ;;  %v3069_v42 = vadd.f32 %v6274_v46, %v8517_v50  ;;  %6509 = vmatprep.mubr.msk.bf16.mxu0 %vm993_vm3, %v8172_v15  ;;  %v10003_v5 = vld [vmem:[#allocation32_spill] sm:$0xff] }
 0x200   :  { %v2862_v32 = vpop.f32.mrf.mxu1  ;;  %v3293_v26 = vpop.f32.mrf.mxu0 }
 0x201   :  { %v8871_v9 = vadd.f32 %v6340_v45, %v3069_v42  ;;  %v3067_v61 = vadd.f32 %v2862_v32, %v10000_v0  ;;  %v5614_v0 = vrot.slane %v8473_v63, 9  ;;  %v8902_v63 = vld [vmem:[%s9535_s0 + $0x1a8] sm:$0xf] }
 0x202   :  { %v6277_v1 = vpop.f32.mrf.mxu1  ;;  %6440 = vmatmul.mubr.msk.bf16.gmra.mxu1 %vm993_vm3, %v10001_v13  ;;  %v6344_v54 = vpop.f32.mrf.mxu0 }
 0x203   :  { %9999 = vst [vmem:[#allocation100_spill] sm:$0xff] %v8871_v9  ;;  %v8876_v36 = vadd.f32 %v3280_v4, %v3067_v61  ;;  %v3072_v50 = vadd.f32 %v6277_v1, %v8527_v27  ;;  %6443 = vmatprep.mubr.msk.bf16.mxu1 %vm993_vm3, %v10003_v5  ;;  %v3545_v61 = vrot.slane %v3543_v38, 4  ;;  %v10004_v1 = vld [vmem:[#allocation120_spill] sm:$0xff] }
 0x204   :  { %v2875_v15 = vpop.f32.mrf.mxu1  ;;  %v3296_v42 = vpop.f32.mrf.mxu0  ;;  %v3546_v23 = vrot.slane %v10004_v1, 5  ;;  %v10008_v1 = vld [vmem:[#allocation40_spill] sm:$0xff] }
 0x205   :  { %10002 = vst [vmem:[#allocation101_spill] sm:$0xff] %v8876_v36  ;;  %v8882_v45 = vadd.f32 %v6343_v12, %v3072_v50  ;;  %v3070_v46 = vadd.f32 %v2875_v15, %v8530_v20  ;;  %v8897_v20 = vld [vmem:[%s9535_s0 + $0x1a4] sm:$0xf]  ;;  %v10006_v50 = vld [vmem:[#allocation35_spill] sm:$0xff] }
 0x206   :  { %v6278_v32 = vpop.f32.mrf.mxu1  ;;  %v6347_v27 = vpop.f32.mrf.mxu0  ;;  %6510 = vmatmul.mubr.msk.bf16.gmra.mxu0 %vm993_vm3, %v8194_v41 }
 0x207   :  { %v8886_v9 = vadd.f32 %v3293_v26, %v3070_v46  ;;  %v3073_v4 = vadd.f32 %v6278_v32, %v8541_v21  ;;  %6513 = vmatprep.mubr.msk.bf16.mxu0 %vm993_vm3, %v8558_v30  ;;  %v3544_v30 = vsel %vm7516_vm7, %v5614_v0, %v3543_v38 }
 0x208   :  { %v2878_v36 = vpop.f32.mrf.mxu1  ;;  %v3309_v12 = vpop.f32.mrf.mxu0 }
 0x209   :  { %v8904_v21 = vadd.f32 %v6344_v54, %v3073_v4  ;;  %v3071_v41 = vadd.f32 %v2878_v36, %v8546_v60  ;;  %v3547_v54 = vsel %vm7516_vm7, %v3545_v61, %v3546_v23  ;;  %v5652_v60 = vcombine.low %v8897_v20, %v8902_v63 }
 0x20a   :  { %v6281_v26 = vpop.f32.mrf.mxu1  ;;  %6444 = vmatmul.mubr.msk.bf16.gmra.mxu1 %vm993_vm3, %v10006_v50  ;;  %v6348_v32 = vpop.f32.mrf.mxu0  ;;  %v8923_v0 = vcombine.low %v3544_v30, %v3547_v54  ;;  %v10013_v30 = vld [vmem:[#allocation5_spill] sm:$0xff] }
 0x20b   :  { %10005 = vst [vmem:[#allocation99_spill] sm:$0xff] %v8904_v21  ;;  %v8911_v15 = vadd.f32 %v3296_v42, %v3071_v41  ;;  %v3076_v46 = vadd.f32 %v6281_v26, %v8553_v10  ;;  %6447 = vmatprep.mubr.msk.bf16.mxu1 %vm993_vm3, %v10008_v1 }
 0x20c   :  { %v2891_v36 = vpop.f32.mrf.mxu1  ;;  %v3312_v38 = vpop.f32.mrf.mxu0 }
 0x20d   :  { %10007 = vst [vmem:[#allocation102_spill] sm:$0xff] %v8911_v15  ;;  %v8920_v4 = vadd.f32 %v6347_v27, %v3076_v46  ;;  %v3074_v21 = vadd.f32 %v2891_v36, %v8560_v22  ;;  %v10077_v15 = vld [vmem:[#allocation63_spill] sm:$0xff] }
 0x20e   :  { %v6282_v42 = vpop.f32.mrf.mxu1  ;;  %v6351_v26 = vpop.f32.mrf.mxu0  ;;  %6514 = vmatmul.mubr.msk.bf16.gmra.mxu0 %vm993_vm3, %v5652_v60 }
 0x20f   :  { %10009 = vst [vmem:[#allocation58_spill] sm:$0xff] %v8920_v4  ;;  %v8925_v10 = vadd.f32 %v3309_v12, %v3074_v21  ;;  %v3077_v41 = vadd.f32 %v6282_v42, %v8567_v62  ;;  %6585 = vmatprep.mubr.msk.bf16.mxu0 %vm993_vm3, %v9883_v7 }
 0x210   :  { %v2894_v61 = vpop.f32.mrf.mxu1  ;;  %v3325_v22 = vpop.f32.mrf.mxu0 }
 0x211   :  { %10010 = vst [vmem:[#allocation103_spill] sm:$0xff] %v8925_v10  ;;  %v8931_v23 = vadd.f32 %v6348_v32, %v3077_v41  ;;  %v3075_v27 = vadd.f32 %v2894_v61, %v8572_v34  ;;  %v10017_v61 = vld [vmem:[#allocation47_spill] sm:$0xff] }
 0x212   :  { %v6285_v46 = vpop.f32.mrf.mxu1  ;;  %6448 = vmatmul.mubr.msk.bf16.gmra.mxu1 %vm993_vm3, %v8923_v0  ;;  %v6352_v12 = vpop.f32.mrf.mxu0 }
 0x213   :  { %10011 = vst [vmem:[#allocation110_spill] sm:$0xff] %v8931_v23  ;;  %v8936_v21 = vadd.f32 %v3312_v38, %v3075_v27  ;;  %v3080_v62 = vadd.f32 %v6285_v46, %v8577_v31  ;;  %6519 = vmatprep.mubr.msk.bf16.mxu1 %vm993_vm3, %v10013_v30  ;;  %v10016_v38 = vld [vmem:[#allocation46_spill] sm:$0xff]  ;;  %v10020_v30 = vld [vmem:[#allocation7_spill] sm:$0xff] }
 0x214   :  { %v2907_v54 = vpop.f32.mrf.mxu1  ;;  %v3328_v32 = vpop.f32.mrf.mxu0 }
 0x215   :  { %10012 = vst [vmem:[#allocation104_spill] sm:$0xff] %v8936_v21  ;;  %v8941_v60 = vadd.f32 %v6351_v26, %v3080_v62  ;;  %v3078_v7 = vadd.f32 %v2907_v54, %v8582_v19  ;;  %v10019_v26 = vld [vmem:[#allocation48_spill] sm:$0xff] }
 0x216   :  { %v6286_v34 = vpop.f32.mrf.mxu1  ;;  %v6355_v41 = vpop.f32.mrf.mxu0  ;;  %6586 = vmatmul.mubr.msk.bf16.vlgmr.msra.gmra.mxu0 %vm993_vm3, %v10016_v38 }
 0x217   :  { %10014 = vst [vmem:[#allocation42_spill] sm:$0xff] %v8941_v60  ;;  %v8944_v36 = vadd.f32 %v3325_v22, %v3078_v7  ;;  %v3081_v42 = vadd.f32 %v6286_v34, %v8591_v2  ;;  %6589 = vmatprep.mubr.msk.bf16.mxu0 %vm993_vm3, %v10017_v61  ;;  %v10022_v2 = vld [vmem:[#allocation92_spill] sm:$0xff]  ;;  %v10023_v34 = vld [vmem:[#allocation9_spill] sm:$0xff] }
 0x218   :  { %v2910_v31 = vpop.f32.mrf.mxu1  ;;  %v3341_v62 = vpop.f32.mrf.mxu0 }
 0x219   :  { %10015 = vst [vmem:[#allocation105_spill] sm:$0xff] %v8944_v36  ;;  %v8951_v27 = vadd.f32 %v6352_v12, %v3081_v42  ;;  %v3079_v46 = vadd.f32 %v2910_v31, %v10019_v26  ;;  %v10025_v12 = vld [vmem:[#allocation49_spill] sm:$0xff] }
 0x21a   :  { %v6289_v19 = vpop.f32.mrf.mxu1  ;;  %6520 = vmatmul.mubr.msk.bf16.vlgmr.msra.gmra.mxu1 %vm993_vm3, %v10020_v30  ;;  %v6356_v7 = vpop.f32.mrf.mxu0 }
 0x21b   :  { %10018 = vst [vmem:[#allocation65_spill] sm:$0xff] %v8951_v27  ;;  %v8956_v22 = vadd.f32 %v3328_v32, %v3079_v46  ;;  %v3084_v54 = vadd.f32 %v6289_v19, %v10022_v2  ;;  %6523 = vmatprep.mubr.msk.bf16.mxu1 %vm993_vm3, %v10023_v34  ;;  %v10027_v27 = vld [vmem:[#allocation45_spill] sm:$0xff]  ;;  %v10028_v32 = vld [vmem:[#allocation51_spill] sm:$0xff] }
 0x21c   :  { %v2923_v38 = vpop.f32.mrf.mxu1  ;;  %v3344_v61 = vpop.f32.mrf.mxu0  ;;  %v10029_v19 = vld [vmem:[#allocation53_spill] sm:$0xff] }
 0x21d   :  { %10021 = vst [vmem:[#allocation106_spill] sm:$0xff] %v8956_v22  ;;  %v8961_v36 = vadd.f32 %v6355_v41, %v3084_v54  ;;  %v3082_v42 = vadd.f32 %v2923_v38, %v10025_v12  ;;  %v10031_v41 = vld [vmem:[#allocation77_spill] sm:$0xff]  ;;  %v10032_v12 = vld [vmem:[#allocation11_spill] sm:$0xff] }
 0x21e   :  { %v6290_v31 = vpop.f32.mrf.mxu1  ;;  %v6359_v30 = vpop.f32.mrf.mxu0  ;;  %6590 = vmatmul.mubr.msk.bf16.gmra.mxu0 %vm993_vm3, %v10028_v32 }
 0x21f   :  { %10024 = vst [vmem:[#allocation107_spill] sm:$0xff] %v8961_v36  ;;  %v8964_v26 = vadd.f32 %v3341_v62, %v3082_v42  ;;  %v3085_v60 = vadd.f32 %v6290_v31, %v10027_v27  ;;  %6593 = vmatprep.mubr.msk.bf16.mxu0 %vm993_vm3, %v10029_v19  ;;  %v10034_v27 = vld [vmem:[#allocation80_spill] sm:$0xff] }
 0x220   :  { %v2926_v46 = vpop.f32.mrf.mxu1  ;;  %v3357_v34 = vpop.f32.mrf.mxu0 }
 0x221   :  { %10026 = vst [vmem:[#allocation109_spill] sm:$0xff] %v8964_v26  ;;  %v8971_v2 = vadd.f32 %v6356_v7, %v3085_v60  ;;  %v3083_v54 = vadd.f32 %v2926_v46, %v10031_v41  ;;  %v10035_v26 = vld [vmem:[#allocation13_spill] sm:$0xff] }
 0x222   :  { %v6293_v38 = vpop.f32.mrf.mxu1  ;;  %6524 = vmatmul.mubr.msk.bf16.gmra.mxu1 %vm993_vm3, %v10032_v12  ;;  %v6360_v31 = vpop.f32.mrf.mxu0  ;;  %v10037_v60 = vld [vmem:[#allocation81_spill] sm:$0xff] }
 0x223   :  { %10030 = vst [vmem:[#allocation4_spill] sm:$0xff] %v8971_v2  ;;  %v8976_v62 = vadd.f32 %v3344_v61, %v3083_v54  ;;  %v3088_v42 = vadd.f32 %v6293_v38, %v10034_v27  ;;  %6527 = vmatprep.mubr.msk.bf16.mxu1 %vm993_vm3, %v10035_v26  ;;  %v10039_v2 = vld [vmem:[#allocation50_spill] sm:$0xff]  ;;  %v10040_v61 = vld [vmem:[#allocation59_spill] sm:$0xff]  ;;  %v10041_v38 = vld [vmem:[#allocation61_spill] sm:$0xff] }
 0x224   :  { %v2939_v32 = vpop.f32.mrf.mxu1  ;;  %v3360_v19 = vpop.f32.mrf.mxu0 }
 0x225   :  { %10033 = vst [vmem:[#allocation72_spill] sm:$0xff] %v8976_v62  ;;  %v8981_v36 = vadd.f32 %v6359_v30, %v3088_v42  ;;  %v3086_v7 = vadd.f32 %v2939_v32, %v10037_v60  ;;  %v10043_v30 = vld [vmem:[#allocation52_spill] sm:$0xff]  ;;  %v10044_v60 = vld [vmem:[#allocation15_spill] sm:$0xff] }
 0x226   :  { %v6294_v46 = vpop.f32.mrf.mxu1  ;;  %v6363_v12 = vpop.f32.mrf.mxu0  ;;  %6594 = vmatmul.mubr.msk.bf16.gmra.mxu0 %vm993_vm3, %v10040_v61 }
 0x227   :  { %10036 = vst [vmem:[#allocation111_spill] sm:$0xff] %v8981_v36  ;;  %v8984_v41 = vadd.f32 %v3357_v34, %v3086_v7  ;;  %v3089_v22 = vadd.f32 %v6294_v46, %v10039_v2  ;;  %6597 = vmatprep.mubr.msk.bf16.mxu0 %vm993_vm3, %v10041_v38  ;;  %v10046_v2 = vld [vmem:[#allocation84_spill] sm:$0xff] }
 0x228   :  { %v2942_v54 = vpop.f32.mrf.mxu1  ;;  %v3373_v42 = vpop.f32.mrf.mxu0 }
 0x229   :  { %10038 = vst [vmem:[#allocation112_spill] sm:$0xff] %v8984_v41  ;;  %v8991_v26 = vadd.f32 %v6360_v31, %v3089_v22  ;;  %v3087_v27 = vadd.f32 %v2942_v54, %v10043_v30  ;;  %v10047_v41 = vld [vmem:[#allocation17_spill] sm:$0xff] }
 0x22a   :  { %v6297_v32 = vpop.f32.mrf.mxu1  ;;  %6528 = vmatmul.mubr.msk.bf16.gmra.mxu1 %vm993_vm3, %v10044_v60  ;;  %v6364_v46 = vpop.f32.mrf.mxu0  ;;  %v10049_v22 = vld [vmem:[#allocation85_spill] sm:$0xff] }
 0x22b   :  { %10042 = vst [vmem:[#allocation76_spill] sm:$0xff] %v8991_v26  ;;  %v8996_v34 = vadd.f32 %v3360_v19, %v3087_v27  ;;  %v3092_v7 = vadd.f32 %v6297_v32, %v10046_v2  ;;  %6531 = vmatprep.mubr.msk.bf16.mxu1 %vm993_vm3, %v10047_v41  ;;  %v10051_v26 = vld [vmem:[#allocation25_spill] sm:$0xff]  ;;  %v10052_v19 = vld [vmem:[#allocation66_spill] sm:$0xff]  ;;  %v10053_v32 = vld [vmem:[#allocation67_spill] sm:$0xff] }
 0x22c   :  { %v2955_v61 = vpop.f32.mrf.mxu1  ;;  %v3376_v38 = vpop.f32.mrf.mxu0 }
 0x22d   :  { %10045 = vst [vmem:[#allocation113_spill] sm:$0xff] %v8996_v34  ;;  %v9001_v36 = vadd.f32 %v6363_v12, %v3092_v7  ;;  %v3090_v31 = vadd.f32 %v2955_v61, %v10049_v22  ;;  %v10055_v12 = vld [vmem:[#allocation29_spill] sm:$0xff]  ;;  %v10056_v22 = vld [vmem:[#allocation19_spill] sm:$0xff] }
 0x22e   :  { %v6298_v54 = vpop.f32.mrf.mxu1  ;;  %v6367_v60 = vpop.f32.mrf.mxu0  ;;  %6598 = vmatmul.mubr.msk.bf16.gmra.mxu0 %vm993_vm3, %v10052_v19 }
 0x22f   :  { %10048 = vst [vmem:[#allocation73_spill] sm:$0xff] %v9001_v36  ;;  %v9004_v30 = vadd.f32 %v3373_v42, %v3090_v31  ;;  %v3093_v62 = vadd.f32 %v6298_v54, %v10051_v26  ;;  %6601 = vmatprep.mubr.msk.bf16.mxu0 %vm993_vm3, %v10053_v32  ;;  %v10058_v26 = vld [vmem:[#allocation62_spill] sm:$0xff] }
 0x230   :  { %v2958_v27 = vpop.f32.mrf.mxu1  ;;  %v3389_v7 = vpop.f32.mrf.mxu0 }
 0x231   :  { %10050 = vst [vmem:[#allocation74_spill] sm:$0xff] %v9004_v30  ;;  %v9011_v41 = vadd.f32 %v6364_v46, %v3093_v62  ;;  %v3091_v2 = vadd.f32 %v2958_v27, %v10055_v12  ;;  %v10059_v30 = vld [vmem:[#allocation21_spill] sm:$0xff]  ;;  %v10061_v62 = vld [vmem:[#allocation64_spill] sm:$0xff] }
 0x232   :  { %v6301_v61 = vpop.f32.mrf.mxu1  ;;  %6532 = vmatmul.mubr.msk.bf16.gmra.mxu1 %vm993_vm3, %v10056_v22  ;;  %v6368_v54 = vpop.f32.mrf.mxu0 }
 0x233   :  { %10054 = vst [vmem:[#allocation75_spill] sm:$0xff] %v9011_v41  ;;  %v9016_v42 = vadd.f32 %v3376_v38, %v3091_v2  ;;  %v3096_v31 = vadd.f32 %v6301_v61, %v10058_v26  ;;  %6535 = vmatprep.mubr.msk.bf16.mxu1 %vm993_vm3, %v10059_v30  ;;  %v10063_v41 = vld [vmem:[#allocation27_spill] sm:$0xff]  ;;  %v10064_v38 = vld [vmem:[#allocation70_spill] sm:$0xff]  ;;  %v10065_v61 = vld [vmem:[#allocation57_spill] sm:$0xff] }
 0x234   :  { %v2971_v19 = vpop.f32.mrf.mxu1  ;;  %v3392_v32 = vpop.f32.mrf.mxu0 }
 0x235   :  { %10057 = vst [vmem:[#allocation78_spill] sm:$0xff] %v9016_v42  ;;  %v9021_v36 = vadd.f32 %v6367_v60, %v3096_v31  ;;  %v3094_v46 = vadd.f32 %v2971_v19, %v10061_v62  ;;  %v10067_v60 = vld [vmem:[#allocation30_spill] sm:$0xff]  ;;  %v4293_v19 = vshrl.u32 %v8717_v17, 16 }
 0x236   :  { %v6302_v27 = vpop.f32.mrf.mxu1  ;;  %v6371_v22 = vpop.f32.mrf.mxu0  ;;  %6602 = vmatmul.mubr.msk.bf16.gmra.mxu0 %vm993_vm3, %v10064_v38  ;;  %v10070_v38 = vld [vmem:[#allocation38_spill] sm:$0xff] }
 0x237   :  { %10060 = vst [vmem:[#allocation79_spill] sm:$0xff] %v9021_v36  ;;  %v9024_v12 = vadd.f32 %v3389_v7, %v3094_v46  ;;  %v3097_v34 = vadd.f32 %v6302_v27, %v10063_v41  ;;  %6605 = vmatprep.mubr.msk.bf16.mxu0 %vm993_vm3, %v10065_v61  ;;  %v4296_v7 = vshll.u32 %v8717_v17, 16  ;;  %v10068_v46 = vld [vmem:[#allocation24_spill] sm:$0xff]  ;;  %v4306_v41 = vshrl.u32 %v8722_v51, 16 }
 0x238   :  { %v2974_v2 = vpop.f32.mrf.mxu1  ;;  %v3405_v31 = vpop.f32.mrf.mxu0 }
 0x239   :  { %10062 = vst [vmem:[#allocation82_spill] sm:$0xff] %v9024_v12  ;;  %v9031_v30 = vadd.f32 %v6368_v54, %v3097_v34  ;;  %v3095_v26 = vadd.f32 %v2974_v2, %v10067_v60  ;;  %v10071_v34 = vld [vmem:[#allocation28_spill] sm:$0xff]  ;;  %v4302_v54 = vshll.u32 %v8722_v51, 16  ;;  %v4298_v23 = vrot.slane %v4296_v7, 5  ;;  %v10080_v7 = vld [vmem:[#allocation33_spill] sm:$0xff] }
 0x23a   :  { %v6305_v62 = vpop.f32.mrf.mxu1  ;;  %6536 = vmatmul.mubr.msk.bf16.gmra.mxu1 %vm993_vm3, %v10068_v46  ;;  %v6372_v61 = vpop.f32.mrf.mxu0  ;;  %v4295_v46 = vrot.slane %v4293_v19, 4 }
 0x23b   :  { %10066 = vst [vmem:[#allocation114_spill] sm:$0xff] %v9031_v30  ;;  %v9039_v27 = vadd.f32 %v3392_v32, %v3095_v26  ;;  %v3100_v12 = vadd.f32 %v6305_v62, %v10070_v38  ;;  %6539 = vmatprep.mubr.msk.bf16.mxu1 %vm993_vm3, %v10071_v34  ;;  %v10073_v30 = vld [vmem:[#allocation37_spill] sm:$0xff]  ;;  %v10075_v32 = vld [vmem:[#allocation68_spill] sm:$0xff]  ;;  %v4304_v34 = vrot.slane %v4302_v54, 5 }
 0x23c   :  { %v2987_v2 = vpop.f32.mrf.mxu1  ;;  %v3408_v42 = vpop.f32.mrf.mxu0  ;;  %v10076_v38 = vld [vmem:[#allocation60_spill] sm:$0xff] }
 0x23d   :  { %10069 = vst [vmem:[#allocation23_spill] sm:$0xff] %v9039_v27  ;;  %v9045_v60 = vadd.f32 %v6371_v22, %v3100_v12  ;;  %v3098_v36 = vadd.f32 %v2987_v2, %v10073_v30  ;;  %v4308_v27 = vrot.slane %v4306_v41, 4  ;;  %v68_v12 = vld [vmem:[%s9535_s0 + $0xd4] sm:$0x1]  ;;  %v4714_v22 = vrot.slane %v8722_v51, 5  ;;  %v10079_v30 = vld [vmem:[#allocation69_spill] sm:$0xff] }
 0x23e   :  { %v6306_v21 = vpop.f32.mrf.mxu1  ;;  %v6375_v62 = vpop.f32.mrf.mxu0  ;;  %6606 = vmatmul.mubr.msk.bf16.gmra.mxu0 %vm993_vm3, %v10076_v38  ;;  %v4299_v41 = vor.u32 %v4298_v23, %v4295_v46  ;;  %v10082_v2 = vld [vmem:[#allocation89_spill] sm:$0xff]  ;;  %v10083_v38 = vld [vmem:[#allocation39_spill] sm:$0xff]  ;;  %v4312_v51 = vshll.u32 %v68_v12, 16 }
 0x23f   :  { %10072 = vst [vmem:[#allocation115_spill] sm:$0xff] %v9045_v60  ;;  %v9048_v10 = vadd.f32 %v3405_v31, %v3098_v36  ;;  %v3101_v26 = vadd.f32 %v6306_v21, %v10075_v32  ;;  %6609 = vmatprep.mubr.msk.bf16.mxu0 %vm993_vm3, %v10077_v15  ;;  %v10084_v60 = vld [vmem:[#allocation3_spill] sm:$0xff] }
 0x240   :  { %v2990_v4 = vpop.f32.mrf.mxu1  ;;  %v3421_v31 = vpop.f32.mrf.mxu0  ;;  %v4300_v46 = vrot.slane %v4299_v41, 4 }
 0x241   :  { %10074 = vst [vmem:[#allocation116_spill] sm:$0xff] %v9048_v10  ;;  %v9059_v36 = vadd.f32 %v6372_v61, %v3101_v26  ;;  %v3099_v21 = vadd.f32 %v2990_v4, %v10079_v30  ;;  %v4309_v10 = vor.u32 %v4308_v27, %v4304_v34  ;;  %v5720_v26 = vrot.slane %v8717_v17, 9 }
 0x242   :  { %v6309_v19 = vpop.f32.mrf.mxu1  ;;  %6540 = vmatmul.mubr.msk.bf16.gmra.mxu1 %vm993_vm3, %v10080_v7  ;;  %v6376_v32 = vpop.f32.mrf.mxu0  ;;  %v4716_v4 = vrot.slane %v4714_v22, 4  ;;  %v4717_v30 = vrot.slane %v68_v12, 5 }
 0x243   :  { %10078 = vst [vmem:[#allocation86_spill] sm:$0xff] %v9059_v36  ;;  %v9064_v54 = vadd.f32 %v3408_v42, %v3099_v21  ;;  %v3104_v15 = vadd.f32 %v6309_v19, %v10082_v2  ;;  %6543 = vmatprep.mubr.msk.bf16.mxu1 %vm993_vm3, %v10083_v38  ;;  %v10085_v19 = vld [vmem:[#allocation90_spill] sm:$0xff]  ;;  %v4310_v27 = vrot.slane %v4309_v10, 4  ;;  %v4314_v38 = vrot.slane %v4312_v51, 5 }
 0x244   :  { %v3003_v61 = vpop.f32.mrf.mxu1  ;;  %v3424_v23 = vpop.f32.mrf.mxu0  ;;  %v4305_v10 = vsel %vm6804_vm4, %v4300_v46, %v4304_v34  ;;  %v10092_v46 = vld [vmem:[#allocation93_spill] sm:$0xff] }
 0x245   :  { %10081 = vst [vmem:[#allocation117_spill] sm:$0xff] %v9064_v54  ;;  %v9070_v36 = vadd.f32 %v6375_v62, %v3104_v15  ;;  %v3102_v7 = vadd.f32 %v3003_v61, %v10084_v60  ;;  %v4715_v60 = vsel %vm7516_vm7, %v5720_v26, %v4714_v22  ;;  %v4718_v62 = vsel %vm7516_vm7, %v4716_v4, %v4717_v30  ;;  %v10090_v26 = vld [vmem:[#allocation108_spill] sm:$0xff] }
 0x246   :  { %v6310_v42 = vpop.f32.mrf.mxu1  ;;  %v6379_v54 = vpop.f32.mrf.mxu0  ;;  %6610 = vmatmul.mubr.msk.bf16.gmra.mxu0 %vm993_vm3, %v9962_v18  ;;  %v5723_v4 = vcombine.low %v4715_v60, %v4718_v62  ;;  %v10123_v18 = vld [vmem:[#allocation104_spill] sm:$0xff] }
 0x247   :  { %v9073_v21 = vadd.f32 %v3421_v31, %v3102_v7  ;;  %v3105_v2 = vadd.f32 %v6310_v42, %v10085_v19  ;;  %6613 = vmatprep.mubr.msk.bf16.mxu0 %vm993_vm3, %v8743_v8  ;;  %v10086_v31 = vld [vmem:[#allocation91_spill] sm:$0xff] }
 0x248   :  { %v3006_v17 = vpop.f32.mrf.mxu1  ;;  %v3437_v15 = vpop.f32.mrf.mxu0  ;;  %v10087_v7 = vld [vmem:[#allocation43_spill] sm:$0xff] }
 0x249   :  { %v9084_v12 = vadd.f32 %v6376_v32, %v3105_v2  ;;  %v3103_v41 = vadd.f32 %v3006_v17, %v10086_v31  ;;  %v10089_v8 = vld [vmem:[#allocation71_spill] sm:$0xff]  ;;  %v4315_v32 = vsel %vm6804_vm4, %v4310_v27, %v4314_v38  ;;  %v10091_v2 = vld [vmem:[#allocation54_spill] sm:$0xff] }
 0x24a   :  { %v6313_v61 = vpop.f32.mrf.mxu1  ;;  %6544 = vmatmul.mubr.msk.bf16.gmra.mxu1 %vm993_vm3, %v10087_v7  ;;  %v6380_v22 = vpop.f32.mrf.mxu0  ;;  %v5686_v34 = vcombine.low %v4305_v10, %v4315_v32 }
 0x24b   :  { %v9091_v51 = vadd.f32 %v3424_v23, %v3103_v41  ;;  %v3108_v42 = vadd.f32 %v6313_v61, %v10089_v8  ;;  %6547 = vmatprep.mubr.msk.bf16.mxu1 %vm993_vm3, %v10090_v26 }
 0x24c   :  { %v3019_v30 = vpop.f32.mrf.mxu1  ;;  %v3440_v31 = vpop.f32.mrf.mxu0 }
 0x24d   :  { %v9098_v19 = vadd.f32 %v6379_v54, %v3108_v42  ;;  %v3106_v17 = vadd.f32 %v3019_v30, %v10091_v2  ;;  %v10093_v42 = vld [vmem:[#allocation6_spill] sm:$0xff] }
 0x24e   :  { %v6314_v7 = vpop.f32.mrf.mxu1  ;;  %v6383_v61 = vpop.f32.mrf.mxu0  ;;  %6614 = vmatmul.mubr.msk.bf16.gmra.mxu0 %vm993_vm3, %v5723_v4  ;;  %v10094_v30 = vld [vmem:[#allocation94_spill] sm:$0xff] }
 0x24f   :  { %v9101_v23 = vadd.f32 %v3437_v15, %v3106_v17  ;;  %v3109_v41 = vadd.f32 %v6314_v7, %v10092_v46  ;;  %6617 = vmatprep.mubr.msk.bf16.mxu0 %vm993_vm3, %v9976_v48  ;;  %v10095_v46 = vld [vmem:[#allocation8_spill] sm:$0xff] }
 0x250   :  { %v3022_v8 = vpop.f32.mrf.mxu1  ;;  %v3453_v38 = vpop.f32.mrf.mxu0 }
 0x251   :  { %v9107_v27 = vadd.f32 %v6380_v22, %v3109_v41  ;;  %v3107_v54 = vadd.f32 %v3022_v8, %v8756_v43 }
 0x252   :  { %v6317_v60 = vpop.f32.mrf.mxu1  ;;  %6548 = vmatmul.mubr.msk.bf16.gmra.mxu1 %vm993_vm3, %v5686_v34  ;;  %v6384_v10 = vpop.f32.mrf.mxu0 }
 0x253   :  { %v9111_v62 = vadd.f32 %v3440_v31, %v3107_v54  ;;  %v3112_v15 = vadd.f32 %v6317_v60, %v8761_v58  ;;  %6551 = vmatprep.mubr.msk.bf16.mxu1 %vm993_vm3, %v10093_v42  ;;  %v10096_v54 = vld [vmem:[#allocation10_spill] sm:$0xff] }
 0x254   :  { %v3035_v26 = vpop.f32.mrf.mxu1  ;;  %v3456_v22 = vpop.f32.mrf.mxu0 }
 0x255   :  { %v9116_v32 = vadd.f32 %v6383_v61, %v3112_v15  ;;  %v3110_v48 = vadd.f32 %v3035_v26, %v8764_v28 }
 0x256   :  { %v6318_v4 = vpop.f32.mrf.mxu1  ;;  %v6455_v17 = vpop.f32.mrf.mxu0  ;;  %6618 = vmatmul.mubr.msk.bf16.gmra.mxu0 %vm993_vm3, %v9977_v37 }
 0x257   :  { %v9119_v43 = vadd.f32 %v3453_v38, %v3110_v48  ;;  %v3113_v2 = vadd.f32 %v6318_v4, %v10094_v30  ;;  %6621 = vmatprep.mubr.msk.bf16.mxu0 %vm993_vm3, %v9978_v44  ;;  %v10097_v4 = vld [vmem:[#allocation12_spill] sm:$0xff] }
 0x258   :  { %v3038_v58 = vpop.f32.mrf.mxu1  ;;  %v3973_v34 = vpop.f32.mrf.mxu0 }
 0x259   :  { %v9126_v31 = vadd.f32 %v6384_v10, %v3113_v2  ;;  %v3111_v7 = vadd.f32 %v3038_v58, %v8776_v16 }
 0x25a   :  { %v6389_v28 = vpop.f32.mrf.mxu1  ;;  %6552 = vmatmul.mubr.msk.bf16.gmra.mxu1 %vm993_vm3, %v10095_v46  ;;  %v6456_v8 = vpop.f32.mrf.mxu0 }
 0x25b   :  { %v9131_v41 = vadd.f32 %v3456_v22, %v3111_v7  ;;  %v3856_v61 = vadd.f32 %v6389_v28, %v8781_v59  ;;  %6555 = vmatprep.mubr.msk.bf16.mxu1 %vm993_vm3, %v10096_v54  ;;  %v10099_v28 = vld [vmem:[#allocation95_spill] sm:$0xff] }
 0x25c   :  { %v3599_v37 = vpop.f32.mrf.mxu1  ;;  %v3976_v60 = vpop.f32.mrf.mxu0 }
 0x25d   :  { %v9136_v38 = vadd.f32 %v6455_v17, %v3856_v61  ;;  %v3854_v44 = vadd.f32 %v3599_v37, %v8784_v57  ;;  %v10098_v17 = vld [vmem:[#allocation14_spill] sm:$0xff]  ;;  %v10101_v37 = vld [vmem:[#allocation96_spill] sm:$0xff] }
 0x25e   :  { %v6390_v16 = vpop.f32.mrf.mxu1  ;;  %v6459_v42 = vpop.f32.mrf.mxu0  ;;  %6622 = vmatmul.mubr.msk.bf16.gmra.mxu0 %vm993_vm3, %v9979_v14 }
 0x25f   :  { %v9139_v15 = vadd.f32 %v3973_v34, %v3854_v44  ;;  %v3857_v10 = vadd.f32 %v6390_v16, %v8791_v47  ;;  %6625 = vmatprep.mubr.msk.bf16.mxu0 %vm993_vm3, %v9981_v39  ;;  %v10102_v16 = vld [vmem:[#allocation16_spill] sm:$0xff] }
 0x260   :  { %v3602_v59 = vpop.f32.mrf.mxu1  ;;  %v3989_v22 = vpop.f32.mrf.mxu0 }
 0x261   :  { %v9146_v26 = vadd.f32 %v6456_v8, %v3857_v10  ;;  %v3855_v48 = vadd.f32 %v3602_v59, %v8796_v3  ;;  %v10100_v8 = vld [vmem:[#allocation83_spill] sm:$0xff] }
 0x262   :  { %v6393_v57 = vpop.f32.mrf.mxu1  ;;  %6556 = vmatmul.mubr.msk.bf16.gmra.mxu1 %vm993_vm3, %v10097_v4  ;;  %v6460_v2 = vpop.f32.mrf.mxu0  ;;  %v10105_v4 = vld [vmem:[#allocation56_spill] sm:$0xff] }
 0x263   :  { %v9151_v30 = vadd.f32 %v3976_v60, %v3855_v48  ;;  %v3860_v47 = vadd.f32 %v6393_v57, %v8801_v24  ;;  %6559 = vmatprep.mubr.msk.bf16.mxu1 %vm993_vm3, %v10098_v17 }
 0x264   :  { %v3615_v14 = vpop.f32.mrf.mxu1  ;;  %v3992_v7 = vpop.f32.mrf.mxu0 }
 0x265   :  { %v9156_v58 = vadd.f32 %v6459_v42, %v3860_v47  ;;  %v3858_v39 = vadd.f32 %v3615_v14, %v8804_v55  ;;  %v10103_v42 = vld [vmem:[#allocation55_spill] sm:$0xff] }
 0x266   :  { %v6394_v3 = vpop.f32.mrf.mxu1  ;;  %v6463_v61 = vpop.f32.mrf.mxu0  ;;  %6626 = vmatmul.mubr.msk.bf16.gmra.mxu0 %vm993_vm3, %v9983_v56 }
 0x267   :  { %v9159_v34 = vadd.f32 %v3989_v22, %v3858_v39  ;;  %v3861_v46 = vadd.f32 %v6394_v3, %v10099_v28  ;;  %6629 = vmatprep.mubr.msk.bf16.mxu0 %vm993_vm3, %v10100_v8  ;;  %v10104_v22 = vld [vmem:[#allocation18_spill] sm:$0xff]  ;;  %v10106_v39 = vld [vmem:[#allocation97_spill] sm:$0xff] }
 0x268   :  { %v3618_v24 = vpop.f32.mrf.mxu1  ;;  %v4005_v60 = vpop.f32.mrf.mxu0 }
 0x269   :  { %v9166_v54 = vadd.f32 %v6460_v2, %v3861_v46  ;;  %v3859_v44 = vadd.f32 %v3618_v24, %v10101_v37  ;;  %v10107_v37 = vld [vmem:[#allocation20_spill] sm:$0xff] }
 0x26a   :  { %v6397_v55 = vpop.f32.mrf.mxu1  ;;  %6560 = vmatmul.mubr.msk.bf16.gmra.mxu1 %vm993_vm3, %v10102_v16  ;;  %v6464_v48 = vpop.f32.mrf.mxu0  ;;  %v10108_v16 = vld [vmem:[#allocation22_spill] sm:$0xff] }
 0x26b   :  { %v9171_v10 = vadd.f32 %v3992_v7, %v3859_v44  ;;  %v3864_v59 = vadd.f32 %v6397_v55, %v10103_v42  ;;  %6563 = vmatprep.mubr.msk.bf16.mxu1 %vm993_vm3, %v10104_v22  ;;  %v10109_v22 = vld [vmem:[#allocation98_spill] sm:$0xff] }
 0x26c   :  { %v3631_v56 = vpop.f32.mrf.mxu1  ;;  %v4008_v2 = vpop.f32.mrf.mxu0 }
 0x26d   :  { %v9176_v57 = vadd.f32 %v6463_v61, %v3864_v59  ;;  %v3862_v47 = vadd.f32 %v3631_v56, %v10105_v4 }
 0x26e   :  { %v6398_v17 = vpop.f32.mrf.mxu1  ;;  %v6467_v28 = vpop.f32.mrf.mxu0  ;;  %6630 = vmatmul.mubr.msk.bf16.gmra.mxu0 %vm993_vm3, %v9992_v35 }
 0x26f   :  { %v9179_v14 = vadd.f32 %v4005_v60, %v3862_v47  ;;  %v3865_v3 = vadd.f32 %v6398_v17, %v10106_v39  ;;  %6633 = vmatprep.mubr.msk.bf16.mxu0 %vm993_vm3, %v9997_v40  ;;  %v4320_v39 = vshll.u32 %v8897_v20, 16 }
 0x270   :  { %v3634_v7 = vpop.f32.mrf.mxu1  ;;  %v4021_v24 = vpop.f32.mrf.mxu0 }
 0x271   :  { %v9186_v46 = vadd.f32 %v6464_v48, %v3865_v3  ;;  %v3863_v61 = vadd.f32 %v3634_v7, %v8836_v29  ;;  %v4330_v7 = vshrl.u32 %v8902_v63, 16 }
 0x272   :  { %v6401_v8 = vpop.f32.mrf.mxu1  ;;  %6564 = vmatmul.mubr.msk.bf16.gmra.mxu1 %vm993_vm3, %v10107_v37  ;;  %v6468_v55 = vpop.f32.mrf.mxu0 }
 0x273   :  { %v9191_v44 = vadd.f32 %v4008_v2, %v3863_v61  ;;  %v3868_v60 = vadd.f32 %v6401_v8, %v8841_v11  ;;  %6567 = vmatprep.mubr.msk.bf16.mxu1 %vm993_vm3, %v10108_v16 }
 0x274   :  { %v3647_v35 = vpop.f32.mrf.mxu1  ;;  %v4024_v59 = vpop.f32.mrf.mxu0 }
 0x275   :  { %v9196_v42 = vadd.f32 %v6467_v28, %v3868_v60  ;;  %v3866_v40 = vadd.f32 %v3647_v35, %v8844_v53  ;;  %v4317_v53 = vshrl.u32 %v8897_v20, 16  ;;  %v10110_v28 = vld [vmem:[#allocation26_spill] sm:$0xff] }
 0x276   :  { %v6402_v29 = vpop.f32.mrf.mxu1  ;;  %v6471_v4 = vpop.f32.mrf.mxu0  ;;  %6634 = vmatmul.mubr.msk.bf16.gmra.mxu0 %vm993_vm3, %v9998_v52 }
 0x277   :  { %v9199_v48 = vadd.f32 %v4021_v24, %v3866_v40  ;;  %v3869_v56 = vadd.f32 %v6402_v29, %v10109_v22  ;;  %6637 = vmatprep.mubr.msk.bf16.mxu0 %vm993_vm3, %v10001_v13  ;;  %v10111_v24 = vld [vmem:[#allocation31_spill] sm:$0xff]  ;;  %v4319_v35 = vrot.slane %v4317_v53, 4  ;;  %v4322_v40 = vrot.slane %v4320_v39, 5  ;;  %v10113_v53 = vld [vmem:[#allocation101_spill] sm:$0xff] }
 0x278   :  { %v3650_v11 = vpop.f32.mrf.mxu1  ;;  %v4037_v17 = vpop.f32.mrf.mxu0 }
 0x279   :  { %v9206_v47 = vadd.f32 %v6468_v55, %v3869_v56  ;;  %v3867_v2 = vadd.f32 %v3650_v11, %v8856_v25  ;;  %v4326_v25 = vshll.u32 %v8902_v63, 16  ;;  %v4332_v11 = vrot.slane %v4330_v7, 4 }
 0x27a   :  { %v6405_v3 = vpop.f32.mrf.mxu1  ;;  %6568 = vmatmul.mubr.msk.bf16.gmra.mxu1 %vm993_vm3, %v10110_v28  ;;  %v6472_v13 = vpop.f32.mrf.mxu0 }
 0x27b   :  { %v9214_v52 = vadd.f32 %v4024_v59, %v3867_v2  ;;  %v3872_v61 = vadd.f32 %v6405_v3, %v8861_v6  ;;  %6571 = vmatprep.mubr.msk.bf16.mxu1 %vm993_vm3, %v10111_v24  ;;  %v10112_v59 = vld [vmem:[#allocation100_spill] sm:$0xff]  ;;  %v4328_v56 = vrot.slane %v4326_v25, 5  ;;  %v10115_v25 = vld [vmem:[#allocation41_spill] sm:$0xff] }
 0x27c   :  { %v3663_v8 = vpop.f32.mrf.mxu1  ;;  %v4040_v55 = vpop.f32.mrf.mxu0 }
 0x27d   :  { %v9220_v37 = vadd.f32 %v6471_v4, %v3872_v61  ;;  %v3870_v60 = vadd.f32 %v3663_v8, %v8864_v33  ;;  %v122_v33 = vld [vmem:[%s9535_s0 + $0x1ac] sm:$0x1]  ;;  %v4721_v4 = vrot.slane %v8902_v63, 5  ;;  %v10114_v61 = vld [vmem:[#allocation36_spill] sm:$0xff]  ;;  %v4333_v8 = vor.u32 %v4332_v11, %v4328_v56 }
 0x27e   :  { %v6406_v16 = vpop.f32.mrf.mxu1  ;;  %v6475_v6 = vpop.f32.mrf.mxu0  ;;  %6638 = vmatmul.mubr.msk.bf16.gmra.mxu0 %vm993_vm3, %v10003_v5  ;;  %v4323_v5 = vor.u32 %v4322_v40, %v4319_v35  ;;  %v4336_v63 = vshll.u32 %v122_v33, 16 }
 0x27f   :  { %v9223_v29 = vadd.f32 %v4037_v17, %v3870_v60  ;;  %v3873_v22 = vadd.f32 %v6406_v16, %v10112_v59  ;;  %6641 = vmatprep.mubr.msk.bf16.mxu0 %vm993_vm3, %v10006_v50  ;;  %v5721_v60 = vrot.slane %v8897_v20, 9  ;;  %v4723_v16 = vrot.slane %v4721_v4, 4 }
 0x280   :  { %v3666_v2 = vpop.f32.mrf.mxu1  ;;  %v4053_v3 = vpop.f32.mrf.mxu0  ;;  %v4724_v59 = vrot.slane %v122_v33, 5  ;;  %v4324_v40 = vrot.slane %v4323_v5, 4  ;;  %v4334_v11 = vrot.slane %v4333_v8, 4 }
 0x281   :  { %v9234_v17 = vadd.f32 %v6472_v13, %v3873_v22  ;;  %v3871_v39 = vadd.f32 %v3666_v2, %v10113_v53 }
 0x282   :  { %v6409_v28 = vpop.f32.mrf.mxu1  ;;  %6572 = vmatmul.mubr.msk.bf16.gmra.mxu1 %vm993_vm3, %v10114_v61  ;;  %v6476_v24 = vpop.f32.mrf.mxu0  ;;  %v4338_v61 = vrot.slane %v4336_v63, 5 }
 0x283   :  { %v9239_v7 = vadd.f32 %v4040_v55, %v3871_v39  ;;  %v3876_v50 = vadd.f32 %v6409_v28, %v8882_v45  ;;  %6575 = vmatprep.mubr.msk.bf16.mxu1 %vm993_vm3, %v10115_v25  ;;  %v10116_v45 = vld [vmem:[#allocation99_spill] sm:$0xff] }
 0x284   :  { %v3679_v13 = vpop.f32.mrf.mxu1  ;;  %v4056_v35 = vpop.f32.mrf.mxu0  ;;  %v4339_v49 = vsel %vm6804_vm4, %v4334_v11, %v4338_v61 }
 0x285   :  { %v9245_v22 = vadd.f32 %v6475_v6, %v3876_v50  ;;  %v3874_v2 = vadd.f32 %v3679_v13, %v8886_v9  ;;  %v4722_v9 = vsel %vm7516_vm7, %v5721_v60, %v4721_v4  ;;  %v4725_v6 = vsel %vm7516_vm7, %v4723_v16, %v4724_v59  ;;  %v10118_v13 = vld [vmem:[#allocation44_spill] sm:$0xff]  ;;  %v10120_v60 = vld [vmem:[#allocation122_spill] sm:$0xff] }
 0x286   :  { %v6410_v55 = vpop.f32.mrf.mxu1  ;;  %v6479_v28 = vpop.f32.mrf.mxu0  ;;  %6642 = vmatmul.mubr.msk.bf16.gmra.mxu0 %vm993_vm3, %v10008_v1  ;;  %v4329_v1 = vsel %vm6804_vm4, %v4324_v40, %v4328_v56  ;;  %v10122_v40 = vld [vmem:[#allocation110_spill] sm:$0xff] }
 0x287   :  { %v9248_v53 = vadd.f32 %v4053_v3, %v3874_v2  ;;  %v3877_v39 = vadd.f32 %v6410_v55, %v10116_v45  ;;  %6645 = vmatprep.mubr.msk.bf16.mxu0 %vm993_vm3, %v8923_v0  ;;  %v10117_v3 = vld [vmem:[#allocation102_spill] sm:$0xff]  ;;  %v10121_v2 = vld [vmem:[#allocation103_spill] sm:$0xff]  ;;  %v5687_v56 = vcombine.low %v4329_v1, %v4339_v49 }
 0x288   :  { %v3682_v20 = vpop.f32.mrf.mxu1  ;;  %v4069_v50 = vpop.f32.mrf.mxu0  ;;  %v10119_v0 = vld [vmem:[#allocation58_spill] sm:$0xff] }
 0x289   :  { %v9259_v33 = vadd.f32 %v6476_v24, %v3877_v39  ;;  %v3875_v5 = vadd.f32 %v3682_v20, %v10117_v3  ;;  %v5724_v24 = vcombine.low %v4722_v9, %v4725_v6  ;;  %v10124_v6 = vld [vmem:[#allocation42_spill] sm:$0xff] }
 0x28a   :  { %v6413_v25 = vpop.f32.mrf.mxu1  ;;  %6576 = vmatmul.mubr.msk.bf16.gmra.mxu1 %vm993_vm3, %v10118_v13  ;;  %v6480_v4 = vpop.f32.mrf.mxu0 }
 0x28b   :  { %v9266_v8 = vadd.f32 %v4056_v35, %v3875_v5  ;;  %v3880_v63 = vadd.f32 %v6413_v25, %v10119_v0  ;;  %6579 = vmatprep.mubr.msk.bf16.mxu1 %vm993_vm3, %v10120_v60 }
 0x28c   :  { %v3695_v16 = vpop.f32.mrf.mxu1  ;;  %v4072_v45 = vpop.f32.mrf.mxu0 }
 0x28d   :  { %v9273_v59 = vadd.f32 %v6479_v28, %v3880_v63  ;;  %v3878_v55 = vadd.f32 %v3695_v16, %v10121_v2  ;;  %v10125_v63 = vld [vmem:[#allocation105_spill] sm:$0xff] }
 0x28e   :  { %v6414_v39 = vpop.f32.mrf.mxu1  ;;  %v6483_v3 = vpop.f32.mrf.mxu0  ;;  %6646 = vmatmul.mubr.msk.bf16.gmra.mxu0 %vm993_vm3, %v5724_v24  ;;  %v10126_v16 = vld [vmem:[#allocation65_spill] sm:$0xff] }
 0x28f   :  { %v9276_v35 = vadd.f32 %v4069_v50, %v3878_v55  ;;  %v3881_v20 = vadd.f32 %v6414_v39, %v10122_v40 }
 0x290   :  { %v3698_v5 = vpop.f32.mrf.mxu1  ;;  %v4085_v61 = vpop.f32.mrf.mxu0 }
 0x291   :  { %v9280_v25 = vadd.f32 %v6480_v4, %v3881_v20  ;;  %v3879_v11 = vadd.f32 %v3698_v5, %v10123_v18 }
 0x292   :  { %v6417_v28 = vpop.f32.mrf.mxu1  ;;  %6580 = vmatmul.mubr.msk.bf16.gmra.mxu1 %vm993_vm3, %v5687_v56  ;;  %v6484_v50 = vpop.f32.mrf.mxu0 }
 0x293   :  { %v9284_v9 = vadd.f32 %v4072_v45, %v3879_v11  ;;  %v3884_v13 = vadd.f32 %v6417_v28, %v10124_v6  ;;  %v10127_v45 = vld [vmem:[#allocation106_spill] sm:$0xff] }
 0x294   :  { %v3711_v1 = vpop.f32.mrf.mxu1  ;;  %v4088_v49 = vpop.f32.mrf.mxu0 }
 0x295   :  { %v9287_v0 = vadd.f32 %v6483_v3, %v3884_v13  ;;  %v3882_v60 = vadd.f32 %v3711_v1, %v10125_v63  ;;  %v10129_v3 = vld [vmem:[#allocation107_spill] sm:$0xff] }
 0x296   :  { %v6418_v24 = vpop.f32.mrf.mxu1  ;;  %v6487_v55 = vpop.f32.mrf.mxu0 }
 0x297   :  { %v9290_v4 = vadd.f32 %v4085_v61, %v3882_v60  ;;  %v3885_v2 = vadd.f32 %v6418_v24, %v10126_v16  ;;  %v10131_v61 = vld [vmem:[#allocation109_spill] sm:$0xff] }
 0x298   :  { %v3714_v39 = vpop.f32.mrf.mxu1  ;;  %v4101_v20 = vpop.f32.mrf.mxu0 }
 0x299   :  { %v9293_v40 = vadd.f32 %v6484_v50, %v3885_v2  ;;  %v3883_v56 = vadd.f32 %v3714_v39, %v10127_v45  ;;  %v10133_v50 = vld [vmem:[#allocation4_spill] sm:$0xff] }
 0x29a   :  { %v6421_v5 = vpop.f32.mrf.mxu1  ;;  %v6488_v28 = vpop.f32.mrf.mxu0 }
 0x29b   :  { %v9296_v18 = vadd.f32 %v4088_v49, %v3883_v56  ;;  %v3888_v11 = vadd.f32 %v6421_v5, %v10129_v3  ;;  %v10135_v49 = vld [vmem:[#allocation72_spill] sm:$0xff] }
 0x29c   :  { %v3727_v6 = vpop.f32.mrf.mxu1  ;;  %v4104_v63 = vpop.f32.mrf.mxu0 }
 0x29d   :  { %10128 = vst [vmem:[#allocation118_spill] sm:$0xff] %v9296_v18  ;;  %v9299_v13 = vadd.f32 %v6487_v55, %v3888_v11  ;;  %v3886_v1 = vadd.f32 %v3727_v6, %v10131_v61  ;;  %v10137_v55 = vld [vmem:[#allocation111_spill] sm:$0xff] }
 0x29e   :  { %v6422_v60 = vpop.f32.mrf.mxu1  ;;  %v6491_v2 = vpop.f32.mrf.mxu0 }
 0x29f   :  { %10130 = vst [vmem:[#allocation119_spill] sm:$0xff] %v9299_v13  ;;  %v9302_v24 = vadd.f32 %v4101_v20, %v3886_v1  ;;  %v3889_v16 = vadd.f32 %v6422_v60, %v10133_v50  ;;  %v10139_v20 = vld [vmem:[#allocation112_spill] sm:$0xff] }
 0x2a0   :  { %v3730_v39 = vpop.f32.mrf.mxu1  ;;  %v4117_v18 = vpop.f32.mrf.mxu0 }
 0x2a1   :  { %10132 = vst [vmem:[#allocation87_spill] sm:$0xff] %v9302_v24  ;;  %v9305_v45 = vadd.f32 %v6488_v28, %v3889_v16  ;;  %v3887_v56 = vadd.f32 %v3730_v39, %v10135_v49  ;;  %v10141_v28 = vld [vmem:[#allocation76_spill] sm:$0xff] }
 0x2a2   :  { %v6425_v5 = vpop.f32.mrf.mxu1  ;;  %v6492_v13 = vpop.f32.mrf.mxu0 }
 0x2a3   :  { %10134 = vst [vmem:[#allocation34_spill] sm:$0xff] %v9305_v45  ;;  %v9308_v3 = vadd.f32 %v4104_v63, %v3887_v56  ;;  %v3892_v11 = vadd.f32 %v6425_v5, %v10137_v55  ;;  %v10143_v63 = vld [vmem:[#allocation113_spill] sm:$0xff] }
 0x2a4   :  { %v3743_v6 = vpop.f32.mrf.mxu1  ;;  %v4120_v24 = vpop.f32.mrf.mxu0 }
 0x2a5   :  { %10136 = vst [vmem:[#allocation121_spill] sm:$0xff] %v9308_v3  ;;  %v9311_v61 = vadd.f32 %v6491_v2, %v3892_v11  ;;  %v3890_v1 = vadd.f32 %v3743_v6, %v10139_v20  ;;  %v10145_v2 = vld [vmem:[#allocation73_spill] sm:$0xff] }
 0x2a6   :  { %v6426_v60 = vpop.f32.mrf.mxu1  ;;  %v6495_v45 = vpop.f32.mrf.mxu0 }
 0x2a7   :  { %10138 = vst [vmem:[#allocation88_spill] sm:$0xff] %v9311_v61  ;;  %v9314_v50 = vadd.f32 %v4117_v18, %v3890_v1  ;;  %v3893_v16 = vadd.f32 %v6426_v60, %v10141_v28  ;;  %v10147_v18 = vld [vmem:[#allocation74_spill] sm:$0xff] }
 0x2a8   :  { %v3746_v39 = vpop.f32.mrf.mxu1  ;;  %v4133_v3 = vpop.f32.mrf.mxu0 }
 0x2a9   :  { %10140 = vst [vmem:[#allocation32_spill] sm:$0xff] %v9314_v50  ;;  %v9317_v49 = vadd.f32 %v6492_v13, %v3893_v16  ;;  %v3891_v56 = vadd.f32 %v3746_v39, %v10143_v63  ;;  %v10149_v13 = vld [vmem:[#allocation75_spill] sm:$0xff] }
 0x2aa   :  { %v6429_v5 = vpop.f32.mrf.mxu1  ;;  %v6496_v61 = vpop.f32.mrf.mxu0 }
 0x2ab   :  { %10142 = vst [vmem:[#allocation120_spill] sm:$0xff] %v9317_v49  ;;  %v9320_v55 = vadd.f32 %v4120_v24, %v3891_v56  ;;  %v3896_v11 = vadd.f32 %v6429_v5, %v10145_v2  ;;  %v10151_v24 = vld [vmem:[#allocation78_spill] sm:$0xff] }
 0x2ac   :  { %v3759_v6 = vpop.f32.mrf.mxu1  ;;  %v4136_v50 = vpop.f32.mrf.mxu0 }
 0x2ad   :  { %10144 = vst [vmem:[#allocation35_spill] sm:$0xff] %v9320_v55  ;;  %v9323_v20 = vadd.f32 %v6495_v45, %v3896_v11  ;;  %v3894_v1 = vadd.f32 %v3759_v6, %v10147_v18  ;;  %v10153_v45 = vld [vmem:[#allocation79_spill] sm:$0xff] }
 0x2ae   :  { %v6430_v60 = vpop.f32.mrf.mxu1  ;;  %v6499_v49 = vpop.f32.mrf.mxu0 }
 0x2af   :  { %10146 = vst [vmem:[#allocation40_spill] sm:$0xff] %v9323_v20  ;;  %v9326_v28 = vadd.f32 %v4133_v3, %v3894_v1  ;;  %v3897_v16 = vadd.f32 %v6430_v60, %v10149_v13  ;;  %v10155_v3 = vld [vmem:[#allocation82_spill] sm:$0xff] }
 0x2b0   :  { %v3762_v39 = vpop.f32.mrf.mxu1  ;;  %v4149_v55 = vpop.f32.mrf.mxu0 }
 0x2b1   :  { %10148 = vst [vmem:[#allocation5_spill] sm:$0xff] %v9326_v28  ;;  %v9329_v63 = vadd.f32 %v6496_v61, %v3897_v16  ;;  %v3895_v56 = vadd.f32 %v3762_v39, %v10151_v24  ;;  %v10157_v61 = vld [vmem:[#allocation114_spill] sm:$0xff] }
 0x2b2   :  { %v6433_v5 = vpop.f32.mrf.mxu1  ;;  %v6500_v20 = vpop.f32.mrf.mxu0 }
 0x2b3   :  { %10150 = vst [vmem:[#allocation46_spill] sm:$0xff] %v9329_v63  ;;  %v9332_v2 = vadd.f32 %v4136_v50, %v3895_v56  ;;  %v3900_v11 = vadd.f32 %v6433_v5, %v10153_v45  ;;  %v10159_v50 = vld [vmem:[#allocation23_spill] sm:$0xff] }
 0x2b4   :  { %v3775_v6 = vpop.f32.mrf.mxu1  ;;  %v4152_v28 = vpop.f32.mrf.mxu0 }
 0x2b5   :  { %10152 = vst [vmem:[#allocation47_spill] sm:$0xff] %v9332_v2  ;;  %v9335_v18 = vadd.f32 %v6499_v49, %v3900_v11  ;;  %v3898_v1 = vadd.f32 %v3775_v6, %v10155_v3  ;;  %v10161_v49 = vld [vmem:[#allocation115_spill] sm:$0xff] }
 0x2b6   :  { %v6434_v60 = vpop.f32.mrf.mxu1  ;;  %v6503_v63 = vpop.f32.mrf.mxu0 }
 0x2b7   :  { %10154 = vst [vmem:[#allocation48_spill] sm:$0xff] %v9335_v18  ;;  %v9338_v13 = vadd.f32 %v4149_v55, %v3898_v1  ;;  %v3901_v16 = vadd.f32 %v6434_v60, %v10157_v61  ;;  %v10162_v55 = vld [vmem:[#allocation116_spill] sm:$0xff] }
 0x2b8   :  { %v3778_v39 = vpop.f32.mrf.mxu1  ;;  %v4165_v2 = vpop.f32.mrf.mxu0 }
 0x2b9   :  { %10156 = vst [vmem:[#allocation7_spill] sm:$0xff] %v9338_v13  ;;  %v9341_v24 = vadd.f32 %v6500_v20, %v3901_v16  ;;  %v3899_v56 = vadd.f32 %v3778_v39, %v10159_v50  ;;  %v10163_v20 = vld [vmem:[#allocation86_spill] sm:$0xff] }
 0x2ba   :  { %v6437_v5 = vpop.f32.mrf.mxu1  ;;  %v6504_v18 = vpop.f32.mrf.mxu0 }
 0x2bb   :  { %10158 = vst [vmem:[#allocation92_spill] sm:$0xff] %v9341_v24  ;;  %v9344_v45 = vadd.f32 %v4152_v28, %v3899_v56  ;;  %v3904_v11 = vadd.f32 %v6437_v5, %v10161_v49  ;;  %v10164_v28 = vld [vmem:[#allocation117_spill] sm:$0xff] }
 0x2bc   :  { %v3791_v6 = vpop.f32.mrf.mxu1  ;;  %v4168_v13 = vpop.f32.mrf.mxu0 }
 0x2bd   :  { %10160 = vst [vmem:[#allocation9_spill] sm:$0xff] %v9344_v45  ;;  %v9347_v3 = vadd.f32 %v6503_v63, %v3904_v11  ;;  %v3902_v1 = vadd.f32 %v3791_v6, %v10162_v55 }
 0x2be   :  { %v6438_v60 = vpop.f32.mrf.mxu1  ;;  %v6507_v24 = vpop.f32.mrf.mxu0 }
 0x2bf   :  { %v9350_v61 = vadd.f32 %v4165_v2, %v3902_v1  ;;  %v3905_v16 = vadd.f32 %v6438_v60, %v10163_v20 }
 0x2c0   :  { %v3794_v39 = vpop.f32.mrf.mxu1  ;;  %v4181_v45 = vpop.f32.mrf.mxu0 }
 0x2c1   :  { %v9353_v50 = vadd.f32 %v6504_v18, %v3905_v16  ;;  %v3903_v56 = vadd.f32 %v3794_v39, %v10164_v28 }
 0x2c2   :  { %v6441_v5 = vpop.f32.mrf.mxu1  ;;  %v6508_v11 = vpop.f32.mrf.mxu0 }
 0x2c3   :  { %v9356_v49 = vadd.f32 %v4168_v13, %v3903_v56  ;;  %v3908_v63 = vadd.f32 %v6441_v5, %v9070_v36 }
 0x2c4   :  { %v3807_v6 = vpop.f32.mrf.mxu1  ;;  %v4184_v1 = vpop.f32.mrf.mxu0 }
 0x2c5   :  { %v9359_v55 = vadd.f32 %v6507_v24, %v3908_v63  ;;  %v3906_v2 = vadd.f32 %v3807_v6, %v9073_v21 }
 0x2c6   :  { %v6442_v60 = vpop.f32.mrf.mxu1  ;;  %v6511_v16 = vpop.f32.mrf.mxu0 }
 0x2c7   :  { %v9362_v20 = vadd.f32 %v4181_v45, %v3906_v2  ;;  %v3909_v18 = vadd.f32 %v6442_v60, %v9084_v12 }
 0x2c8   :  { %v3810_v39 = vpop.f32.mrf.mxu1  ;;  %v4197_v56 = vpop.f32.mrf.mxu0 }
 0x2c9   :  { %v9365_v28 = vadd.f32 %v6508_v11, %v3909_v18  ;;  %v3907_v13 = vadd.f32 %v3810_v39, %v9091_v51 }
 0x2ca   :  { %v6445_v36 = vpop.f32.mrf.mxu1  ;;  %v6512_v63 = vpop.f32.mrf.mxu0 }
 0x2cb   :  { %v9368_v5 = vadd.f32 %v4184_v1, %v3907_v13  ;;  %v3912_v24 = vadd.f32 %v6445_v36, %v9098_v19 }
 0x2cc   :  { %v3823_v21 = vpop.f32.mrf.mxu1  ;;  %v4200_v2 = vpop.f32.mrf.mxu0 }
 0x2cd   :  { %v9371_v6 = vadd.f32 %v6511_v16, %v3912_v24  ;;  %v3910_v45 = vadd.f32 %v3823_v21, %v9101_v23 }
 0x2ce   :  { %v6446_v12 = vpop.f32.mrf.mxu1  ;;  %v6515_v18 = vpop.f32.mrf.mxu0 }
 0x2cf   :  { %v9374_v60 = vadd.f32 %v4197_v56, %v3910_v45  ;;  %v3913_v11 = vadd.f32 %v6446_v12, %v9107_v27 }
 0x2d0   :  { %v3826_v51 = vpop.f32.mrf.mxu1  ;;  %v4213_v13 = vpop.f32.mrf.mxu0 }
 0x2d1   :  { %v9377_v39 = vadd.f32 %v6512_v63, %v3913_v11  ;;  %v3911_v1 = vadd.f32 %v3826_v51, %v9111_v62 }
 0x2d2   :  { %v6449_v19 = vpop.f32.mrf.mxu1  ;;  %v6516_v24 = vpop.f32.mrf.mxu0 }
 0x2d3   :  { %v9380_v36 = vadd.f32 %v4200_v2, %v3911_v1  ;;  %v3916_v16 = vadd.f32 %v6449_v19, %v9116_v32 }
 0x2d4   :  { %v3839_v23 = vpop.f32.mrf.mxu1  ;;  %v4216_v45 = vpop.f32.mrf.mxu0 }
 0x2d5   :  { %v9383_v21 = vadd.f32 %v6515_v18, %v3916_v16  ;;  %v3914_v56 = vadd.f32 %v3839_v23, %v9119_v43 }
 0x2d6   :  { %v6450_v27 = vpop.f32.mrf.mxu1  ;;  %v6587_v11 = vpop.f32.mrf.mxu0 }
 0x2d7   :  { %10165 = vst [vmem:[#allocation49_spill] sm:$0xff] %v9383_v21  ;;  %v9386_v12 = vadd.f32 %v4213_v13, %v3914_v56  ;;  %v3917_v63 = vadd.f32 %v6450_v27, %v9126_v31 }
 0x2d8   :  { %v3842_v62 = vpop.f32.mrf.mxu1  ;;  %v4777_v1 = vpop.f32.mrf.mxu0 }
 0x2d9   :  { %10166 = vst [vmem:[#allocation45_spill] sm:$0xff] %v9386_v12  ;;  %v9389_v51 = vadd.f32 %v6516_v24, %v3917_v63  ;;  %v3915_v2 = vadd.f32 %v3842_v62, %v9131_v41  ;;  %v9400_v41 = vld [vmem:[%s9536_s2] ss:$0 sm:$0xff] }
 0x2da   :  { %v6521_v32 = vpop.f32.mrf.mxu1  ;;  %v6588_v16 = vpop.f32.mrf.mxu0 }
 0x2db   :  { %10167 = vst [vmem:[#allocation51_spill] sm:$0xff] %v9389_v51  ;;  %v9392_v19 = vadd.f32 %v4216_v45, %v3915_v2  ;;  %v4648_v18 = vadd.f32 %v6521_v32, %v9136_v38 }
 0x2dc   :  { %v4391_v43 = vpop.f32.mrf.mxu1  ;;  %v4780_v56 = vpop.f32.mrf.mxu0 }
 0x2dd   :  { %10168 = vst [vmem:[#allocation53_spill] sm:$0xff] %v9392_v19  ;;  %v5034_v23 = vadd.f32 %v6587_v11, %v4648_v18  ;;  %v4646_v13 = vadd.f32 %v4391_v43, %v9139_v15 }
 0x2de   :  { %v6522_v21 = vpop.f32.mrf.mxu1  ;;  %v6591_v24 = vpop.f32.mrf.mxu0 }
 0x2df   :  { %v5032_v31 = vadd.f32 %v4777_v1, %v4646_v13  ;;  %v4649_v27 = vadd.f32 %v6522_v21, %v9146_v26  ;;  %v5105_v26 = vadd.f32 %v9400_v41, %v5034_v23 }
 0x2e0   :  { %v4394_v63 = vpop.f32.mrf.mxu1  ;;  %v4793_v62 = vpop.f32.mrf.mxu0 }
 0x2e1   :  { %v5035_v45 = vadd.f32 %v6588_v16, %v4649_v27  ;;  %v4647_v38 = vadd.f32 %v4394_v63, %v9151_v30  ;;  %v5103_v11 = vadd.f32 %v9400_v41, %v5032_v31 }
 0x2e2   :  { %v6525_v2 = vpop.f32.mrf.mxu1  ;;  %v6592_v1 = vpop.f32.mrf.mxu0 }
 0x2e3   :  { %v5033_v15 = vadd.f32 %v4780_v56, %v4647_v38  ;;  %v4652_v32 = vadd.f32 %v6525_v2, %v9156_v58  ;;  %v5167_v16 = vmax.f32 %v5103_v11, 0.0  ;;  %v5106_v30 = vadd.f32 %v9400_v41, %v5035_v45 }
 0x2e4   :  { %v4407_v18 = vpop.f32.mrf.mxu1  ;;  %v4796_v19 = vpop.f32.mrf.mxu0  ;;  %v5169_v2 = vmax.f32 %v5105_v26, 0.0 }
 0x2e5   :  { %v5104_v21 = vadd.f32 %v9400_v41, %v5033_v15  ;;  %v5038_v43 = vadd.f32 %v6591_v24, %v4652_v32  ;;  %v4650_v13 = vadd.f32 %v4407_v18, %v9159_v34  ;;  %v5170_v32 = vmax.f32 %v5106_v30, 0.0 }
 0x2e6   :  { %v6526_v27 = vpop.f32.mrf.mxu1  ;;  %v6595_v38 = vpop.f32.mrf.mxu0 }
 0x2e7   :  { %v5168_v63 = vmax.f32 %v5104_v21, 0.0  ;;  %v5036_v31 = vadd.f32 %v4793_v62, %v4650_v13  ;;  %v4653_v56 = vadd.f32 %v6526_v27, %v9166_v54 }
 0x2e8   :  { %v4410_v58 = vpop.f32.mrf.mxu1  ;;  %v4809_v15 = vpop.f32.mrf.mxu0 }
 0x2e9   :  { %v5231_v51 = vadd.f32 %v5168_v63, %v5167_v16  ;;  %v5107_v23 = vadd.f32 %v9400_v41, %v5036_v31  ;;  %v5039_v12 = vadd.f32 %v6592_v1, %v4653_v56  ;;  %v4651_v24 = vadd.f32 %v4410_v58, %v9171_v10 }
 0x2ea   :  { %v6529_v34 = vpop.f32.mrf.mxu1  ;;  %v6596_v45 = vpop.f32.mrf.mxu0  ;;  %v5109_v63 = vadd.f32 %v9400_v41, %v5038_v43 }
 0x2eb   :  { %v5232_v11 = vadd.f32 %v5231_v51, %v5169_v2  ;;  %v4656_v18 = vadd.f32 %v6529_v34, %v9176_v57  ;;  %v5037_v21 = vadd.f32 %v4796_v19, %v4651_v24  ;;  %v5171_v13 = vmax.f32 %v5107_v23, 0.0 }
 0x2ec   :  { %v4423_v62 = vpop.f32.mrf.mxu1  ;;  %v4812_v16 = vpop.f32.mrf.mxu0  ;;  %v5110_v57 = vadd.f32 %v9400_v41, %v5039_v12 }
 0x2ed   :  { %v5233_v54 = vadd.f32 %v5232_v11, %v5170_v32  ;;  %v5042_v27 = vadd.f32 %v6595_v38, %v4656_v18  ;;  %v4654_v26 = vadd.f32 %v4423_v62, %v9179_v14  ;;  %v5108_v1 = vadd.f32 %v9400_v41, %v5037_v21 }
 0x2ee   :  { %v6530_v31 = vpop.f32.mrf.mxu1  ;;  %v6599_v30 = vpop.f32.mrf.mxu0  ;;  %v5173_v14 = vmax.f32 %v5109_v63, 0.0  ;;  %v5174_v18 = vmax.f32 %v5110_v57, 0.0 }
 0x2ef   :  { %v5234_v10 = vadd.f32 %v5233_v54, %v5171_v13  ;;  %v5040_v56 = vadd.f32 %v4809_v15, %v4654_v26  ;;  %v4657_v51 = vadd.f32 %v6530_v31, %v9186_v46  ;;  %v5172_v19 = vmax.f32 %v5108_v1, 0.0 }
 0x2f0   :  { %v4426_v58 = vpop.f32.mrf.mxu1  ;;  %v4825_v23 = vpop.f32.mrf.mxu0 }
 0x2f1   :  { %v5043_v2 = vadd.f32 %v6596_v45, %v4657_v51  ;;  %v4655_v38 = vadd.f32 %v4426_v58, %v9191_v44  ;;  %v5235_v24 = vadd.f32 %v5234_v10, %v5172_v19  ;;  %v5111_v43 = vadd.f32 %v9400_v41, %v5040_v56 }
 0x2f2   :  { %v6533_v34 = vpop.f32.mrf.mxu1  ;;  %v6600_v15 = vpop.f32.mrf.mxu0  ;;  %v5113_v44 = vadd.f32 %v9400_v41, %v5042_v27 }
 0x2f3   :  { %v5041_v32 = vadd.f32 %v4812_v16, %v4655_v38  ;;  %v4660_v11 = vadd.f32 %v6533_v34, %v9196_v42  ;;  %v5236_v46 = vadd.f32 %v5235_v24, %v5173_v14  ;;  %v5175_v54 = vmax.f32 %v5111_v43, 0.0 }
 0x2f4   :  { %v4439_v21 = vpop.f32.mrf.mxu1  ;;  %v4828_v13 = vpop.f32.mrf.mxu0  ;;  %v5114_v56 = vadd.f32 %v9400_v41, %v5043_v2 }
 0x2f5   :  { %v5112_v12 = vadd.f32 %v9400_v41, %v5041_v32  ;;  %v5046_v62 = vadd.f32 %v6599_v30, %v4660_v11  ;;  %v4658_v45 = vadd.f32 %v4439_v21, %v9199_v48  ;;  %v5237_v26 = vadd.f32 %v5236_v46, %v5174_v18 }
 0x2f6   :  { %v6534_v63 = vpop.f32.mrf.mxu1  ;;  %v6603_v42 = vpop.f32.mrf.mxu0  ;;  %v5177_v48 = vmax.f32 %v5113_v44, 0.0  ;;  %v5178_v43 = vmax.f32 %v5114_v56, 0.0 }
 0x2f7   :  { %v5176_v1 = vmax.f32 %v5112_v12, 0.0  ;;  %v5044_v31 = vadd.f32 %v4825_v23, %v4658_v45  ;;  %v4661_v16 = vadd.f32 %v6534_v63, %v9206_v47  ;;  %v5238_v10 = vadd.f32 %v5237_v26, %v5175_v54 }
 0x2f8   :  { %v4442_v51 = vpop.f32.mrf.mxu1  ;;  %v4841_v19 = vpop.f32.mrf.mxu0 }
 0x2f9   :  { %v5047_v57 = vadd.f32 %v6600_v15, %v4661_v16  ;;  %v4659_v30 = vadd.f32 %v4442_v51, %v9214_v52  ;;  %v5239_v58 = vadd.f32 %v5238_v10, %v5176_v1  ;;  %v5115_v27 = vadd.f32 %v9400_v41, %v5044_v31 }
 0x2fa   :  { %v6537_v38 = vpop.f32.mrf.mxu1  ;;  %v6604_v23 = vpop.f32.mrf.mxu0  ;;  %v5117_v52 = vadd.f32 %v9400_v41, %v5046_v62 }
 0x2fb   :  { %v5045_v14 = vadd.f32 %v4828_v13, %v4659_v30  ;;  %v4664_v24 = vadd.f32 %v6537_v38, %v9220_v37  ;;  %v5240_v47 = vadd.f32 %v5239_v58, %v5177_v48  ;;  %v5179_v18 = vmax.f32 %v5115_v27, 0.0 }
 0x2fc   :  { %v4455_v34 = vpop.f32.mrf.mxu1  ;;  %v4844_v15 = vpop.f32.mrf.mxu0  ;;  %v5118_v54 = vadd.f32 %v9400_v41, %v5047_v57 }
 0x2fd   :  { %v5116_v32 = vadd.f32 %v9400_v41, %v5045_v14  ;;  %v5050_v2 = vadd.f32 %v6603_v42, %v4664_v24  ;;  %v4662_v11 = vadd.f32 %v4455_v34, %v9223_v29  ;;  %v5241_v46 = vadd.f32 %v5240_v47, %v5178_v43 }
 0x2fe   :  { %v6538_v21 = vpop.f32.mrf.mxu1  ;;  %v6607_v37 = vpop.f32.mrf.mxu0  ;;  %v5181_v29 = vmax.f32 %v5117_v52, 0.0  ;;  %v5182_v30 = vmax.f32 %v5118_v54, 0.0 }
 0x2ff   :  { %v5180_v12 = vmax.f32 %v5116_v32, 0.0  ;;  %v5048_v45 = vadd.f32 %v4841_v19, %v4662_v11  ;;  %v4665_v13 = vadd.f32 %v6538_v21, %v9234_v17  ;;  %v5242_v44 = vadd.f32 %v5241_v46, %v5179_v18 }
 0x300   :  { %v4458_v26 = vpop.f32.mrf.mxu1  ;;  %v4857_v31 = vpop.f32.mrf.mxu0 }
 0x301   :  { %v5051_v63 = vadd.f32 %v6604_v23, %v4665_v13  ;;  %v4663_v1 = vadd.f32 %v4458_v26, %v9239_v7  ;;  %v5243_v16 = vadd.f32 %v5242_v44, %v5180_v12  ;;  %v5119_v62 = vadd.f32 %v9400_v41, %v5048_v45 }
 0x302   :  { %v6541_v42 = vpop.f32.mrf.mxu1  ;;  %v6608_v51 = vpop.f32.mrf.mxu0  ;;  %v5121_v7 = vadd.f32 %v9400_v41, %v5050_v2 }
 0x303   :  { %v5049_v10 = vadd.f32 %v4844_v15, %v4663_v1  ;;  %v4668_v56 = vadd.f32 %v6541_v42, %v9245_v22  ;;  %v5244_v17 = vadd.f32 %v5243_v16, %v5181_v29  ;;  %v5183_v38 = vmax.f32 %v5119_v62, 0.0 }
 0x304   :  { %v4471_v19 = vpop.f32.mrf.mxu1  ;;  %v4860_v27 = vpop.f32.mrf.mxu0  ;;  %v5122_v32 = vadd.f32 %v9400_v41, %v5051_v63 }
 0x305   :  { %v5120_v48 = vadd.f32 %v9400_v41, %v5049_v10  ;;  %v5054_v57 = vadd.f32 %v6607_v37, %v4668_v56  ;;  %v4666_v58 = vadd.f32 %v4471_v19, %v9248_v53  ;;  %v5245_v14 = vadd.f32 %v5244_v17, %v5182_v30 }
 0x306   :  { %v6542_v24 = vpop.f32.mrf.mxu1  ;;  %v6611_v22 = vpop.f32.mrf.mxu0  ;;  %v5185_v53 = vmax.f32 %v5121_v7, 0.0  ;;  %v5186_v37 = vmax.f32 %v5122_v32, 0.0 }
 0x307   :  { %v5184_v23 = vmax.f32 %v5120_v48, 0.0  ;;  %v5052_v43 = vadd.f32 %v4857_v31, %v4666_v58  ;;  %v4669_v47 = vadd.f32 %v6542_v24, %v9259_v33  ;;  %v5246_v34 = vadd.f32 %v5245_v14, %v5183_v38 }
 0x308   :  { %v4474_v11 = vpop.f32.mrf.mxu1  ;;  %v4873_v18 = vpop.f32.mrf.mxu0 }
 0x309   :  { %v5055_v15 = vadd.f32 %v6608_v51, %v4669_v47  ;;  %v4667_v52 = vadd.f32 %v4474_v11, %v9266_v8  ;;  %v5247_v46 = vadd.f32 %v5246_v34, %v5184_v23  ;;  %v5123_v2 = vadd.f32 %v9400_v41, %v5052_v43 }
 0x30a   :  { %v6545_v21 = vpop.f32.mrf.mxu1  ;;  %v6612_v13 = vpop.f32.mrf.mxu0  ;;  %v5125_v8 = vadd.f32 %v9400_v41, %v5054_v57 }
 0x30b   :  { %v5053_v12 = vadd.f32 %v4860_v27, %v4667_v52  ;;  %v4672_v45 = vadd.f32 %v6545_v21, %v9273_v59  ;;  %v5248_v33 = vadd.f32 %v5247_v46, %v5185_v53  ;;  %v5187_v31 = vmax.f32 %v5123_v2, 0.0 }
 0x30c   :  { %v4487_v44 = vpop.f32.mrf.mxu1  ;;  %v4876_v1 = vpop.f32.mrf.mxu0  ;;  %v5126_v51 = vadd.f32 %v9400_v41, %v5055_v15 }
 0x30d   :  { %v5124_v54 = vadd.f32 %v9400_v41, %v5053_v12  ;;  %v5058_v26 = vadd.f32 %v6611_v22, %v4672_v45  ;;  %v4670_v63 = vadd.f32 %v4487_v44, %v9276_v35  ;;  %v5249_v29 = vadd.f32 %v5248_v33, %v5186_v37  ;;  %v10169_v45 = vld [vmem:[#allocation118_spill] sm:$0xff] }
 0x30e   :  { %v6546_v16 = vpop.f32.mrf.mxu1  ;;  %v6615_v59 = vpop.f32.mrf.mxu0  ;;  %v5189_v35 = vmax.f32 %v5125_v8, 0.0  ;;  %v5190_v24 = vmax.f32 %v5126_v51, 0.0 }
 0x30f   :  { %v5188_v62 = vmax.f32 %v5124_v54, 0.0  ;;  %v5056_v42 = vadd.f32 %v4873_v18, %v4670_v63  ;;  %v4673_v10 = vadd.f32 %v6546_v16, %v9280_v25  ;;  %v5250_v56 = vadd.f32 %v5249_v29, %v5187_v31  ;;  %v10170_v29 = vld [vmem:[#allocation119_spill] sm:$0xff] }
 0x310   :  { %v4490_v30 = vpop.f32.mrf.mxu1  ;;  %v4889_v48 = vpop.f32.mrf.mxu0 }
 0x311   :  { %v5059_v17 = vadd.f32 %v6612_v13, %v4673_v10  ;;  %v4671_v19 = vadd.f32 %v4490_v30, %v9284_v9  ;;  %v5251_v58 = vadd.f32 %v5250_v56, %v5188_v62  ;;  %v5127_v57 = vadd.f32 %v9400_v41, %v5056_v42  ;;  %v10171_v62 = vld [vmem:[#allocation87_spill] sm:$0xff] }
 0x312   :  { %v6549_v27 = vpop.f32.mrf.mxu1  ;;  %v6616_v14 = vpop.f32.mrf.mxu0  ;;  %v5129_v9 = vadd.f32 %v9400_v41, %v5058_v26 }
 0x313   :  { %v5057_v7 = vadd.f32 %v4876_v1, %v4671_v19  ;;  %v4676_v38 = vadd.f32 %v6549_v27, %v9287_v0  ;;  %v5252_v25 = vadd.f32 %v5251_v58, %v5189_v35  ;;  %v5191_v32 = vmax.f32 %v5127_v57, 0.0 }
 0x314   :  { %v4503_v23 = vpop.f32.mrf.mxu1  ;;  %v4892_v34 = vpop.f32.mrf.mxu0  ;;  %v5130_v2 = vadd.f32 %v9400_v41, %v5059_v17 }
 0x315   :  { %v5128_v43 = vadd.f32 %v9400_v41, %v5057_v7  ;;  %v5062_v47 = vadd.f32 %v6615_v59, %v4676_v38  ;;  %v4674_v22 = vadd.f32 %v4503_v23, %v9290_v4  ;;  %v5253_v11 = vadd.f32 %v5252_v25, %v5190_v24 }
 0x316   :  { %v6550_v15 = vpop.f32.mrf.mxu1  ;;  %v6619_v0 = vpop.f32.mrf.mxu0  ;;  %v5193_v4 = vmax.f32 %v5129_v9, 0.0  ;;  %v5194_v1 = vmax.f32 %v5130_v2, 0.0 }
 0x317   :  { %v5192_v52 = vmax.f32 %v5128_v43, 0.0  ;;  %v5060_v18 = vadd.f32 %v4889_v48, %v4674_v22  ;;  %v4677_v53 = vadd.f32 %v6550_v15, %v9293_v40  ;;  %v5254_v46 = vadd.f32 %v5253_v11, %v5191_v32  ;;  %v10172_v48 = vld [vmem:[#allocation34_spill] sm:$0xff] }
 0x318   :  { %v4506_v21 = vpop.f32.mrf.mxu1  ;;  %v4905_v37 = vpop.f32.mrf.mxu0  ;;  %v5133_v59 = vadd.f32 %v9400_v41, %v5062_v47 }
 0x319   :  { %v5063_v12 = vadd.f32 %v6616_v14, %v4677_v53  ;;  %v4675_v13 = vadd.f32 %v4506_v21, %v10169_v45  ;;  %v5255_v33 = vadd.f32 %v5254_v46, %v5192_v52  ;;  %v5131_v44 = vadd.f32 %v9400_v41, %v5060_v18  ;;  %v10173_v14 = vld [vmem:[#allocation121_spill] sm:$0xff]  ;;  %v10174_v46 = vld [vmem:[#allocation32_spill] sm:$0xff] }
 0x31a   :  { %v6553_v54 = vpop.f32.mrf.mxu1  ;;  %v6620_v63 = vpop.f32.mrf.mxu0  ;;  %v5197_v23 = vmax.f32 %v5133_v59, 0.0 }
 0x31b   :  { %v5061_v26 = vadd.f32 %v4892_v34, %v4675_v13  ;;  %v5256_v8 = vadd.f32 %v5255_v33, %v5193_v4  ;;  %v4680_v16 = vadd.f32 %v6553_v54, %v10170_v29  ;;  %v5195_v56 = vmax.f32 %v5131_v44, 0.0 }
 0x31c   :  { %v4519_v31 = vpop.f32.mrf.mxu1  ;;  %v4908_v10 = vpop.f32.mrf.mxu0  ;;  %v5134_v27 = vadd.f32 %v9400_v41, %v5063_v12  ;;  %v10175_v12 = vld [vmem:[#allocation88_spill] sm:$0xff] }
 0x31d   :  { %v5132_v40 = vadd.f32 %v9400_v41, %v5061_v26  ;;  %v4678_v42 = vadd.f32 %v4519_v31, %v10171_v62  ;;  %v5257_v51 = vadd.f32 %v5256_v8, %v5194_v1  ;;  %v5066_v38 = vadd.f32 %v6619_v0, %v4680_v16  ;;  %v10176_v26 = vld [vmem:[#allocation120_spill] sm:$0xff]  ;;  %v10177_v62 = vld [vmem:[#allocation35_spill] sm:$0xff] }
 0x31e   :  { %v6554_v30 = vpop.f32.mrf.mxu1  ;;  %v6623_v58 = vpop.f32.mrf.mxu0  ;;  %v5198_v11 = vmax.f32 %v5134_v27, 0.0 }
 0x31f   :  { %v5196_v17 = vmax.f32 %v5132_v40, 0.0  ;;  %v5064_v19 = vadd.f32 %v4905_v37, %v4678_v42  ;;  %v4681_v35 = vadd.f32 %v6554_v30, %v10172_v48  ;;  %v5258_v57 = vadd.f32 %v5257_v51, %v5195_v56 }
 0x320   :  { %v4522_v7 = vpop.f32.mrf.mxu1  ;;  %v4921_v25 = vpop.f32.mrf.mxu0  ;;  %v5137_v18 = vadd.f32 %v9400_v41, %v5066_v38 }
 0x321   :  { %v4679_v24 = vadd.f32 %v4522_v7, %v10173_v14  ;;  %v5259_v43 = vadd.f32 %v5258_v57, %v5196_v17  ;;  %v5135_v47 = vadd.f32 %v9400_v41, %v5064_v19  ;;  %v5067_v34 = vadd.f32 %v6620_v63, %v4681_v35  ;;  %v10178_v57 = vld [vmem:[#allocation5_spill] sm:$0xff] }
 0x322   :  { %v6557_v22 = vpop.f32.mrf.mxu1  ;;  %v6624_v32 = vpop.f32.mrf.mxu0  ;;  %v5201_v8 = vmax.f32 %v5137_v18, 0.0 }
 0x323   :  { %v5065_v9 = vadd.f32 %v4908_v10, %v4679_v24  ;;  %v5260_v15 = vadd.f32 %v5259_v43, %v5197_v23  ;;  %v4684_v45 = vadd.f32 %v6557_v22, %v10175_v12  ;;  %v5199_v37 = vmax.f32 %v5135_v47, 0.0  ;;  %v10179_v24 = vld [vmem:[#allocation40_spill] sm:$0xff] }
 0x324   :  { %v4535_v52 = vpop.f32.mrf.mxu1  ;;  %v4924_v2 = vpop.f32.mrf.mxu0  ;;  %v5138_v4 = vadd.f32 %v9400_v41, %v5067_v34 }
 0x325   :  { %v5136_v53 = vadd.f32 %v9400_v41, %v5065_v9  ;;  %v4682_v0 = vadd.f32 %v4535_v52, %v10174_v46  ;;  %v9471_v21 = vadd.f32 %v5260_v15, %v5198_v11  ;;  %v5070_v16 = vadd.f32 %v6623_v58, %v4684_v45  ;;  %v10180_v9 = vld [vmem:[#allocation46_spill] sm:$0xff]  ;;  %v10181_v15 = vld [vmem:[#allocation47_spill] sm:$0xff] }
 0x326   :  { %v6558_v13 = vpop.f32.mrf.mxu1  ;;  %v6627_v54 = vpop.f32.mrf.mxu0  ;;  %v5202_v59 = vmax.f32 %v5138_v4, 0.0 }
 0x327   :  { %v5200_v33 = vmax.f32 %v5136_v53, 0.0  ;;  %v5068_v44 = vadd.f32 %v4921_v25, %v4682_v0  ;;  %v4685_v63 = vadd.f32 %v6558_v13, %v10176_v26  ;;  %v5141_v38 = vadd.f32 %v9400_v41, %v5070_v16  ;;  %v10183_v16 = vld [vmem:[#allocation48_spill] sm:$0xff] }
 0x328   :  { %v4538_v1 = vpop.f32.mrf.mxu1  ;;  %v4937_v29 = vpop.f32.mrf.mxu0 }
 0x329   :  { %v5268_v31 = vadd.f32 %v5200_v33, %v5199_v37  ;;  %v5139_v40 = vadd.f32 %v9400_v41, %v5068_v44  ;;  %v4683_v42 = vadd.f32 %v4538_v1, %v10177_v62  ;;  %v5071_v30 = vadd.f32 %v6624_v32, %v4685_v63  ;;  %v10182_v63 = vld [vmem:[#allocation7_spill] sm:$0xff] }
 0x32a   :  { %v6561_v10 = vpop.f32.mrf.mxu1  ;;  %v6628_v51 = vpop.f32.mrf.mxu0  ;;  %v5205_v53 = vmax.f32 %v5141_v38, 0.0 }
 0x32b   :  { %v5269_v56 = vadd.f32 %v5268_v31, %v5201_v8  ;;  %v5069_v17 = vadd.f32 %v4924_v2, %v4683_v42  ;;  %v5203_v48 = vmax.f32 %v5139_v40, 0.0  ;;  %v4688_v58 = vadd.f32 %v6561_v10, %v10179_v24 }
 0x32c   :  { %v4551_v19 = vpop.f32.mrf.mxu1  ;;  %v4940_v7 = vpop.f32.mrf.mxu0  ;;  %v5142_v47 = vadd.f32 %v9400_v41, %v5071_v30 }
 0x32d   :  { %v5270_v35 = vadd.f32 %v5269_v56, %v5202_v59  ;;  %v4686_v27 = vadd.f32 %v4551_v19, %v10178_v57  ;;  %v5140_v14 = vadd.f32 %v9400_v41, %v5069_v17  ;;  %v5074_v0 = vadd.f32 %v6627_v54, %v4688_v58 }
 0x32e   :  { %v6562_v25 = vpop.f32.mrf.mxu1  ;;  %v6631_v22 = vpop.f32.mrf.mxu0  ;;  %v5206_v37 = vmax.f32 %v5142_v47, 0.0 }
 0x32f   :  { %v5271_v23 = vadd.f32 %v5270_v35, %v5203_v48  ;;  %v5072_v43 = vadd.f32 %v4937_v29, %v4686_v27  ;;  %v5204_v34 = vmax.f32 %v5140_v14, 0.0  ;;  %v4689_v32 = vadd.f32 %v6562_v25, %v10180_v9  ;;  %v10185_v48 = vld [vmem:[#allocation9_spill] sm:$0xff] }
 0x330   :  { %v4554_v11 = vpop.f32.mrf.mxu1  ;;  %v4953_v18 = vpop.f32.mrf.mxu0  ;;  %v5145_v31 = vadd.f32 %v9400_v41, %v5074_v0 }
 0x331   :  { %v4687_v52 = vadd.f32 %v4554_v11, %v10181_v15  ;;  %v5272_v46 = vadd.f32 %v5271_v23, %v5204_v34  ;;  %v5143_v2 = vadd.f32 %v9400_v41, %v5072_v43  ;;  %v5075_v33 = vadd.f32 %v6628_v51, %v4689_v32  ;;  %v10184_v51 = vld [vmem:[#allocation92_spill] sm:$0xff] }
 0x332   :  { %v6565_v12 = vpop.f32.mrf.mxu1  ;;  %v6632_v13 = vpop.f32.mrf.mxu0  ;;  %v5209_v27 = vmax.f32 %v5145_v31, 0.0 }
 0x333   :  { %v5073_v45 = vadd.f32 %v4940_v7, %v4687_v52  ;;  %v5273_v4 = vadd.f32 %v5272_v46, %v5205_v53  ;;  %v5207_v40 = vmax.f32 %v5143_v2, 0.0  ;;  %v4692_v54 = vadd.f32 %v6565_v12, %v10183_v16 }
 0x334   :  { %v4567_v44 = vpop.f32.mrf.mxu1  ;;  %v4956_v8 = vpop.f32.mrf.mxu0  ;;  %v5146_v30 = vadd.f32 %v9400_v41, %v5075_v33 }
 0x335   :  { %v5144_v26 = vadd.f32 %v9400_v41, %v5073_v45  ;;  %v4690_v1 = vadd.f32 %v4567_v44, %v10182_v63  ;;  %v5274_v29 = vadd.f32 %v5273_v4, %v5206_v37  ;;  %v5078_v38 = vadd.f32 %v6631_v22, %v4692_v54 }
 0x336   :  { %v6566_v62 = vpop.f32.mrf.mxu1  ;;  %v6635_v59 = vpop.f32.mrf.mxu0  ;;  %v5210_v23 = vmax.f32 %v5146_v30, 0.0 }
 0x337   :  { %v5208_v42 = vmax.f32 %v5144_v26, 0.0  ;;  %v5076_v10 = vadd.f32 %v4953_v18, %v4690_v1  ;;  %v5275_v56 = vadd.f32 %v5274_v29, %v5207_v40  ;;  %v4693_v17 = vadd.f32 %v6566_v62, %v10184_v51 }
 0x338   :  { %v4570_v19 = vpop.f32.mrf.mxu1  ;;  %v4969_v57 = vpop.f32.mrf.mxu0  ;;  %v5149_v15 = vadd.f32 %v9400_v41, %v5078_v38 }
 0x339   :  { %v4691_v35 = vadd.f32 %v4570_v19, %v10185_v48  ;;  %v5276_v7 = vadd.f32 %v5275_v56, %v5208_v42  ;;  %v5147_v14 = vadd.f32 %v9400_v41, %v5076_v10  ;;  %v5079_v47 = vadd.f32 %v6632_v13, %v4693_v17 }
 0x33a   :  { %v6569_v24 = vpop.f32.mrf.mxu1  ;;  %v6636_v25 = vpop.f32.mrf.mxu0  ;;  %v5213_v33 = vmax.f32 %v5149_v15, 0.0 }
 0x33b   :  { %v5077_v58 = vadd.f32 %v4956_v8, %v4691_v35  ;;  %v5277_v43 = vadd.f32 %v5276_v7, %v5209_v27  ;;  %v5211_v52 = vmax.f32 %v5147_v14, 0.0  ;;  %v4696_v22 = vadd.f32 %v6569_v24, %v9347_v3 }
 0x33c   :  { %v4583_v34 = vpop.f32.mrf.mxu1  ;;  %v4972_v11 = vpop.f32.mrf.mxu0  ;;  %v5150_v45 = vadd.f32 %v9400_v41, %v5079_v47 }
 0x33d   :  { %v5148_v9 = vadd.f32 %v9400_v41, %v5077_v58  ;;  %v4694_v32 = vadd.f32 %v4583_v34, %v9350_v61  ;;  %v5278_v18 = vadd.f32 %v5277_v43, %v5210_v23  ;;  %v5082_v26 = vadd.f32 %v6635_v59, %v4696_v22 }
 0x33e   :  { %v6570_v53 = vpop.f32.mrf.mxu1  ;;  %v6639_v2 = vpop.f32.mrf.mxu0  ;;  %v5214_v31 = vmax.f32 %v5150_v45, 0.0 }
 0x33f   :  { %v5212_v46 = vmax.f32 %v5148_v9, 0.0  ;;  %v5080_v0 = vadd.f32 %v4969_v57, %v4694_v32  ;;  %v5279_v12 = vadd.f32 %v5278_v18, %v5211_v52  ;;  %v4697_v13 = vadd.f32 %v6570_v53, %v9353_v50 }
 0x340   :  { %v4586_v37 = vpop.f32.mrf.mxu1  ;;  %v4985_v61 = vpop.f32.mrf.mxu0 }
 0x341   :  { %v4695_v4 = vadd.f32 %v4586_v37, %v9356_v49  ;;  %v5280_v44 = vadd.f32 %v5279_v12, %v5212_v46  ;;  %v5151_v63 = vadd.f32 %v9400_v41, %v5080_v0  ;;  %v5083_v29 = vadd.f32 %v6636_v25, %v4697_v13 }
 0x342   :  { %v6573_v1 = vpop.f32.mrf.mxu1  ;;  %v6640_v8 = vpop.f32.mrf.mxu0  ;;  %v5153_v49 = vadd.f32 %v9400_v41, %v5082_v26 }
 0x343   :  { %v5081_v3 = vadd.f32 %v4972_v11, %v4695_v4  ;;  %v5281_v40 = vadd.f32 %v5280_v44, %v5213_v33  ;;  %v5215_v42 = vmax.f32 %v5151_v63, 0.0  ;;  %v4700_v59 = vadd.f32 %v6573_v1, %v9359_v55 }
 0x344   :  { %v4599_v16 = vpop.f32.mrf.mxu1  ;;  %v4988_v62 = vpop.f32.mrf.mxu0  ;;  %v5154_v48 = vadd.f32 %v9400_v41, %v5083_v29  ;;  %v5217_v7 = vmax.f32 %v5153_v49, 0.0 }
 0x345   :  { %v5152_v54 = vadd.f32 %v9400_v41, %v5081_v3  ;;  %v4698_v50 = vadd.f32 %v4599_v16, %v9362_v20  ;;  %v5282_v10 = vadd.f32 %v5281_v40, %v5214_v31  ;;  %v5086_v14 = vadd.f32 %v6639_v2, %v4700_v59  ;;  %v10186_v31 = vld [vmem:[#allocation45_spill] sm:$0xff] }
 0x346   :  { %v6574_v56 = vpop.f32.mrf.mxu1  ;;  %v6643_v17 = vpop.f32.mrf.mxu0  ;;  %v5218_v23 = vmax.f32 %v5154_v48, 0.0  ;;  %v10187_v16 = vld [vmem:[#allocation49_spill] sm:$0xff] }
 0x347   :  { %v5216_v30 = vmax.f32 %v5152_v54, 0.0  ;;  %v5084_v51 = vadd.f32 %v4985_v61, %v4698_v50  ;;  %v5283_v19 = vadd.f32 %v5282_v10, %v5215_v42  ;;  %v4701_v35 = vadd.f32 %v6574_v56, %v9365_v28  ;;  %v10188_v56 = vld [vmem:[#allocation51_spill] sm:$0xff] }
 0x348   :  { %v4602_v57 = vpop.f32.mrf.mxu1  ;;  %v5001_v20 = vpop.f32.mrf.mxu0 }
 0x349   :  { %v4699_v27 = vadd.f32 %v4602_v57, %v9368_v5  ;;  %v5284_v38 = vadd.f32 %v5283_v19, %v5216_v30  ;;  %v5155_v24 = vadd.f32 %v9400_v41, %v5084_v51  ;;  %v5087_v47 = vadd.f32 %v6640_v8, %v4701_v35 }
 0x34a   :  { %v6577_v58 = vpop.f32.mrf.mxu1  ;;  %v6644_v25 = vpop.f32.mrf.mxu0  ;;  %v5157_v5 = vadd.f32 %v9400_v41, %v5086_v14 }
 0x34b   :  { %v5085_v55 = vadd.f32 %v4988_v62, %v4699_v27  ;;  %v5285_v43 = vadd.f32 %v5284_v38, %v5217_v7  ;;  %v5219_v11 = vmax.f32 %v5155_v24, 0.0  ;;  %v4704_v52 = vadd.f32 %v6577_v58, %v9371_v6 }
 0x34c   :  { %v4615_v34 = vpop.f32.mrf.mxu1  ;;  %v5004_v32 = vpop.f32.mrf.mxu0  ;;  %v5158_v2 = vadd.f32 %v9400_v41, %v5087_v47  ;;  %v5262_v38 = vrot.slane %v9471_v21, 4 }
 0x34d   :  { %v5156_v9 = vadd.f32 %v9400_v41, %v5085_v55  ;;  %v4702_v28 = vadd.f32 %v4615_v34, %v9374_v60  ;;  %v5286_v15 = vadd.f32 %v5285_v43, %v5218_v23  ;;  %v5221_v60 = vmax.f32 %v5157_v5, 0.0 }
 0x34e   :  { %v6578_v18 = vpop.f32.mrf.mxu1  ;;  %v6647_v46 = vpop.f32.mrf.mxu0  ;;  %v5090_v4 = vadd.f32 %v6643_v17, %v4704_v52  ;;  %v5222_v26 = vmax.f32 %v5158_v2, 0.0  ;;  %v10189_v17 = vld [vmem:[#allocation53_spill] sm:$0xff]  ;;  %v5263_v34 = vadd.f32 %v5262_v38, %v9471_v21 }
 0x34f   :  { %v5220_v22 = vmax.f32 %v5156_v9, 0.0  ;;  %v5088_v53 = vadd.f32 %v5001_v20, %v4702_v28  ;;  %v5287_v0 = vadd.f32 %v5286_v15, %v5219_v11  ;;  %v4705_v12 = vadd.f32 %v6578_v18, %v9377_v39 }
 0x350   :  { %v4618_v45 = vpop.f32.mrf.mxu1  ;;  %v5017_v44 = vpop.f32.mrf.mxu0  ;;  %v5161_v39 = vadd.f32 %v9400_v41, %v5090_v4  ;;  %v5264_v11 = vrot.slane %v5263_v34, 2 }
 0x351   :  { %v4703_v13 = vadd.f32 %v4618_v45, %v9380_v36  ;;  %v5288_v37 = vadd.f32 %v5287_v0, %v5220_v22  ;;  %v5159_v61 = vadd.f32 %v9400_v41, %v5088_v53  ;;  %v5091_v1 = vadd.f32 %v6644_v25, %v4705_v12 }
 0x352   :  { %v6581_v33 = vpop.f32.mrf.mxu1  ;;  %v6648_v62 = vpop.f32.mrf.mxu0  ;;  %v5225_v48 = vmax.f32 %v5161_v39, 0.0  ;;  %v5265_v22 = vadd.f32 %v5264_v11, %v5263_v34 }
 0x353   :  { %v5089_v6 = vadd.f32 %v5004_v32, %v4703_v13  ;;  %v5289_v63 = vadd.f32 %v5288_v37, %v5221_v60  ;;  %v5223_v29 = vmax.f32 %v5159_v61, 0.0  ;;  %v4708_v54 = vadd.f32 %v6581_v33, %v10187_v16 }
 0x354   :  { %v4631_v3 = vpop.f32.mrf.mxu1  ;;  %v5162_v59 = vadd.f32 %v9400_v41, %v5091_v1  ;;  %v5020_v20 = vpop.f32.mrf.mxu0  ;;  %v5266_v0 = vrot.slane %v5265_v22, 1 }
 0x355   :  { %v5160_v8 = vadd.f32 %v9400_v41, %v5089_v6  ;;  %v4706_v40 = vadd.f32 %v4631_v3, %v10186_v31  ;;  %v5290_v36 = vadd.f32 %v5289_v63, %v5222_v26  ;;  %v5094_v57 = vadd.f32 %v6647_v46, %v4708_v54 }
 0x356   :  { %v6582_v50 = vpop.f32.mrf.mxu1  ;;  %v5226_v14 = vmax.f32 %v5162_v59, 0.0  ;;  %v5267_v45 = vadd.f32 %v5266_v0, %v5265_v22 }
 0x357   :  { %v5224_v49 = vmax.f32 %v5160_v8, 0.0  ;;  %v5092_v42 = vadd.f32 %v5017_v44, %v4706_v40  ;;  %v5291_v10 = vadd.f32 %v5290_v36, %v5223_v29  ;;  %v4709_v30 = vadd.f32 %v6582_v50, %v10188_v56 }
 0x358   :  { %v4634_v51 = vpop.f32.mrf.mxu1  ;;  %v5165_v25 = vadd.f32 %v9400_v41, %v5094_v57  ;;  %v5305_v21 = vmul.f32 0.00390625, %v5267_v45 }
 0x359   :  { %v4707_v19 = vadd.f32 %v4634_v51, %v10189_v17  ;;  %v5292_v35 = vadd.f32 %v5291_v10, %v5224_v49  ;;  %v5163_v27 = vadd.f32 %v9400_v41, %v5092_v42  ;;  %v5095_v58 = vadd.f32 %v6648_v62, %v4709_v30 }
 0x35a   :  { %v5229_v32 = vmax.f32 %v5165_v25, 0.0 }
 0x35b   :  { %v5093_v7 = vadd.f32 %v5020_v20, %v4707_v19  ;;  %v5293_v24 = vadd.f32 %v5292_v35, %v5225_v48  ;;  %v5227_v23 = vmax.f32 %v5163_v27, 0.0  ;;  %v5166_v28 = vadd.f32 %v9400_v41, %v5095_v58 }
 0x35d   :  { %v5164_v55 = vadd.f32 %v9400_v41, %v5093_v7  ;;  %v5294_v43 = vadd.f32 %v5293_v24, %v5226_v14  ;;  %v5230_v15 = vmax.f32 %v5166_v28, 0.0 }
 0x35f   :  { %v5228_v47 = vmax.f32 %v5164_v55, 0.0  ;;  %v5295_v9 = vadd.f32 %v5294_v43, %v5227_v23 }
 0x361   :  { %v5296_v5 = vadd.f32 %v5295_v9, %v5228_v47 }
 0x363   :  { %v5297_v52 = vadd.f32 %v5296_v5, %v5229_v32 }
 0x365   :  { %v5298_v18 = vadd.f32 %v5297_v52, %v5230_v15 }
 0x367   :  { %v5299_v53 = vrot.slane %v5298_v18, 4 }
 0x369   :  { %v5300_v46 = vadd.f32 %v5299_v53, %v5298_v18 }
 0x36b   :  { %v5301_v2 = vrot.slane %v5300_v46, 2 }
 0x36d   :  { %v5302_v12 = vadd.f32 %v5301_v2, %v5300_v46 }
 0x36f   :  { %v5303_v13 = vrot.slane %v5302_v12, 1 }
 0x371   :  { %v5304_v60 = vadd.f32 %v5303_v13, %v5302_v12 }
 0x373   :  { %v5306_v37 = vmul.f32 0.00390625, %v5304_v60 }
 0x375   :  { %v5310_v4 = vsel %vm5309_vm8, %v5306_v37, %v5305_v21 }
 0x376   :  { %5312 = vst [vmem:[%s9537_s3] sm:$0x3] %v5310_v4 }

</bundles_post_ra>
